<compile_context>
chip_gen: v6e
topology: v6e:2x2x1
jax: 0.10.0
libtpu: 0.0.40
codegen_flags: <defaults>
</compile_context>

<pallas_src>
import functools
import math

import jax
import jax.numpy as jnp
from jax.experimental import pallas as pl
from jax.experimental.pallas import tpu as pltpu

OUTW = 128  # lane-dense output width


# ---------------------------------------------------------------------------
# Fused kernel: one batch tile (B_T samples) per grid step.
# ---------------------------------------------------------------------------
def dqn_kernel(actions_n, xw_ref, w1_ref, b1_ref, w2_ref, b2_ref,
               wh1_ref, bh1_ref, wh2_ref, bh2_ref, out_ref):
    K = w2_ref.shape[0]            # conv kernel size
    L2 = wh1_ref.shape[0]          # conv2 output length
    B_T = out_ref.shape[0]         # batch tile

    # ---- conv1 + ReLU: one matmul over all (position, sample) rows --------
    h1 = jnp.dot(xw_ref[0], w1_ref[...], preferred_element_type=jnp.float32)
    h1 = jnp.maximum(h1 + b1_ref[...], 0.0).astype(jnp.bfloat16)   # (L1*B_T, CH)

    # ---- conv2 + ReLU: shift-and-accumulate over K taps --------------------
    # Rows are ordered l*B_T + b, so every tap is a contiguous, 8-aligned
    # sublane slice of h1 (no lane concat / im2col needed).
    h2 = jnp.dot(h1[0:L2 * B_T, :], w2_ref[0],
                 preferred_element_type=jnp.float32)
    for k in range(1, K):
        h2 = h2 + jnp.dot(h1[k * B_T:(k + L2) * B_T, :], w2_ref[k],
                          preferred_element_type=jnp.float32)
    h2 = jnp.maximum(h2 + b2_ref[...], 0.0).astype(jnp.bfloat16)    # (L2*B_T, CH)

    # ---- merged dueling heads, first layer ---------------------------------
    # Accumulate L2 matmuls of (B_T, CH) x (CH, 2H); add the bias once.
    hid = jnp.dot(h2[0:B_T, :], wh1_ref[0],
                  preferred_element_type=jnp.float32)
    for l in range(1, L2):
        hid = hid + jnp.dot(h2[l * B_T:(l + 1) * B_T, :], wh1_ref[l],
                            preferred_element_type=jnp.float32)
    hid = jnp.maximum(hid + bh1_ref[...], 0.0).astype(jnp.bfloat16)  # (B_T, 2H)

    # ---- merged second layer, lane-padded to 128 ---------------------------
    # lane 0 = value, lanes 1..A = advantages, lane A+1 = sum of advantages.
    out = jnp.dot(hid, wh2_ref[...],
                  preferred_element_type=jnp.float32) + bh2_ref[...]  # (B_T,128)
    val = out[:, 0:1]
    adv_mean = out[:, actions_n + 1:actions_n + 2] * (1.0 / actions_n)
    # Lanes 1..A of (out + val - adv_mean) hold the Q values; other lanes are
    # sliced off in the wrapper.  Full-width store keeps the writeback lane-dense.
    out_ref[...] = (out + val - adv_mean).astype(out_ref.dtype)


# ---------------------------------------------------------------------------
# Wrapper: layout plumbing + single pallas_call.
# ---------------------------------------------------------------------------
def _round_up(v, m):
    return ((v + m - 1) // m) * m


def dqn_conv1d_forward(x, params):
    (w1, b1, w2, b2, wv1, bv1, wv2, bv2, wa1, ba1, wa2, ba2) = params
    N, C, L = x.shape
    CH, _, K = w1.shape                    # (128, C, 5)
    H = wv1.shape[0]                       # 512
    A = wa2.shape[0]
    L1 = L - K + 1
    L2 = L1 - K + 1
    assert L2 >= 1 and A + 2 <= OUTW

    # ---- batch tiling ------------------------------------------------------
    B_T = min(256, _round_up(max(N, 1), 8))   # multiple of 8 (sublane tile)
    N_pad = _round_up(N, B_T)
    G = N_pad // B_T

    # ---- conv weights: (Cout, Cin, K) -> rows k*Cin + cin ------------------
    w1r = jnp.transpose(w1, (2, 1, 0)).reshape(K * C, CH).astype(jnp.bfloat16)
    w2r = jnp.transpose(w2, (2, 1, 0)).astype(jnp.bfloat16)       # (K, CH, CH)
    b1r = b1.reshape(1, CH)                                        # f32
    b2r = b2.reshape(1, CH)

    # ---- head first layers: torch flatten order is c*L2 + l ---------------
    def fc1_to_lcj(w):                        # (Hout, CH*L2) -> (L2, CH, Hout)
        return jnp.transpose(w.reshape(-1, CH, L2), (2, 1, 0))

    wh1 = jnp.concatenate([fc1_to_lcj(wv1), fc1_to_lcj(wa1)],
                          axis=2).astype(jnp.bfloat16)             # (L2, CH, 2H)
    bh1 = jnp.concatenate([bv1, ba1]).reshape(1, 2 * H)            # f32

    # ---- head second layers merged + lane-padded ---------------------------
    # col 0 = value, cols 1..A = advantages, col A+1 = sum of advantage cols.
    wh2 = jnp.zeros((2 * H, OUTW), jnp.float32)
    wh2 = wh2.at[:H, 0:1].set(wv2.T)
    wh2 = wh2.at[H:, 1:1 + A].set(wa2.T)
    wh2 = wh2.at[H:, 1 + A:2 + A].set(jnp.sum(wa2.T, axis=1, keepdims=True))
    wh2 = wh2.astype(jnp.bfloat16)
    bh2 = jnp.zeros((1, OUTW), jnp.float32)
    bh2 = bh2.at[0, 0].set(bv2[0])
    bh2 = bh2.at[0, 1:1 + A].set(ba2)
    bh2 = bh2.at[0, 1 + A].set(jnp.sum(ba2))

    # ---- input: conv1 im2col, rows ordered (position, sample) --------------
    xT = jnp.transpose(x, (2, 0, 1))                               # (L, N, C)
    xw = jnp.concatenate([xT[k:k + L1] for k in range(K)], axis=2)  # (L1,N,K*C)
    xw = jnp.pad(xw, ((0, 0), (0, N_pad - N), (0, 0)))
    xw = (xw.reshape(L1, G, B_T, K * C)
            .transpose(1, 0, 2, 3)
            .reshape(G, L1 * B_T, K * C)
            .astype(jnp.bfloat16))                                  # per-tile slab

    out = pl.pallas_call(
        functools.partial(dqn_kernel, A),
        out_shape=jax.ShapeDtypeStruct((N_pad, OUTW), jnp.float32),
        grid=(G,),
        in_specs=[
            pl.BlockSpec((1, L1 * B_T, K * C), lambda n: (n, 0, 0)),  # per-tile x
            pl.BlockSpec((K * C, CH), lambda n: (0, 0)),              # resident
            pl.BlockSpec((1, CH), lambda n: (0, 0)),
            pl.BlockSpec((K, CH, CH), lambda n: (0, 0, 0)),
            pl.BlockSpec((1, CH), lambda n: (0, 0)),
            pl.BlockSpec((L2, CH, 2 * H), lambda n: (0, 0, 0)),
            pl.BlockSpec((1, 2 * H), lambda n: (0, 0)),
            pl.BlockSpec((2 * H, OUTW), lambda n: (0, 0)),
            pl.BlockSpec((1, OUTW), lambda n: (0, 0)),
        ],
        out_specs=pl.BlockSpec((B_T, OUTW), lambda n: (n, 0)),
        compiler_params=pltpu.CompilerParams(
            dimension_semantics=("parallel",)),
    )(xw, w1r, b1r, w2r, b2r, wh1, bh1, wh2, bh2)

    # Q values live in lanes [1, 1+A) of the lane-dense output block.
    return out[:N, 1:1 + A]


# ---------------------------------------------------------------------------
# Deterministic parameter init (PyTorch-style uniform(+-1/sqrt(fan_in)) shapes)
# ---------------------------------------------------------------------------
def init_params(key, shape, actions_n):
    C, L = shape
    CH, K, H = 128, 5, 512
    L2 = L - 2 * (K - 1)
    out_size = CH * L2
    keys = jax.random.split(key, 12)

    def u(k, shp, fan_in):
        bound = 1.0 / math.sqrt(fan_in)
        return jax.random.uniform(k, shp, jnp.float32, -bound, bound)

    w1 = u(keys[0], (CH, C, K), C * K);        b1 = u(keys[1], (CH,), C * K)
    w2 = u(keys[2], (CH, CH, K), CH * K);      b2 = u(keys[3], (CH,), CH * K)
    wv1 = u(keys[4], (H, out_size), out_size); bv1 = u(keys[5], (H,), out_size)
    wv2 = u(keys[6], (1, H), H);               bv2 = u(keys[7], (1,), H)
    wa1 = u(keys[8], (H, out_size), out_size); ba1 = u(keys[9], (H,), out_size)
    wa2 = u(keys[10], (actions_n, H), H);      ba2 = u(keys[11], (actions_n,), H)
    return (w1, b1, w2, b2, wv1, bv1, wv2, bv2, wa1, ba1, wa2, ba2)


# ---------------------------------------------------------------------------
# Pure-JAX reference (correctness check only)
# ---------------------------------------------------------------------------
def reference(x, params):
    (w1, b1, w2, b2, wv1, bv1, wv2, bv2, wa1, ba1, wa2, ba2) = params
    hp = jax.lax.Precision.HIGHEST

    def conv1d(xx, w, b):
        K = w.shape[2]
        Lout = xx.shape[2] - K + 1
        out = jnp.zeros((xx.shape[0], w.shape[0], Lout), jnp.float32)
        for k in range(K):
            out = out + jnp.einsum('ncl,oc->nol', xx[:, :, k:k + Lout],
                                   w[:, :, k], precision=hp)
        return out + b[None, :, None]

    h = jax.nn.relu(conv1d(x, w1, b1))
    h = jax.nn.relu(conv1d(h, w2, b2))
    flat = h.reshape(x.shape[0], -1)
    vh = jax.nn.relu(jnp.dot(flat, wv1.T, precision=hp) + bv1)
    val = jnp.dot(vh, wv2.T, precision=hp) + bv2
    ah = jax.nn.relu(jnp.dot(flat, wa1.T, precision=hp) + ba1)
    adv = jnp.dot(ah, wa2.T, precision=hp) + ba2
    return val + (adv - adv.mean(axis=1, keepdims=True))


if __name__ == "__main__":
    shape = (4, 16)        # (input channels, bar-sequence length)
    actions_n = 3
    N = 2

    key = jax.random.PRNGKey(0)
    pkey, xkey = jax.random.split(key)
    params = init_params(pkey, shape, actions_n)
    x = jax.random.normal(xkey, (N,) + shape, dtype=jnp.float32)

    q = dqn_conv1d_forward(x, params)
    q = jax.block_until_ready(q)

    q_ref = reference(x, params)
    assert q.shape == (N, actions_n), q.shape
    if not jnp.allclose(q, q_ref, rtol=2e-2, atol=2e-2):
        raise AssertionError(f"mismatch:\n{q}\nvs\n{q_ref}")
    print("KERNEL_OK")
</pallas_src>

<mosaic_0001>
module attributes {stable_mosaic.version = 11 : i64} {
  func.func @dqn_kernel(%arg0: i32, %arg1: memref<1x96x20xbf16, #tpu.memory_space<vmem>>, %arg2: memref<20x128xbf16, #tpu.memory_space<vmem>>, %arg3: memref<1x128xf32, #tpu.memory_space<vmem>>, %arg4: memref<5x128x128xbf16, #tpu.memory_space<vmem>>, %arg5: memref<1x128xf32, #tpu.memory_space<vmem>>, %arg6: memref<8x128x1024xbf16, #tpu.memory_space<vmem>>, %arg7: memref<1x1024xf32, #tpu.memory_space<vmem>>, %arg8: memref<1024x128xbf16, #tpu.memory_space<vmem>>, %arg9: memref<1x128xf32, #tpu.memory_space<vmem>>, %arg10: memref<8x128xf32, #tpu.memory_space<vmem>>) attributes {dimension_semantics = [#tpu.dimension_semantics<parallel>], iteration_bounds = array<i64: 1>, scalar_prefetch = 0 : i64, scratch_operands = 0 : i64, tpu.core_type = #tpu.core_type<tc>, window_params = [{transform_indices = @transform_0, window_bounds = array<i64: 1, 96, 20>}, {pipeline_mode = #tpu.pipeline_mode<synchronous>, transform_indices = @transform_1, window_bounds = array<i64: 20, 128>}, {pipeline_mode = #tpu.pipeline_mode<synchronous>, transform_indices = @transform_2, window_bounds = array<i64: 1, 128>}, {pipeline_mode = #tpu.pipeline_mode<synchronous>, transform_indices = @transform_3, window_bounds = array<i64: 5, 128, 128>}, {pipeline_mode = #tpu.pipeline_mode<synchronous>, transform_indices = @transform_4, window_bounds = array<i64: 1, 128>}, {pipeline_mode = #tpu.pipeline_mode<synchronous>, transform_indices = @transform_5, window_bounds = array<i64: 8, 128, 1024>}, {pipeline_mode = #tpu.pipeline_mode<synchronous>, transform_indices = @transform_6, window_bounds = array<i64: 1, 1024>}, {pipeline_mode = #tpu.pipeline_mode<synchronous>, transform_indices = @transform_7, window_bounds = array<i64: 1024, 128>}, {pipeline_mode = #tpu.pipeline_mode<synchronous>, transform_indices = @transform_8, window_bounds = array<i64: 1, 128>}, {transform_indices = @transform_9, window_bounds = array<i64: 8, 128>}]} {
    %c0 = arith.constant 0 : index
    %c0_0 = arith.constant 0 : index
    %c0_1 = arith.constant 0 : index
    %0 = vector.load %arg1[%c0, %c0_0, %c0_1] : memref<1x96x20xbf16, #tpu.memory_space<vmem>>, vector<1x96x20xbf16>
    %1 = vector.shape_cast %0 : vector<1x96x20xbf16> to vector<96x20xbf16>
    %c0_2 = arith.constant 0 : index
    %c0_3 = arith.constant 0 : index
    %2 = vector.load %arg2[%c0_2, %c0_3] : memref<20x128xbf16, #tpu.memory_space<vmem>>, vector<20x128xbf16>
    %cst = arith.constant dense<0.000000e+00> : vector<96x128xf32>
    %3 = tpu.matmul %1, %2, %cst {dimension_numbers = #tpu.dot_dimension_numbers<[1], [0], [0], [1], [0, 0, 1, 1], [], []>} : vector<96x20xbf16>, vector<20x128xbf16>, vector<96x128xf32> -> vector<96x128xf32>
    %c0_4 = arith.constant 0 : index
    %c0_5 = arith.constant 0 : index
    %4 = vector.load %arg3[%c0_4, %c0_5] : memref<1x128xf32, #tpu.memory_space<vmem>>, vector<1x128xf32>
    %5 = vector.broadcast %4 : vector<1x128xf32> to vector<96x128xf32>
    %6 = arith.addf %3, %5 : vector<96x128xf32>
    %cst_6 = arith.constant 0.000000e+00 : f32
    %7 = vector.broadcast %cst_6 : f32 to vector<96x128xf32>
    %8 = arith.maximumf %6, %7 : vector<96x128xf32>
    %9 = arith.truncf %8 : vector<96x128xf32> to vector<96x128xbf16>
    %10 = vector.extract_strided_slice %9 {offsets = [0, 0], sizes = [64, 128], strides = [1, 1]} : vector<96x128xbf16> to vector<64x128xbf16>
    %c0_7 = arith.constant 0 : index
    %c0_8 = arith.constant 0 : index
    %c0_9 = arith.constant 0 : index
    %11 = vector.load %arg4[%c0_7, %c0_8, %c0_9] : memref<5x128x128xbf16, #tpu.memory_space<vmem>>, vector<1x128x128xbf16>
    %12 = vector.shape_cast %11 : vector<1x128x128xbf16> to vector<128x128xbf16>
    %cst_10 = arith.constant dense<0.000000e+00> : vector<64x128xf32>
    %13 = tpu.matmul %10, %12, %cst_10 {dimension_numbers = #tpu.dot_dimension_numbers<[1], [0], [0], [1], [0, 0, 1, 1], [], []>} : vector<64x128xbf16>, vector<128x128xbf16>, vector<64x128xf32> -> vector<64x128xf32>
    %14 = vector.extract_strided_slice %9 {offsets = [8, 0], sizes = [64, 128], strides = [1, 1]} : vector<96x128xbf16> to vector<64x128xbf16>
    %c1 = arith.constant 1 : index
    %c0_11 = arith.constant 0 : index
    %c0_12 = arith.constant 0 : index
    %15 = vector.load %arg4[%c1, %c0_11, %c0_12] : memref<5x128x128xbf16, #tpu.memory_space<vmem>>, vector<1x128x128xbf16>
    %16 = vector.shape_cast %15 : vector<1x128x128xbf16> to vector<128x128xbf16>
    %cst_13 = arith.constant dense<0.000000e+00> : vector<64x128xf32>
    %17 = tpu.matmul %14, %16, %cst_13 {dimension_numbers = #tpu.dot_dimension_numbers<[1], [0], [0], [1], [0, 0, 1, 1], [], []>} : vector<64x128xbf16>, vector<128x128xbf16>, vector<64x128xf32> -> vector<64x128xf32>
    %18 = arith.addf %13, %17 : vector<64x128xf32>
    %19 = vector.extract_strided_slice %9 {offsets = [16, 0], sizes = [64, 128], strides = [1, 1]} : vector<96x128xbf16> to vector<64x128xbf16>
    %c2 = arith.constant 2 : index
    %c0_14 = arith.constant 0 : index
    %c0_15 = arith.constant 0 : index
    %20 = vector.load %arg4[%c2, %c0_14, %c0_15] : memref<5x128x128xbf16, #tpu.memory_space<vmem>>, vector<1x128x128xbf16>
    %21 = vector.shape_cast %20 : vector<1x128x128xbf16> to vector<128x128xbf16>
    %cst_16 = arith.constant dense<0.000000e+00> : vector<64x128xf32>
    %22 = tpu.matmul %19, %21, %cst_16 {dimension_numbers = #tpu.dot_dimension_numbers<[1], [0], [0], [1], [0, 0, 1, 1], [], []>} : vector<64x128xbf16>, vector<128x128xbf16>, vector<64x128xf32> -> vector<64x128xf32>
    %23 = arith.addf %18, %22 : vector<64x128xf32>
    %24 = vector.extract_strided_slice %9 {offsets = [24, 0], sizes = [64, 128], strides = [1, 1]} : vector<96x128xbf16> to vector<64x128xbf16>
    %c3 = arith.constant 3 : index
    %c0_17 = arith.constant 0 : index
    %c0_18 = arith.constant 0 : index
    %25 = vector.load %arg4[%c3, %c0_17, %c0_18] : memref<5x128x128xbf16, #tpu.memory_space<vmem>>, vector<1x128x128xbf16>
    %26 = vector.shape_cast %25 : vector<1x128x128xbf16> to vector<128x128xbf16>
    %cst_19 = arith.constant dense<0.000000e+00> : vector<64x128xf32>
    %27 = tpu.matmul %24, %26, %cst_19 {dimension_numbers = #tpu.dot_dimension_numbers<[1], [0], [0], [1], [0, 0, 1, 1], [], []>} : vector<64x128xbf16>, vector<128x128xbf16>, vector<64x128xf32> -> vector<64x128xf32>
    %28 = arith.addf %23, %27 : vector<64x128xf32>
    %29 = vector.extract_strided_slice %9 {offsets = [32, 0], sizes = [64, 128], strides = [1, 1]} : vector<96x128xbf16> to vector<64x128xbf16>
    %c4 = arith.constant 4 : index
    %c0_20 = arith.constant 0 : index
    %c0_21 = arith.constant 0 : index
    %30 = vector.load %arg4[%c4, %c0_20, %c0_21] : memref<5x128x128xbf16, #tpu.memory_space<vmem>>, vector<1x128x128xbf16>
    %31 = vector.shape_cast %30 : vector<1x128x128xbf16> to vector<128x128xbf16>
    %cst_22 = arith.constant dense<0.000000e+00> : vector<64x128xf32>
    %32 = tpu.matmul %29, %31, %cst_22 {dimension_numbers = #tpu.dot_dimension_numbers<[1], [0], [0], [1], [0, 0, 1, 1], [], []>} : vector<64x128xbf16>, vector<128x128xbf16>, vector<64x128xf32> -> vector<64x128xf32>
    %33 = arith.addf %28, %32 : vector<64x128xf32>
    %c0_23 = arith.constant 0 : index
    %c0_24 = arith.constant 0 : index
    %34 = vector.load %arg5[%c0_23, %c0_24] : memref<1x128xf32, #tpu.memory_space<vmem>>, vector<1x128xf32>
    %35 = vector.broadcast %34 : vector<1x128xf32> to vector<64x128xf32>
    %36 = arith.addf %33, %35 : vector<64x128xf32>
    %cst_25 = arith.constant 0.000000e+00 : f32
    %37 = vector.broadcast %cst_25 : f32 to vector<64x128xf32>
    %38 = arith.maximumf %36, %37 : vector<64x128xf32>
    %39 = arith.truncf %38 : vector<64x128xf32> to vector<64x128xbf16>
    %40 = vector.extract_strided_slice %39 {offsets = [0, 0], sizes = [8, 128], strides = [1, 1]} : vector<64x128xbf16> to vector<8x128xbf16>
    %c0_26 = arith.constant 0 : index
    %c0_27 = arith.constant 0 : index
    %c0_28 = arith.constant 0 : index
    %41 = vector.load %arg6[%c0_26, %c0_27, %c0_28] : memref<8x128x1024xbf16, #tpu.memory_space<vmem>>, vector<1x128x1024xbf16>
    %42 = vector.shape_cast %41 : vector<1x128x1024xbf16> to vector<128x1024xbf16>
    %cst_29 = arith.constant dense<0.000000e+00> : vector<8x1024xf32>
    %43 = tpu.matmul %40, %42, %cst_29 {dimension_numbers = #tpu.dot_dimension_numbers<[1], [0], [0], [1], [0, 0, 1, 1], [], []>} : vector<8x128xbf16>, vector<128x1024xbf16>, vector<8x1024xf32> -> vector<8x1024xf32>
    %44 = vector.extract_strided_slice %39 {offsets = [8, 0], sizes = [8, 128], strides = [1, 1]} : vector<64x128xbf16> to vector<8x128xbf16>
    %c1_30 = arith.constant 1 : index
    %c0_31 = arith.constant 0 : index
    %c0_32 = arith.constant 0 : index
    %45 = vector.load %arg6[%c1_30, %c0_31, %c0_32] : memref<8x128x1024xbf16, #tpu.memory_space<vmem>>, vector<1x128x1024xbf16>
    %46 = vector.shape_cast %45 : vector<1x128x1024xbf16> to vector<128x1024xbf16>
    %cst_33 = arith.constant dense<0.000000e+00> : vector<8x1024xf32>
    %47 = tpu.matmul %44, %46, %cst_33 {dimension_numbers = #tpu.dot_dimension_numbers<[1], [0], [0], [1], [0, 0, 1, 1], [], []>} : vector<8x128xbf16>, vector<128x1024xbf16>, vector<8x1024xf32> -> vector<8x1024xf32>
    %48 = arith.addf %43, %47 : vector<8x1024xf32>
    %49 = vector.extract_strided_slice %39 {offsets = [16, 0], sizes = [8, 128], strides = [1, 1]} : vector<64x128xbf16> to vector<8x128xbf16>
    %c2_34 = arith.constant 2 : index
    %c0_35 = arith.constant 0 : index
    %c0_36 = arith.constant 0 : index
    %50 = vector.load %arg6[%c2_34, %c0_35, %c0_36] : memref<8x128x1024xbf16, #tpu.memory_space<vmem>>, vector<1x128x1024xbf16>
    %51 = vector.shape_cast %50 : vector<1x128x1024xbf16> to vector<128x1024xbf16>
    %cst_37 = arith.constant dense<0.000000e+00> : vector<8x1024xf32>
    %52 = tpu.matmul %49, %51, %cst_37 {dimension_numbers = #tpu.dot_dimension_numbers<[1], [0], [0], [1], [0, 0, 1, 1], [], []>} : vector<8x128xbf16>, vector<128x1024xbf16>, vector<8x1024xf32> -> vector<8x1024xf32>
    %53 = arith.addf %48, %52 : vector<8x1024xf32>
    %54 = vector.extract_strided_slice %39 {offsets = [24, 0], sizes = [8, 128], strides = [1, 1]} : vector<64x128xbf16> to vector<8x128xbf16>
    %c3_38 = arith.constant 3 : index
    %c0_39 = arith.constant 0 : index
    %c0_40 = arith.constant 0 : index
    %55 = vector.load %arg6[%c3_38, %c0_39, %c0_40] : memref<8x128x1024xbf16, #tpu.memory_space<vmem>>, vector<1x128x1024xbf16>
    %56 = vector.shape_cast %55 : vector<1x128x1024xbf16> to vector<128x1024xbf16>
    %cst_41 = arith.constant dense<0.000000e+00> : vector<8x1024xf32>
    %57 = tpu.matmul %54, %56, %cst_41 {dimension_numbers = #tpu.dot_dimension_numbers<[1], [0], [0], [1], [0, 0, 1, 1], [], []>} : vector<8x128xbf16>, vector<128x1024xbf16>, vector<8x1024xf32> -> vector<8x1024xf32>
    %58 = arith.addf %53, %57 : vector<8x1024xf32>
    %59 = vector.extract_strided_slice %39 {offsets = [32, 0], sizes = [8, 128], strides = [1, 1]} : vector<64x128xbf16> to vector<8x128xbf16>
    %c4_42 = arith.constant 4 : index
    %c0_43 = arith.constant 0 : index
    %c0_44 = arith.constant 0 : index
    %60 = vector.load %arg6[%c4_42, %c0_43, %c0_44] : memref<8x128x1024xbf16, #tpu.memory_space<vmem>>, vector<1x128x1024xbf16>
    %61 = vector.shape_cast %60 : vector<1x128x1024xbf16> to vector<128x1024xbf16>
    %cst_45 = arith.constant dense<0.000000e+00> : vector<8x1024xf32>
    %62 = tpu.matmul %59, %61, %cst_45 {dimension_numbers = #tpu.dot_dimension_numbers<[1], [0], [0], [1], [0, 0, 1, 1], [], []>} : vector<8x128xbf16>, vector<128x1024xbf16>, vector<8x1024xf32> -> vector<8x1024xf32>
    %63 = arith.addf %58, %62 : vector<8x1024xf32>
    %64 = vector.extract_strided_slice %39 {offsets = [40, 0], sizes = [8, 128], strides = [1, 1]} : vector<64x128xbf16> to vector<8x128xbf16>
    %c5 = arith.constant 5 : index
    %c0_46 = arith.constant 0 : index
    %c0_47 = arith.constant 0 : index
    %65 = vector.load %arg6[%c5, %c0_46, %c0_47] : memref<8x128x1024xbf16, #tpu.memory_space<vmem>>, vector<1x128x1024xbf16>
    %66 = vector.shape_cast %65 : vector<1x128x1024xbf16> to vector<128x1024xbf16>
    %cst_48 = arith.constant dense<0.000000e+00> : vector<8x1024xf32>
    %67 = tpu.matmul %64, %66, %cst_48 {dimension_numbers = #tpu.dot_dimension_numbers<[1], [0], [0], [1], [0, 0, 1, 1], [], []>} : vector<8x128xbf16>, vector<128x1024xbf16>, vector<8x1024xf32> -> vector<8x1024xf32>
    %68 = arith.addf %63, %67 : vector<8x1024xf32>
    %69 = vector.extract_strided_slice %39 {offsets = [48, 0], sizes = [8, 128], strides = [1, 1]} : vector<64x128xbf16> to vector<8x128xbf16>
    %c6 = arith.constant 6 : index
    %c0_49 = arith.constant 0 : index
    %c0_50 = arith.constant 0 : index
    %70 = vector.load %arg6[%c6, %c0_49, %c0_50] : memref<8x128x1024xbf16, #tpu.memory_space<vmem>>, vector<1x128x1024xbf16>
    %71 = vector.shape_cast %70 : vector<1x128x1024xbf16> to vector<128x1024xbf16>
    %cst_51 = arith.constant dense<0.000000e+00> : vector<8x1024xf32>
    %72 = tpu.matmul %69, %71, %cst_51 {dimension_numbers = #tpu.dot_dimension_numbers<[1], [0], [0], [1], [0, 0, 1, 1], [], []>} : vector<8x128xbf16>, vector<128x1024xbf16>, vector<8x1024xf32> -> vector<8x1024xf32>
    %73 = arith.addf %68, %72 : vector<8x1024xf32>
    %74 = vector.extract_strided_slice %39 {offsets = [56, 0], sizes = [8, 128], strides = [1, 1]} : vector<64x128xbf16> to vector<8x128xbf16>
    %c7 = arith.constant 7 : index
    %c0_52 = arith.constant 0 : index
    %c0_53 = arith.constant 0 : index
    %75 = vector.load %arg6[%c7, %c0_52, %c0_53] : memref<8x128x1024xbf16, #tpu.memory_space<vmem>>, vector<1x128x1024xbf16>
    %76 = vector.shape_cast %75 : vector<1x128x1024xbf16> to vector<128x1024xbf16>
    %cst_54 = arith.constant dense<0.000000e+00> : vector<8x1024xf32>
    %77 = tpu.matmul %74, %76, %cst_54 {dimension_numbers = #tpu.dot_dimension_numbers<[1], [0], [0], [1], [0, 0, 1, 1], [], []>} : vector<8x128xbf16>, vector<128x1024xbf16>, vector<8x1024xf32> -> vector<8x1024xf32>
    %78 = arith.addf %73, %77 : vector<8x1024xf32>
    %c0_55 = arith.constant 0 : index
    %c0_56 = arith.constant 0 : index
    %79 = vector.load %arg7[%c0_55, %c0_56] : memref<1x1024xf32, #tpu.memory_space<vmem>>, vector<1x1024xf32>
    %80 = vector.broadcast %79 : vector<1x1024xf32> to vector<8x1024xf32>
    %81 = arith.addf %78, %80 : vector<8x1024xf32>
    %cst_57 = arith.constant 0.000000e+00 : f32
    %82 = vector.broadcast %cst_57 : f32 to vector<8x1024xf32>
    %83 = arith.maximumf %81, %82 : vector<8x1024xf32>
    %84 = arith.truncf %83 : vector<8x1024xf32> to vector<8x1024xbf16>
    %c0_58 = arith.constant 0 : index
    %c0_59 = arith.constant 0 : index
    %85 = vector.load %arg8[%c0_58, %c0_59] : memref<1024x128xbf16, #tpu.memory_space<vmem>>, vector<1024x128xbf16>
    %cst_60 = arith.constant dense<0.000000e+00> : vector<8x128xf32>
    %86 = tpu.matmul %84, %85, %cst_60 {dimension_numbers = #tpu.dot_dimension_numbers<[1], [0], [0], [1], [0, 0, 1, 1], [], []>} : vector<8x1024xbf16>, vector<1024x128xbf16>, vector<8x128xf32> -> vector<8x128xf32>
    %c0_61 = arith.constant 0 : index
    %c0_62 = arith.constant 0 : index
    %87 = vector.load %arg9[%c0_61, %c0_62] : memref<1x128xf32, #tpu.memory_space<vmem>>, vector<1x128xf32>
    %88 = vector.broadcast %87 : vector<1x128xf32> to vector<8x128xf32>
    %89 = arith.addf %86, %88 : vector<8x128xf32>
    %90 = vector.extract_strided_slice %89 {offsets = [0, 0], sizes = [8, 1], strides = [1, 1]} : vector<8x128xf32> to vector<8x1xf32>
    %91 = vector.extract_strided_slice %89 {offsets = [0, 4], sizes = [8, 1], strides = [1, 1]} : vector<8x128xf32> to vector<8x1xf32>
    %cst_63 = arith.constant 0.333333343 : f32
    %92 = vector.broadcast %cst_63 : f32 to vector<8x1xf32>
    %93 = arith.mulf %91, %92 : vector<8x1xf32>
    %94 = vector.broadcast %90 : vector<8x1xf32> to vector<8x128xf32>
    %95 = arith.addf %89, %94 : vector<8x128xf32>
    %96 = vector.broadcast %93 : vector<8x1xf32> to vector<8x128xf32>
    %97 = arith.subf %95, %96 : vector<8x128xf32>
    %c0_64 = arith.constant 0 : index
    %c0_65 = arith.constant 0 : index
    %98 = vector.load %arg10[%c0_64, %c0_65] : memref<8x128xf32, #tpu.memory_space<vmem>>, vector<8x128xf32>
    tpu.vector_store %arg10[%c0_64, %c0_65], %97 {strides = array<i32>} : memref<8x128xf32, #tpu.memory_space<vmem>>, vector<8x128xf32>,
    return
  }
  func.func @transform_0(%arg0: i32) -> (i32, i32, i32) {
    %c0_i32 = arith.constant 0 : i32
    %c0_i32_0 = arith.constant 0 : i32
    %c0_i32_1 = arith.constant 0 : i32
    return %arg0, %c0_i32, %c0_i32_0 : i32, i32, i32
  }
  func.func @transform_1(%arg0: i32) -> (i32, i32) {
    %c0_i32 = arith.constant 0 : i32
    %c0_i32_0 = arith.constant 0 : i32
    %c0_i32_1 = arith.constant 0 : i32
    return %c0_i32, %c0_i32_0 : i32, i32
  }
  func.func @transform_2(%arg0: i32) -> (i32, i32) {
    %c0_i32 = arith.constant 0 : i32
    %c0_i32_0 = arith.constant 0 : i32
    %c0_i32_1 = arith.constant 0 : i32
    return %c0_i32, %c0_i32_0 : i32, i32
  }
  func.func @transform_3(%arg0: i32) -> (i32, i32, i32) {
    %c0_i32 = arith.constant 0 : i32
    %c0_i32_0 = arith.constant 0 : i32
    %c0_i32_1 = arith.constant 0 : i32
    %c0_i32_2 = arith.constant 0 : i32
    return %c0_i32, %c0_i32_0, %c0_i32_1 : i32, i32, i32
  }
  func.func @transform_4(%arg0: i32) -> (i32, i32) {
    %c0_i32 = arith.constant 0 : i32
    %c0_i32_0 = arith.constant 0 : i32
    %c0_i32_1 = arith.constant 0 : i32
    return %c0_i32, %c0_i32_0 : i32, i32
  }
  func.func @transform_5(%arg0: i32) -> (i32, i32, i32) {
    %c0_i32 = arith.constant 0 : i32
    %c0_i32_0 = arith.constant 0 : i32
    %c0_i32_1 = arith.constant 0 : i32
    %c0_i32_2 = arith.constant 0 : i32
    return %c0_i32, %c0_i32_0, %c0_i32_1 : i32, i32, i32
  }
  func.func @transform_6(%arg0: i32) -> (i32, i32) {
    %c0_i32 = arith.constant 0 : i32
    %c0_i32_0 = arith.constant 0 : i32
    %c0_i32_1 = arith.constant 0 : i32
    return %c0_i32, %c0_i32_0 : i32, i32
  }
  func.func @transform_7(%arg0: i32) -> (i32, i32) {
    %c0_i32 = arith.constant 0 : i32
    %c0_i32_0 = arith.constant 0 : i32
    %c0_i32_1 = arith.constant 0 : i32
    return %c0_i32, %c0_i32_0 : i32, i32
  }
  func.func @transform_8(%arg0: i32) -> (i32, i32) {
    %c0_i32 = arith.constant 0 : i32
    %c0_i32_0 = arith.constant 0 : i32
    %c0_i32_1 = arith.constant 0 : i32
    return %c0_i32, %c0_i32_0 : i32, i32
  }
  func.func @transform_9(%arg0: i32) -> (i32, i32) {
    %c0_i32 = arith.constant 0 : i32
    %c0_i32_0 = arith.constant 0 : i32
    return %arg0, %c0_i32 : i32, i32
  }
}

</mosaic_0001>

<bundles_post_ra>
// kernel: tpu_custom_call.1
= control target key start
LH: loop header
LB: loop body
LE: loop exit
PB: predicated region body
PF: predicated region fallthrough
CT: control target
= control target key end

     0   :  { %14 = vsyncpa [#allocation3], 0  ;;  %s7958_s0 = inlined_call_operand.vmem [shape: bf16[1,96,20], index: 0, kind: input, shape index: {}]   ;;  %s7959_s1 = inlined_call_operand.hbm [shape: bf16[20,128], index: 1, kind: input, shape index: {}]   ;;  %s7960_s2 = inlined_call_operand.hbm [shape: f32[1,128], index: 2, kind: input, shape index: {}]   ;;  %s7961_s3 = inlined_call_operand.hbm [shape: bf16[5,128,128], index: 3, kind: input, shape index: {}]   ;;  %s7962_s4 = inlined_call_operand.hbm [shape: f32[1,128], index: 4, kind: input, shape index: {}]   ;;  %s7963_s5 = inlined_call_operand.hbm [shape: bf16[8,128,1024], index: 5, kind: input, shape index: {}]   ;;  %s7964_s6 = inlined_call_operand.hbm [shape: f32[1,1024], index: 6, kind: input, shape index: {}]   ;;  %s7965_s7 = inlined_call_operand.hbm [shape: bf16[1024,128], index: 7, kind: input, shape index: {}]   ;;  %s7966_s8 = inlined_call_operand.hbm [shape: f32[1,128], index: 8, kind: input, shape index: {}]   ;;  %s7967_s9 = inlined_call_operand.hbm [shape: f32[8,128], index: 9, kind: output, shape index: {}]  }
   0x1   :  { %15 = vsyncpa [#allocation6], 0 }
   0x2   :  { %16 = vsyncpa [#allocation9], 0 }
   0x3   :  { %17 = vsyncpa [#allocation12], 0 }
   0x4   :  { %18 = vsyncpa [#allocation15], 0 }
   0x5   :  { %19 = vsyncpa [#allocation4], 0  ;;  %s7517_s30 = smov [#allocation5]   ;;  %s7518_s11 = smov [#allocation8]  }
   0x6   :  { %s40_s10 = sshll.u32 %s7517_s30, 4  ;;  %s62_s12 = sshll.u32 %s7518_s11, 4  ;;  %s41_s10 = int_to_ptr.vmem [resolvable:$true] %s40_s10  ;;  %s63_s12 = int_to_ptr.vmem [resolvable:$true] %s62_s12 }
   0x7   :  { %s7333_s13 = scalar_lea.vmem %s41_s10, 16  ;;  %s7337_s14 = scalar_lea.vmem %s41_s10, 32 }
   0x8   :  { %p7334_p0 = scmp.ne.s32.totalorder %s41_s10, %s7333_s13  ;;  %p7338_p1 = scmp.lt.s32.totalorder %s41_s10, %s41_s10 }
   0x9   :  { %p7339_p2 = scmp.lt.s32.totalorder %s7337_s14, %s7333_s13 }
   0xb   :  { %p7340_p3 = por %p7339_p2, %p7338_p1 }
   0xd   :  { %p7341_p4 = pnand %p7340_p3, %p7334_p0 }
   0xf   :  { %7344 = shalt.err (!%p7341_p4)
}
  0x10   :  { %43 = dma.hbm_to_vmem [thread:$0]  %s7960_s2, 16, %s41_s10, [#allocation6]  }
  0x11   :  { %s7353_s17 = scalar_lea.vmem %s63_s12, 16  ;;  %s7357_s18 = scalar_lea.vmem %s63_s12, 32 }
  0x12   :  { %p7354_p5 = scmp.ne.s32.totalorder %s63_s12, %s7353_s17  ;;  %p7358_p6 = scmp.lt.s32.totalorder %s63_s12, %s63_s12 }
  0x13   :  { %p7359_p7 = scmp.lt.s32.totalorder %s7357_s18, %s7353_s17 }
  0x15   :  { %p7360_p8 = por %p7359_p7, %p7358_p6 }
  0x17   :  { %p7361_p9 = pnand %p7360_p8, %p7354_p5 }
  0x19   :  { %7364 = shalt.err (!%p7361_p9)
}
  0x1a   :  { %65 = dma.hbm_to_vmem [thread:$0]  %s7962_s4, 16, %s63_s12, [#allocation9]  }
  0x1b   :  { %s7519_s21 = smov [#allocation11]   ;;  %s7520_s23 = smov [#allocation2]  }
  0x1c   :  { %s84_s22 = sshll.u32 %s7519_s21, 4  ;;  %s27_s24 = sshll.u32 %s7520_s23, 4  ;;  %s85_s22 = int_to_ptr.vmem [resolvable:$true] %s84_s22  ;;  %s28_s24 = int_to_ptr.vmem [resolvable:$true] %s27_s24 }
  0x1d   :  { %s7373_s25 = scalar_lea.vmem %s85_s22, 128  ;;  %p7378_p11 = scmp.lt.s32.totalorder %s85_s22, %s85_s22 }
  0x1e   :  { %p7374_p10 = scmp.ne.s32.totalorder %s85_s22, %s7373_s25  ;;  %p7379_p12 = scmp.lt.s32.totalorder %s7373_s25, %s7373_s25 }
  0x20   :  { %p7380_p13 = por %p7379_p12, %p7378_p11 }
  0x22   :  { %p7381_p0 = pnand %p7380_p13, %p7374_p10 }
  0x24   :  { %7384 = shalt.err (!%p7381_p0)
}
  0x25   :  { %87 = dma.hbm_to_vmem [thread:$0]  %s7964_s6, 128, %s85_s22, [#allocation12]  }
  0x26   :  { %s7393_s27 = scalar_lea.vmem %s28_s24, 192  ;;  %p7398_p2 = scmp.lt.s32.totalorder %s28_s24, %s28_s24 }
  0x27   :  { %p7394_p1 = scmp.ne.s32.totalorder %s28_s24, %s7393_s27  ;;  %p7399_p3 = scmp.lt.s32.totalorder %s7393_s27, %s7393_s27 }
  0x29   :  { %p7400_p4 = por %p7399_p3, %p7398_p2 }
  0x2b   :  { %p7401_p5 = pnand %p7400_p4, %p7394_p1 }
  0x2d   :  { %7404 = shalt.err (!%p7401_p5)
}
  0x2e   :  { %s7521_s4 = smov 64   ;;  %s7522_s28 = smov 4  }
  0x2f   :  { %33 = dma.hbm_to_vmem [thread:$0]  %s7959_s1, 192, %s28_s24, [#allocation3], %s7521_s4, %s7521_s4, %s7522_s28  }
  0x30   :  { %s7523_s10 = smov [#allocation7]   ;;  %s7524_s12 = smov [#allocation10]  }
  0x31   :  { %s49_s11 = sshll.u32 %s7523_s10, 4  ;;  %s71_s6 = sshll.u32 %s7524_s12, 4  ;;  %s50_s11 = int_to_ptr.vmem [resolvable:$true] %s49_s11  ;;  %s72_s6 = int_to_ptr.vmem [resolvable:$true] %s71_s6 }
  0x32   :  { %s7413_s13 = scalar_lea.vmem %s50_s11, 5120  ;;  %p7418_p7 = scmp.lt.s32.totalorder %s50_s11, %s50_s11 }
  0x33   :  { %p7414_p6 = scmp.ne.s32.totalorder %s50_s11, %s7413_s13  ;;  %p7419_p8 = scmp.lt.s32.totalorder %s7413_s13, %s7413_s13 }
  0x35   :  { %p7420_p9 = por %p7419_p8, %p7418_p7 }
  0x37   :  { %p7421_p10 = pnand %p7420_p9, %p7414_p6 }
  0x39   :  { %7424 = shalt.err (!%p7421_p10)
}
  0x3a   :  { %55 = dma.hbm_to_vmem [thread:$0]  %s7961_s3, 5120, %s50_s11, [#allocation6], %s7521_s4, %s7521_s4, %s7522_s28  }
  0x3b   :  { %s7433_s1 = scalar_lea.vmem %s72_s6, 65536  ;;  %p7438_p12 = scmp.lt.s32.totalorder %s72_s6, %s72_s6 }
  0x3c   :  { %p7434_p11 = scmp.ne.s32.totalorder %s72_s6, %s7433_s1  ;;  %p7439_p13 = scmp.lt.s32.totalorder %s7433_s1, %s7433_s1 }
  0x3e   :  { %p7440_p0 = por %p7439_p13, %p7438_p12 }
  0x40   :  { %p7441_p1 = pnand %p7440_p0, %p7434_p11 }
  0x42   :  { %7444 = shalt.err (!%p7441_p1)
}
  0x43   :  { %s7525_s16 = smov 512   ;;  %s7526_s17 = smov 32  }
  0x44   :  { %77 = dma.hbm_to_vmem [thread:$0]  %s7963_s5, 65536, %s72_s6, [#allocation9], %s7525_s16, %s7525_s16, %s7526_s17  }
  0x45   :  { %s7527_s20 = smov [#allocation13]   ;;  %s7528_s22 = smov [#allocation14]  }
  0x46   :  { %s93_s21 = sshll.u32 %s7527_s20, 4  ;;  %s106_s23 = sshll.u32 %s7528_s22, 4  ;;  %s94_s21 = int_to_ptr.vmem [resolvable:$true] %s93_s21  ;;  %s107_s23 = int_to_ptr.vmem [resolvable:$true] %s106_s23 }
  0x47   :  { %s7453_s3 = scalar_lea.vmem %s94_s21, 8192  ;;  %p7458_p3 = scmp.lt.s32.totalorder %s94_s21, %s94_s21 }
  0x48   :  { %p7454_p2 = scmp.ne.s32.totalorder %s94_s21, %s7453_s3  ;;  %p7459_p4 = scmp.lt.s32.totalorder %s7453_s3, %s7453_s3 }
  0x4a   :  { %p7460_p5 = por %p7459_p4, %p7458_p3 }
  0x4c   :  { %p7461_p6 = pnand %p7460_p5, %p7454_p2 }
  0x4e   :  { %7464 = shalt.err (!%p7461_p6)
}
  0x4f   :  { %99 = dma.hbm_to_vmem [thread:$0]  %s7965_s7, 8192, %s94_s21, [#allocation12], %s7521_s4, %s7521_s4, %s7522_s28  }
  0x50   :  { %s7473_s5 = scalar_lea.vmem %s107_s23, 16  ;;  %s7477_s2 = scalar_lea.vmem %s107_s23, 32 }
  0x51   :  { %p7474_p7 = scmp.ne.s32.totalorder %s107_s23, %s7473_s5  ;;  %p7478_p8 = scmp.lt.s32.totalorder %s107_s23, %s107_s23 }
  0x52   :  { %p7479_p9 = scmp.lt.s32.totalorder %s7477_s2, %s7473_s5 }
  0x54   :  { %p7480_p10 = por %p7479_p9, %p7478_p8 }
  0x56   :  { %p7481_p11 = pnand %p7480_p10, %p7474_p7 }
  0x58   :  { %7484 = shalt.err (!%p7481_p11)
}
  0x59   :  { %109 = dma.hbm_to_vmem [thread:$0]  %s7966_s8, 16, %s107_s23, [#allocation15]  }
  0x5a   :  { %7505 = dma.done.wait [#allocation3], 192  }
  0x5b   :  { %7506 = vsyncadd [#allocation3], 4294967104 }
  0x5c   :  { %7507 = dma.done.wait [#allocation6], 5136  }
  0x5d   :  { %7508 = vsyncadd [#allocation6], 4294962160 }
  0x5e   :  { %7509 = dma.done.wait [#allocation9], 65552  }
  0x5f   :  { %7510 = vsyncadd [#allocation9], 4294901744 }
  0x60   :  { %7511 = dma.done.wait [#allocation12], 8320  }
  0x61   :  { %7512 = vsyncadd [#allocation12], 4294958976 }
  0x62   :  { %7513 = dma.done.wait [#allocation15], 16  }
  0x63   :  { %7514 = vsyncadd [#allocation15], 4294967280  ;;  %vm215_vm0 = vcmask 1041408   ;;  %vm196_vm1 = vcmask 162816   ;;  %v7214_v1 = vld [vmem:[#allocation2] sm:$0xff]   ;;  %v7216_v4 = vld [vmem:[%s7958_s0 + $0x8] sm:$0xff]  }
  0x64   :  { %v7213_v0 = vld [vmem:[#allocation2 + $0x8] ss:$0 sps:$4 sm:$0x33]   ;;  %v7215_v3 = vld [vmem:[%s7958_s0] sm:$0xff]   ;;  %v7217_v5 = vld [vmem:[%s7958_s0 + $0x10] sm:$0xff]   ;;  %vm356_vm2 = vcmask 1043456  }
  0x65   :  { %7195 = vmatprep.subr.msk.bf16.mxu0 %vm215_vm0, %v7213_v0  ;;  %v217_v2 = vsel %vm215_vm0, %v7213_v0, 0  ;;  %7063 = vmatprep.mubr.msk.bf16.mxu0 %vm196_vm1, %v7215_v3  ;;  %v7221_v6 = vld [vmem:[#allocation7 + $0x38] sm:$0xff]   ;;  %v7222_v7 = vld [vmem:[#allocation7 + $0x30] sm:$0xff]   ;;  %v7223_v10 = vld [vmem:[#allocation7 + $0x28] sm:$0xff]  }
  0x66   :  { %7060 = vmatpush3.bf16.msra.mxu0 %v217_v2  ;;  %v7224_v8 = vld [vmem:[#allocation7 + $0x78] sm:$0xff]   ;;  %v7218_v9 = vld [vmem:[%s7958_s0 + $0x18] sm:$0xff]   ;;  %v7225_v13 = vld [vmem:[#allocation7 + $0x20] sm:$0xff]  }
  0x67   :  { %7061 = vmatprep.subr.bf16.mxu0 %v7214_v1  ;;  %v7219_v11 = vld [vmem:[%s7958_s0 + $0x20] sm:$0xff]   ;;  %7075 = vmatprep.subr.bf16.mxu1 %v7224_v8  ;;  %v7228_v14 = vld [vmem:[#allocation7 + $0x68] sm:$0xff]   ;;  %v7220_v16 = vld [vmem:[%s7958_s0 + $0x28] sm:$0xff]   ;;  %s7531_s0 = smov [#allocation16]  }
  0x68   :  { %v7226_v12 = vld [vmem:[#allocation7 + $0x70] sm:$0xff]   ;;  %7076 = vmatpush3.bf16.msra.mxu1 %v7224_v8  ;;  %v7227_v15 = vld [vmem:[#allocation7 + $0x18] sm:$0xff]   ;;  %v7230_v18 = vld [vmem:[#allocation7 + $0x60] sm:$0xff]   ;;  %s6257_s15 = sshll.u32 %s7531_s0, 4  ;;  %s6258_s15 = int_to_ptr.vmem [resolvable:$true] %s6257_s15 }
  0x69   :  { %7077 = vmatprep.subr.bf16.mxu1 %v7226_v12  ;;  %v7229_v17 = vld [vmem:[#allocation7 + $0x10] sm:$0xff]   ;;  %v7231_v19 = vld [vmem:[#allocation7 + $0x8] sm:$0xff]   ;;  %v7232_v20 = vld [vmem:[#allocation7 + $0x58] sm:$0xff]   ;;  %s7485_s1 = scalar_lea.vmem %s6258_s15, 128  ;;  %p7490_p13 = scmp.lt.s32.totalorder %s6258_s15, %s6258_s15 }
  0x6a   :  { %7062 = vmatpush3.bf16.msra.mxu0 %v7214_v1  ;;  %v7233_v21 = vld [vmem:[#allocation7] sm:$0xff]   ;;  %v7234_v22 = vld [vmem:[#allocation7 + $0x50] sm:$0xff]   ;;  %v7235_v23 = vld [vmem:[#allocation7 + $0xf8] sm:$0xff]   ;;  %p7486_p12 = scmp.ne.s32.totalorder %s6258_s15, %s7485_s1  ;;  %p7491_p0 = scmp.lt.s32.totalorder %s7485_s1, %s7485_s1 }
  0x6b   :  { %7099 = vmatprep.subr.bf16.mxu0 %v7221_v6  ;;  %v7236_v24 = vld [vmem:[#allocation7 + $0x48] sm:$0xff]   ;;  %v7238_v25 = vld [vmem:[#allocation7 + $0x40] sm:$0xff]   ;;  %v7639_v26 = vld [vmem:[#allocation7 + $0xb8] sm:$0xff]  }
  0x6c   :  { %7078 = vmatpush3.bf16.msra.mxu1 %v7226_v12  ;;  %v7642_v28 = vld [vmem:[#allocation5] ss:$0 sm:$0xff]  ;;  %v7237_v46 = vld [vmem:[#allocation7 + $0xf0] sm:$0xff]   ;;  %v7239_v57 = vld [vmem:[#allocation7 + $0xe8] sm:$0xff]   ;;  %p7492_p1 = por %p7491_p0, %p7490_p13 }
  0x6d   :  { %7064 = vmatmul.mubr.msk.bf16.vlgmr.msra.gmra.mxu0 %vm196_vm1, %v7216_v4  ;;  %7079 = vmatprep.subr.bf16.mxu1 %v7228_v14  ;;  %v7241_v4 = vld [vmem:[#allocation7 + $0xe0] sm:$0xff]   ;;  %v7244_v12 = vld [vmem:[#allocation7 + $0xa8] sm:$0xff]  }
  0x6e   :  { %7067 = vmatprep.mubr.msk.bf16.mxu0 %vm196_vm1, %v7217_v5  ;;  %7100 = vmatpush3.bf16.msra.mxu0 %v7221_v6  ;;  %v7242_v5 = vld [vmem:[#allocation7 + $0xb0] sm:$0xff]   ;;  %p7493_p2 = pnand %p7492_p1, %p7486_p12 }
  0x6f   :  { %7101 = vmatprep.subr.bf16.mxu0 %v7222_v7 }
  0x70   :  { %7080 = vmatpush3.bf16.msra.mxu1 %v7228_v14  ;;  %v7245_v14 = vld [vmem:[#allocation7 + $0xd0] sm:$0xff]  }
  0x71   :  { %7081 = vmatprep.subr.bf16.mxu1 %v7230_v18 }
  0x72   :  { %7102 = vmatpush3.bf16.msra.mxu0 %v7222_v7 }
  0x73   :  { %7103 = vmatprep.subr.bf16.mxu0 %v7223_v10 }
  0x74   :  { %7082 = vmatpush3.bf16.msra.mxu1 %v7230_v18  ;;  %v7247_v18 = vld [vmem:[#allocation7 + $0xc8] sm:$0xff]  }
  0x75   :  { %7068 = vmatmul.mubr.msk.bf16.gmra.mxu0 %vm196_vm1, %v7218_v9  ;;  %7083 = vmatprep.subr.bf16.mxu1 %v7232_v20 }
  0x76   :  { %7071 = vmatprep.mubr.msk.bf16.mxu0 %vm196_vm1, %v7219_v11  ;;  %7104 = vmatpush3.bf16.msra.mxu0 %v7223_v10  ;;  %v7243_v10 = vld [vmem:[#allocation7 + $0xd8] sm:$0xff]  }
  0x77   :  { %7105 = vmatprep.subr.bf16.mxu0 %v7225_v13 }
  0x78   :  { %7084 = vmatpush3.bf16.msra.mxu1 %v7232_v20  ;;  %v7249_v20 = vld [vmem:[#allocation7 + $0xc0] sm:$0xff]  }
  0x79   :  { %7085 = vmatprep.subr.bf16.mxu1 %v7234_v22 }
  0x7a   :  { %7106 = vmatpush3.bf16.msra.mxu0 %v7225_v13 }
  0x7b   :  { %7107 = vmatprep.subr.bf16.mxu0 %v7227_v15 }
  0x7c   :  { %7086 = vmatpush3.bf16.msra.mxu1 %v7234_v22 }
  0x7d   :  { %7072 = vmatmul.mubr.msk.bf16.gmra.mxu0 %vm196_vm1, %v7220_v16  ;;  %7087 = vmatprep.subr.bf16.mxu1 %v7236_v24  ;;  %v7246_v16 = vld [vmem:[#allocation7 + $0xa0] sm:$0xff]  }
  0x7e   :  { %7108 = vmatpush3.bf16.msra.mxu0 %v7227_v15 }
  0x7f   :  { %7109 = vmatprep.subr.bf16.mxu0 %v7229_v17 }
  0x80   :  { %7088 = vmatpush3.bf16.msra.mxu1 %v7236_v24 }
  0x81   :  { %7089 = vmatprep.subr.bf16.mxu1 %v7238_v25 }
  0x82   :  { %7110 = vmatpush3.bf16.msra.mxu0 %v7229_v17 }
  0x83   :  { %7111 = vmatprep.subr.bf16.mxu0 %v7231_v19 }
  0x84   :  { %7090 = vmatpush3.bf16.msra.mxu1 %v7238_v25 }
  0x85   :  { %7123 = vmatprep.subr.bf16.mxu1 %v7639_v26 }
  0x86   :  { %7112 = vmatpush3.bf16.msra.mxu0 %v7231_v19  ;;  %v7248_v19 = vld [vmem:[#allocation7 + $0x98] sm:$0xff]  }
  0x87   :  { %7113 = vmatprep.subr.bf16.mxu0 %v7233_v21 }
  0x8a   :  { %7114 = vmatpush3.bf16.msra.mxu0 %v7233_v21 }
  0x8b   :  { %7147 = vmatprep.subr.bf16.mxu0 %v7235_v23 }
 0x12d   :  { %v7065_v27 = vpop.f32.mrf.mxu0 }
 0x12e   :  { %v262_v30 = vadd.f32 %v7065_v27, %v7642_v28 }
 0x12f   :  { %v253_v29 = vpop.f32.mrf.mxu0 }
 0x130   :  { %v254_v32 = vadd.f32 %v7642_v28, %v253_v29  ;;  %v302_v35 = vmax.f32 %v262_v30, 0.0  ;;  %v7252_v29 = vld [vmem:[#allocation7 + $0x80] sm:$0xff]  }
 0x131   :  { %v7066_v31 = vpop.f32.mrf.mxu0 }
 0x132   :  { %v265_v33 = vadd.f32 %v7066_v31, %v7642_v28  ;;  %v300_v39 = vmax.f32 %v254_v32, 0.0  ;;  %v7254_v32 = vld [vmem:[#allocation7 + $0x130] sm:$0xff]  }
 0x133   :  { %v256_v34 = vpop.f32.mrf.mxu0 }
 0x134   :  { %v303_v36 = vmax.f32 %v265_v33, 0.0  ;;  %v257_v37 = vadd.f32 %v7642_v28, %v256_v34  ;;  %v7255_v33 = vld [vmem:[#allocation7 + $0x128] sm:$0xff]   ;;  %v7256_v34 = vld [vmem:[#allocation7 + $0x120] sm:$0xff]  }
 0x135   :  { %v7069_v38 = vpop.f32.mrf.mxu0 }
 0x136   :  { %v7648_v40 = vpack.c.bf16 %v303_v36, %v302_v35  ;;  %v301_v41 = vmax.f32 %v257_v37, 0.0  ;;  %v278_v44 = vadd.f32 %v7069_v38, %v7642_v28  ;;  %v7257_v35 = vld [vmem:[#allocation7 + $0x118] sm:$0xff]   ;;  %v7258_v36 = vld [vmem:[#allocation7 + $0x110] sm:$0xff]   ;;  %v7259_v37 = vld [vmem:[#allocation7 + $0x108] sm:$0xff]  }
 0x137   :  { %v269_v42 = vpop.f32.mrf.mxu0  ;;  %v7260_v38 = vld [vmem:[#allocation7 + $0x100] sm:$0xff]  }
 0x138   :  { %v312_v43 = vpack.c.bf16 %v301_v41, %v300_v39  ;;  %v270_v47 = vadd.f32 %v7642_v28, %v269_v42  ;;  %v358_v50 = vrot.slane %v7648_v40, 4  ;;  %v306_v52 = vmax.f32 %v278_v44, 0.0  ;;  %v1162_v39 = vld [vmem:[#allocation10 + $0x3c0] sm:$0xff]  ;;  %v1163_v41 = vld [vmem:[#allocation10 + $0x3c8] sm:$0xff] }
 0x139   :  { %v7070_v45 = vpop.f32.mrf.mxu0 }
 0x13a   :  { %v281_v48 = vadd.f32 %v7070_v45, %v7642_v28  ;;  %7115 = vmatprep.mubr.bf16.mxu0 %v312_v43  ;;  %v357_v49 = vrot.slane %v312_v43, 4  ;;  %v304_v58 = vmax.f32 %v270_v47, 0.0  ;;  %v1167_v43 = vld [vmem:[#allocation10 + $0x3e8] sm:$0xff]  ;;  %v1154_v47 = vld [vmem:[#allocation10 + $0x380] sm:$0xff] }
 0x13b   :  { %v272_v51 = vpop.f32.mrf.mxu0  ;;  %7116 = vmatmul.mubr.bf16.vlgmr.msra.gmra.mxu0 %v7648_v40  ;;  %v6384_v45 = vcombine.low %v1163_v41, %v1167_v43 }
 0x13c   :  { %v307_v53 = vmax.f32 %v281_v48, 0.0  ;;  %v273_v54 = vadd.f32 %v7642_v28, %v272_v51  ;;  %7148 = vmatpush3.bf16.msra.mxu0 %v7235_v23  ;;  %v359_v55 = vsel %vm356_vm2, %v357_v49, %v358_v50  ;;  %v7250_v23 = vld [vmem:[#allocation7 + $0x90] sm:$0xff]   ;;  %v1158_v48 = vld [vmem:[#allocation10 + $0x3a0] sm:$0xff] }
 0x13d   :  { %v7073_v56 = vpop.f32.mrf.mxu0  ;;  %7091 = vmatprep.mubr.bf16.mxu1 %v359_v55  ;;  %7149 = vmatprep.subr.bf16.mxu0 %v7237_v46  ;;  %v1155_v49 = vld [vmem:[#allocation10 + $0x388] sm:$0xff] }
 0x13e   :  { %v7657_v59 = vpack.c.bf16 %v307_v53, %v306_v52  ;;  %v305_v60 = vmax.f32 %v273_v54, 0.0  ;;  %v294_v21 = vadd.f32 %v7073_v56, %v7642_v28  ;;  %v1159_v51 = vld [vmem:[#allocation10 + $0x3a8] sm:$0xff]  ;;  %v1146_v52 = vld [vmem:[#allocation10 + $0x340] sm:$0xff]  ;;  %v6374_v54 = vcombine.low %v1154_v47, %v1158_v48 }
 0x13f   :  { %v285_v61 = vpop.f32.mrf.mxu0  ;;  %v1150_v53 = vld [vmem:[#allocation10 + $0x360] sm:$0xff]  ;;  %v6377_v55 = vcombine.high %v1155_v49, %v1159_v51  ;;  %v1147_v56 = vld [vmem:[#allocation10 + $0x348] sm:$0xff] }
 0x140   :  { %v7659_v62 = vpack.c.bf16 %v305_v60, %v304_v58  ;;  %v286_v63 = vadd.f32 %v7642_v28, %v285_v61  ;;  %7150 = vmatpush3.bf16.msra.mxu0 %v7237_v46  ;;  %v362_v2 = vrot.slane %v7657_v59, 4  ;;  %v310_v24 = vmax.f32 %v294_v21, 0.0  ;;  %v1138_v61 = vld [vmem:[#allocation10 + $0x300] sm:$0xff] }
 0x141   :  { %v7074_v0 = vpop.f32.mrf.mxu0  ;;  %7151 = vmatprep.subr.bf16.mxu0 %v7239_v57  ;;  %v6385_v46 = vcombine.high %v1163_v41, %v1167_v43  ;;  %v6376_v58 = vcombine.low %v1155_v49, %v1159_v51  ;;  %v7688_v41 = vld [vmem:[#allocation10 + $0x3d8] sm:$0xff] }
 0x142   :  { %7119 = vmatprep.mubr.bf16.mxu0 %v7659_v62  ;;  %v360_v1 = vrot.slane %v7659_v62, 4  ;;  %v308_v6 = vmax.f32 %v286_v63, 0.0  ;;  %v297_v22 = vadd.f32 %v7074_v0, %v7642_v28  ;;  %v1139_v63 = vld [vmem:[#allocation10 + $0x308] sm:$0xff]  ;;  %v7692_v43 = vld [vmem:[#allocation10 + $0x3f8] sm:$0xff] }
 0x143   :  { %v288_v3 = vpop.f32.mrf.mxu0  ;;  %7120 = vmatmul.mubr.bf16.gmra.mxu0 %v7657_v59  ;;  %v1143_v0 = vld [vmem:[#allocation10 + $0x328] sm:$0xff] }
 0x144   :  { %v289_v7 = vadd.f32 %v7642_v28, %v288_v3  ;;  %7152 = vmatpush3.bf16.msra.mxu0 %v7239_v57  ;;  %v361_v8 = vsel %vm356_vm2, %v358_v50, %v360_v1  ;;  %v363_v9 = vsel %vm356_vm2, %v360_v1, %v362_v2  ;;  %v311_v25 = vmax.f32 %v297_v22, 0.0  ;;  %v7253_v28 = vld [vmem:[#allocation7 + $0x138] sm:$0xff]   ;;  %v1151_v57 = vld [vmem:[#allocation10 + $0x368] sm:$0xff] }
 0x145   :  { %7092 = vmatmul.mubr.bf16.vlgmr.msra.gmra.mxu1 %v361_v8  ;;  %7163 = vmatprep.mubr.bf16.mxu0 %v361_v8  ;;  %v6375_v50 = vcombine.high %v1154_v47, %v1158_v48  ;;  %v6369_v60 = vcombine.high %v1147_v56, %v1151_v57  ;;  %v6366_v1 = vcombine.low %v1146_v52, %v1150_v53  ;;  %v1134_v8 = vld [vmem:[#allocation10 + $0x2e0] sm:$0xff]  ;;  %v7529_v47 = vmov 0  }
 0x146   :  { %v309_v11 = vmax.f32 %v289_v7, 0.0  ;;  %7124 = vmatpush3.bf16.msra.mxu1 %v7639_v26  ;;  %7095 = vmatprep.mubr.bf16.mxu1 %v363_v9  ;;  %v7251_v26 = vld [vmem:[#allocation7 + $0x88] sm:$0xff]   ;;  %v317_v27 = vpack.c.bf16 %v311_v25, %v310_v24 }
 0x147   :  { %7153 = vmatprep.subr.bf16.mxu0 %v7241_v4  ;;  %7125 = vmatprep.subr.bf16.mxu1 %v7242_v5  ;;  %v1130_v7 = vld [vmem:[#allocation10 + $0x2c0] sm:$0xff]  ;;  %v1115_v25 = vld [vmem:[#allocation10 + $0x248] sm:$0xff] }
 0x148   :  { %v7670_v13 = vpack.c.bf16 %v309_v11, %v308_v6  ;;  %7154 = vmatpush3.bf16.msra.mxu0 %v7241_v4  ;;  %v752_v30 = vrot.slane %v317_v27, 4  ;;  %v6361_v4 = vcombine.high %v1139_v63, %v1143_v0  ;;  %v6360_v6 = vcombine.low %v1139_v63, %v1143_v0  ;;  %v1135_v11 = vld [vmem:[#allocation10 + $0x2e8] sm:$0xff]  ;;  %v1118_v24 = vld [vmem:[#allocation10 + $0x260] sm:$0xff]  ;;  %7211 = vset.pattern.permute.xlu0 %v7529_v47 }
 0x149   :  { %7155 = vmatprep.subr.bf16.mxu0 %v7243_v10 }
 0x14a   :  { %7126 = vmatpush3.bf16.msra.mxu1 %v7242_v5  ;;  %v364_v15 = vrot.slane %v7670_v13, 4 }
 0x14b   :  { %7127 = vmatprep.subr.bf16.mxu1 %v7244_v12 }
 0x14c   :  { %7156 = vmatpush3.bf16.msra.mxu0 %v7243_v10  ;;  %v365_v17 = vsel %vm356_vm2, %v362_v2, %v364_v15  ;;  %v753_v31 = vsel %vm356_vm2, %v364_v15, %v752_v30  ;;  %v6368_v2 = vcombine.low %v1147_v56, %v1151_v57  ;;  %v6351_v10 = vcombine.high %v1130_v7, %v1134_v8  ;;  %v1122_v15 = vld [vmem:[#allocation10 + $0x280] sm:$0xff] }
 0x14d   :  { %7096 = vmatmul.mubr.bf16.gmra.mxu1 %v365_v17  ;;  %7157 = vmatprep.subr.bf16.mxu0 %v7245_v14 }
 0x14e   :  { %7128 = vmatpush3.bf16.msra.mxu1 %v7244_v12  ;;  %7139 = vmatprep.mubr.bf16.mxu1 %v7648_v40  ;;  %v1166_v40 = vld [vmem:[#allocation10 + $0x3e0] sm:$0xff]  ;;  %v6350_v12 = vcombine.low %v1130_v7, %v1134_v8 }
 0x14f   :  { %7129 = vmatprep.subr.bf16.mxu1 %v7246_v16  ;;  %v6383_v42 = vcombine.high %v1162_v39, %v1166_v40  ;;  %v6382_v44 = vcombine.low %v1162_v39, %v1166_v40  ;;  %v7684_v39 = vld [vmem:[#allocation10 + $0x3d0] sm:$0xff] }
 0x150   :  { %7158 = vmatpush3.bf16.msra.mxu0 %v7245_v14  ;;  %v7686_v40 = vld [vmem:[#allocation10 + $0x3f0] sm:$0xff] }
 0x151   :  { %7159 = vmatprep.subr.bf16.mxu0 %v7247_v18 }
 0x152   :  { %7130 = vmatpush3.bf16.msra.mxu1 %v7246_v16  ;;  %v1126_v16 = vld [vmem:[#allocation10 + $0x2a0] sm:$0xff] }
 0x153   :  { %7131 = vmatprep.subr.bf16.mxu1 %v7248_v19 }
 0x154   :  { %7160 = vmatpush3.bf16.msra.mxu0 %v7247_v18  ;;  %v1123_v18 = vld [vmem:[#allocation10 + $0x288] sm:$0xff] }
 0x155   :  { %7161 = vmatprep.subr.bf16.mxu0 %v7249_v20 }
 0x156   :  { %7132 = vmatpush3.bf16.msra.mxu1 %v7248_v19  ;;  %v1127_v19 = vld [vmem:[#allocation10 + $0x2a8] sm:$0xff] }
 0x157   :  { %7133 = vmatprep.subr.bf16.mxu1 %v7250_v23  ;;  %v6344_v21 = vcombine.low %v1123_v18, %v1127_v19  ;;  %v6345_v22 = vcombine.high %v1123_v18, %v1127_v19 }
 0x158   :  { %7162 = vmatpush3.bf16.msra.mxu0 %v7249_v20  ;;  %v6342_v20 = vcombine.low %v1122_v15, %v1126_v16 }
 0x159   :  { %1493 = vmatprep.subr.bf16.mxu0 %v6383_v42  ;;  %v6387_v42 = vcombine.high %v7684_v39, %v7686_v40 }
 0x15a   :  { %7134 = vmatpush3.bf16.msra.mxu1 %v7250_v23  ;;  %v1114_v23 = vld [vmem:[#allocation10 + $0x240] sm:$0xff] }
 0x15b   :  { %7164 = vmatmul.mubr.bf16.vlgmr.msra.gmra.mxu0 %v363_v9  ;;  %7135 = vmatprep.subr.bf16.mxu1 %v7251_v26  ;;  %v1131_v9 = vld [vmem:[#allocation10 + $0x2c8] sm:$0xff] }
 0x15c   :  { %7167 = vmatprep.mubr.bf16.mxu0 %v365_v17  ;;  %1494 = vmatpush1.bf16.msra.mxu0 %v6382_v44  ;;  %v6353_v14 = vcombine.high %v1131_v9, %v1135_v11  ;;  %v6343_v17 = vcombine.high %v1122_v15, %v1126_v16  ;;  %v6386_v44 = vcombine.low %v7684_v39, %v7686_v40 }
 0x15d   :  { %1495 = vmatprep.subr.bf16.mxu0 %v6375_v50 }
 0x15e   :  { %7136 = vmatpush3.bf16.msra.mxu1 %v7251_v26  ;;  %v6335_v26 = vcombine.high %v1114_v23, %v1118_v24 }
 0x15f   :  { %7137 = vmatprep.subr.bf16.mxu1 %v7252_v29 }
 0x160   :  { %1496 = vmatpush1.bf16.msra.mxu0 %v6374_v54 }
 0x162   :  { %7138 = vmatpush3.bf16.msra.mxu1 %v7252_v29  ;;  %v6334_v29 = vcombine.low %v1114_v23, %v1118_v24 }
 0x163   :  { %7168 = vmatmul.mubr.bf16.gmra.mxu0 %v753_v31  ;;  %7171 = vmatprep.subr.bf16.mxu1 %v7253_v28  ;;  %v1106_v31 = vld [vmem:[#allocation10 + $0x200] sm:$0xff] }
 0x164   :  { %1525 = vmatprep.mubr.bf16.mxu0 %v7529_v47 }
 0x165   :  { %7140 = vmatmul.mubr.bf16.vlgmr.msra.gmra.mxu1 %v7659_v62 }
 0x166   :  { %7143 = vmatprep.mubr.bf16.mxu1 %v7657_v59  ;;  %7172 = vmatpush3.bf16.msra.mxu1 %v7253_v28 }
 0x167   :  { %7173 = vmatprep.subr.bf16.mxu1 %v7254_v32 }
 0x16a   :  { %7174 = vmatpush3.bf16.msra.mxu1 %v7254_v32  ;;  %v1110_v32 = vld [vmem:[#allocation10 + $0x220] sm:$0xff] }
 0x16b   :  { %7175 = vmatprep.subr.bf16.mxu1 %v7255_v33 }
 0x16d   :  { %7144 = vmatmul.mubr.bf16.gmra.mxu1 %v7670_v13 }
 0x16e   :  { %7176 = vmatpush3.bf16.msra.mxu1 %v7255_v33  ;;  %7187 = vmatprep.mubr.bf16.mxu1 %v7659_v62  ;;  %v1142_v62 = vld [vmem:[#allocation10 + $0x320] sm:$0xff]  ;;  %v1107_v33 = vld [vmem:[#allocation10 + $0x208] sm:$0xff] }
 0x16f   :  { %7177 = vmatprep.subr.bf16.mxu1 %v7256_v34  ;;  %v6359_v3 = vcombine.high %v1138_v61, %v1142_v62  ;;  %v6358_v5 = vcombine.low %v1138_v61, %v1142_v62 }
 0x172   :  { %7178 = vmatpush3.bf16.msra.mxu1 %v7256_v34  ;;  %v6327_v34 = vcombine.high %v1106_v31, %v1110_v32 }
 0x173   :  { %7179 = vmatprep.subr.bf16.mxu1 %v7257_v35 }
 0x176   :  { %7180 = vmatpush3.bf16.msra.mxu1 %v7257_v35  ;;  %v1111_v35 = vld [vmem:[#allocation10 + $0x228] sm:$0xff] }
 0x177   :  { %7181 = vmatprep.subr.bf16.mxu1 %v7258_v36 }
 0x17a   :  { %7182 = vmatpush3.bf16.msra.mxu1 %v7258_v36  ;;  %v6326_v36 = vcombine.low %v1106_v31, %v1110_v32 }
 0x17b   :  { %7183 = vmatprep.subr.bf16.mxu1 %v7259_v37 }
 0x17e   :  { %7184 = vmatpush3.bf16.msra.mxu1 %v7259_v37  ;;  %v6328_v37 = vcombine.low %v1107_v33, %v1111_v35 }
 0x17f   :  { %7185 = vmatprep.subr.bf16.mxu1 %v7260_v38 }
 0x182   :  { %7186 = vmatpush3.bf16.msra.mxu1 %v7260_v38  ;;  %v6329_v38 = vcombine.high %v1107_v33, %v1111_v35  ;;  %v6325_v35 = vld [vmem:[#allocation8] ss:$0 sm:$0xff] }
 0x183   :  { %1534 = vmatprep.subr.bf16.mxu1 %v6385_v46  ;;  %v6389_v46 = vcombine.high %v7688_v41, %v7692_v43 }
 0x185   :  { %7188 = vmatmul.mubr.bf16.vlgmr.msra.gmra.mxu1 %v7657_v59  ;;  %v6367_v59 = vcombine.high %v1146_v52, %v1150_v53 }
 0x186   :  { %7191 = vmatprep.mubr.bf16.mxu1 %v7670_v13  ;;  %1535 = vmatpush1.bf16.msra.mxu1 %v6384_v45  ;;  %v6352_v13 = vcombine.low %v1131_v9, %v1135_v11  ;;  %v6388_v45 = vcombine.low %v7688_v41, %v7692_v43 }
 0x187   :  { %1536 = vmatprep.subr.bf16.mxu1 %v6377_v55  ;;  %1497 = vmatprep.subr.bf16.mxu0 %v6367_v59 }
 0x188   :  { %1498 = vmatpush1.bf16.msra.mxu0 %v6366_v1 }
 0x189   :  { %1499 = vmatprep.subr.bf16.mxu0 %v6359_v3 }
 0x18a   :  { %1537 = vmatpush1.bf16.msra.mxu1 %v6376_v58 }
 0x18b   :  { %1538 = vmatprep.subr.bf16.mxu1 %v6369_v60 }
 0x18c   :  { %1500 = vmatpush1.bf16.msra.mxu0 %v6358_v5 }
 0x18d   :  { %7192 = vmatmul.mubr.bf16.gmra.mxu1 %v317_v27  ;;  %1501 = vmatprep.subr.bf16.mxu0 %v6351_v10  ;;  %v1119_v27 = vld [vmem:[#allocation10 + $0x268] sm:$0xff] }
 0x18e   :  { %1539 = vmatpush1.bf16.msra.mxu1 %v6368_v2  ;;  %v6336_v30 = vcombine.low %v1115_v25, %v1119_v27  ;;  %v6337_v28 = vcombine.high %v1115_v25, %v1119_v27  ;;  %1566 = vmatprep.mubr.bf16.mxu1 %v7529_v47 }
 0x18f   :  { %1540 = vmatprep.subr.bf16.mxu1 %v6361_v4 }
 0x190   :  { %1502 = vmatpush1.bf16.msra.mxu0 %v6350_v12 }
 0x191   :  { %1503 = vmatprep.subr.bf16.mxu0 %v6343_v17 }
 0x192   :  { %1541 = vmatpush1.bf16.msra.mxu1 %v6360_v6 }
 0x193   :  { %1542 = vmatprep.subr.bf16.mxu1 %v6353_v14 }
 0x194   :  { %1504 = vmatpush1.bf16.msra.mxu0 %v6342_v20 }
 0x195   :  { %1505 = vmatprep.subr.bf16.mxu0 %v6335_v26 }
 0x196   :  { %1543 = vmatpush1.bf16.msra.mxu1 %v6352_v13 }
 0x197   :  { %1544 = vmatprep.subr.bf16.mxu1 %v6345_v22 }
 0x198   :  { %1506 = vmatpush1.bf16.msra.mxu0 %v6334_v29 }
 0x199   :  { %1507 = vmatprep.subr.bf16.mxu0 %v6327_v34 }
 0x19a   :  { %1545 = vmatpush1.bf16.msra.mxu1 %v6344_v21 }
 0x19b   :  { %1546 = vmatprep.subr.bf16.mxu1 %v6337_v28 }
 0x19c   :  { %1508 = vmatpush1.bf16.msra.mxu0 %v6326_v36 }
 0x19d   :  { %1575 = vmatprep.subr.bf16.mxu0 %v6387_v42 }
 0x19e   :  { %1547 = vmatpush1.bf16.msra.mxu1 %v6336_v30 }
 0x19f   :  { %1548 = vmatprep.subr.bf16.mxu1 %v6329_v38 }
 0x1a2   :  { %1549 = vmatpush1.bf16.msra.mxu1 %v6328_v37 }
 0x1a3   :  { %1616 = vmatprep.subr.bf16.mxu1 %v6389_v46 }
 0x1fb   :  { %v7117_v48 = vpop.f32.mrf.mxu0 }
 0x1fd   :  { %v565_v49 = vpop.f32.mrf.mxu0 }
 0x1ff   :  { %v7118_v50 = vpop.f32.mrf.mxu0 }
 0x201   :  { %v568_v51 = vpop.f32.mrf.mxu0 }
 0x203   :  { %v7121_v54 = vpop.f32.mrf.mxu0 }
 0x205   :  { %v7093_v52 = vpop.f32.mrf.mxu1  ;;  %v581_v58 = vpop.f32.mrf.mxu0 }
 0x206   :  { %v574_v53 = vadd.f32 %v7117_v48, %v7093_v52 }
 0x207   :  { %v452_v55 = vpop.f32.mrf.mxu1  ;;  %v7122_v62 = vpop.f32.mrf.mxu0 }
 0x208   :  { %v566_v31 = vadd.f32 %v565_v49, %v452_v55 }
 0x209   :  { %v7094_v56 = vpop.f32.mrf.mxu1  ;;  %v584_v3 = vpop.f32.mrf.mxu0 }
 0x20a   :  { %v577_v57 = vadd.f32 %v7118_v50, %v7094_v56 }
 0x20b   :  { %v455_v59 = vpop.f32.mrf.mxu1 }
 0x20c   :  { %v569_v33 = vadd.f32 %v568_v51, %v455_v59 }
 0x20d   :  { %v7097_v60 = vpop.f32.mrf.mxu1 }
 0x20e   :  { %v590_v61 = vadd.f32 %v7121_v54, %v7097_v60 }
 0x20f   :  { %v468_v63 = vpop.f32.mrf.mxu1 }
 0x210   :  { %v582_v0 = vadd.f32 %v581_v58, %v468_v63 }
 0x211   :  { %v7098_v1 = vpop.f32.mrf.mxu1 }
 0x212   :  { %v593_v2 = vadd.f32 %v7122_v62, %v7098_v1 }
 0x213   :  { %v471_v4 = vpop.f32.mrf.mxu1 }
 0x214   :  { %v585_v5 = vadd.f32 %v584_v3, %v471_v4  ;;  %v1156_v4 = vld [vmem:[#allocation10 + $0x390] sm:$0xff] }
 0x21b   :  { %v7165_v6 = vpop.f32.mrf.mxu0 }
 0x21d   :  { %v837_v7 = vpop.f32.mrf.mxu0 }
 0x21f   :  { %v7166_v8 = vpop.f32.mrf.mxu0 }
 0x221   :  { %v840_v11 = vpop.f32.mrf.mxu0 }
 0x223   :  { %v7169_v16 = vpop.f32.mrf.mxu0 }
 0x225   :  { %v7141_v9 = vpop.f32.mrf.mxu1  ;;  %v853_v21 = vpop.f32.mrf.mxu0 }
 0x226   :  { %v728_v10 = vadd.f32 %v7141_v9, %v574_v53  ;;  %v1161_v9 = vld [vmem:[#allocation10 + $0x3b8] sm:$0xff] }
 0x227   :  { %v695_v12 = vpop.f32.mrf.mxu1  ;;  %v7170_v27 = vpop.f32.mrf.mxu0 }
 0x228   :  { %v870_v13 = vadd.f32 %v7165_v6, %v728_v10  ;;  %v726_v32 = vadd.f32 %v695_v12, %v566_v31 }
 0x229   :  { %v7142_v14 = vpop.f32.mrf.mxu1  ;;  %v856_v6 = vpop.f32.mrf.mxu0 }
 0x22a   :  { %v729_v15 = vadd.f32 %v7142_v14, %v577_v57  ;;  %v868_v38 = vadd.f32 %v837_v7, %v726_v32 }
 0x22b   :  { %v698_v17 = vpop.f32.mrf.mxu1 }
 0x22c   :  { %v871_v18 = vadd.f32 %v7166_v8, %v729_v15  ;;  %v727_v36 = vadd.f32 %v698_v17, %v569_v33  ;;  %v1157_v8 = vld [vmem:[#allocation10 + $0x398] sm:$0xff] }
 0x22d   :  { %v7145_v19 = vpop.f32.mrf.mxu1 }
 0x22e   :  { %v732_v20 = vadd.f32 %v7145_v19, %v590_v61  ;;  %v869_v53 = vadd.f32 %v840_v11, %v727_v36  ;;  %v6381_v19 = vcombine.high %v1157_v8, %v1161_v9  ;;  %v1141_v36 = vld [vmem:[#allocation10 + $0x318] sm:$0xff] }
 0x22f   :  { %v711_v22 = vpop.f32.mrf.mxu1 }
 0x230   :  { %v730_v23 = vadd.f32 %v711_v22, %v582_v0  ;;  %v874_v24 = vadd.f32 %v7169_v16, %v732_v20  ;;  %v1148_v20 = vld [vmem:[#allocation10 + $0x350] sm:$0xff]  ;;  %v1149_v22 = vld [vmem:[#allocation10 + $0x358] sm:$0xff] }
 0x231   :  { %v7146_v25 = vpop.f32.mrf.mxu1 }
 0x232   :  { %v733_v26 = vadd.f32 %v7146_v25, %v593_v2  ;;  %v872_v61 = vadd.f32 %v853_v21, %v730_v23  ;;  %v1152_v21 = vld [vmem:[#allocation10 + $0x370] sm:$0xff]  ;;  %v1153_v23 = vld [vmem:[#allocation10 + $0x378] sm:$0xff] }
 0x233   :  { %v714_v29 = vpop.f32.mrf.mxu1  ;;  %v6373_v33 = vcombine.high %v1149_v22, %v1153_v23  ;;  %v6370_v40 = vcombine.low %v1148_v20, %v1152_v21  ;;  %v6372_v41 = vcombine.low %v1149_v22, %v1153_v23  ;;  %v1089_v23 = vld [vmem:[#allocation10 + $0x180] sm:$0xff] }
 0x234   :  { %v731_v30 = vadd.f32 %v714_v29, %v585_v5  ;;  %v875_v28 = vadd.f32 %v7170_v27, %v733_v26  ;;  %v1160_v5 = vld [vmem:[#allocation10 + $0x3b0] sm:$0xff]  ;;  %v6380_v29 = vcombine.low %v1157_v8, %v1161_v9  ;;  %v1113_v8 = vld [vmem:[#allocation10 + $0x238] sm:$0xff] }
 0x235   :  { %v6379_v15 = vcombine.high %v1156_v4, %v1160_v5  ;;  %v6378_v27 = vcombine.low %v1156_v4, %v1160_v5  ;;  %v1108_v5 = vld [vmem:[#allocation10 + $0x210] sm:$0xff] }
 0x245   :  { %v7189_v34 = vpop.f32.mrf.mxu1 }
 0x246   :  { %v1008_v37 = vadd.f32 %v7189_v34, %v870_v13  ;;  %v873_v13 = vadd.f32 %v856_v6, %v731_v30  ;;  %v6371_v30 = vcombine.high %v1148_v20, %v1152_v21  ;;  %v1140_v34 = vld [vmem:[#allocation10 + $0x310] sm:$0xff] }
 0x247   :  { %v975_v42 = vpop.f32.mrf.mxu1  ;;  %v1112_v6 = vld [vmem:[#allocation10 + $0x230] sm:$0xff] }
 0x248   :  { %v1023_v46 = vadd.f32 %v6325_v35, %v1008_v37  ;;  %v1006_v48 = vadd.f32 %v975_v42, %v868_v38  ;;  %v1145_v37 = vld [vmem:[#allocation10 + $0x338] sm:$0xff]  ;;  %v1136_v38 = vld [vmem:[#allocation10 + $0x2f0] sm:$0xff] }
 0x249   :  { %v7190_v50 = vpop.f32.mrf.mxu1  ;;  %v1133_v42 = vld [vmem:[#allocation10 + $0x2d8] sm:$0xff] }
 0x24a   :  { %v1009_v52 = vadd.f32 %v7190_v50, %v871_v18  ;;  %v1021_v54 = vadd.f32 %v6325_v35, %v1006_v48  ;;  %v1031_v49 = vmax.f32 %v1023_v46, 0.0  ;;  %v1137_v46 = vld [vmem:[#allocation10 + $0x2f8] sm:$0xff]  ;;  %v6364_v50 = vcombine.low %v1141_v36, %v1145_v37 }
 0x24b   :  { %v978_v56 = vpop.f32.mrf.mxu1 }
 0x24c   :  { %v1024_v57 = vadd.f32 %v6325_v35, %v1009_v52  ;;  %v1007_v58 = vadd.f32 %v978_v56, %v869_v53  ;;  %v1029_v62 = vmax.f32 %v1021_v54, 0.0  ;;  %v6357_v53 = vcombine.high %v1133_v42, %v1137_v46  ;;  %v1124_v54 = vld [vmem:[#allocation10 + $0x290] sm:$0xff] }
 0x24d   :  { %v7193_v60 = vpop.f32.mrf.mxu1  ;;  %v1128_v56 = vld [vmem:[#allocation10 + $0x2b0] sm:$0xff] }
 0x24e   :  { %v1032_v55 = vmax.f32 %v1024_v57, 0.0  ;;  %v1022_v51 = vadd.f32 %v6325_v35, %v1007_v58  ;;  %v1012_v59 = vadd.f32 %v7193_v60, %v874_v24  ;;  %v1125_v57 = vld [vmem:[#allocation10 + $0x298] sm:$0xff] }
 0x24f   :  { %v991_v63 = vpop.f32.mrf.mxu1  ;;  %v1129_v58 = vld [vmem:[#allocation10 + $0x2b8] sm:$0xff] }
 0x250   :  { %v7703_v0 = vpack.c.bf16 %v1032_v55, %v1031_v49  ;;  %v1030_v1 = vmax.f32 %v1022_v51, 0.0  ;;  %v1027_v2 = vadd.f32 %v6325_v35, %v1012_v59  ;;  %v1010_v3 = vadd.f32 %v991_v63, %v872_v61  ;;  %v1116_v51 = vld [vmem:[#allocation10 + $0x250] sm:$0xff]  ;;  %v1121_v63 = vld [vmem:[#allocation10 + $0x278] sm:$0xff] }
 0x251   :  { %v7194_v7 = vpop.f32.mrf.mxu1  ;;  %v6356_v61 = vcombine.low %v1133_v42, %v1137_v46  ;;  %v6347_v49 = vcombine.high %v1124_v54, %v1128_v56  ;;  %v6349_v55 = vcombine.high %v1125_v57, %v1129_v58  ;;  %v1120_v59 = vld [vmem:[#allocation10 + $0x270] sm:$0xff] }
 0x252   :  { %v7705_v10 = vpack.c.bf16 %v1030_v1, %v1029_v62  ;;  %v1025_v11 = vadd.f32 %v6325_v35, %v1010_v3  ;;  %v1013_v12 = vadd.f32 %v7194_v7, %v875_v28  ;;  %v1035_v24 = vmax.f32 %v1027_v2, 0.0  ;;  %v1117_v62 = vld [vmem:[#allocation10 + $0x258] sm:$0xff] }
 0x253   :  { %v994_v14 = vpop.f32.mrf.mxu1  ;;  %v6346_v1 = vcombine.low %v1124_v54, %v1128_v56  ;;  %v6348_v2 = vcombine.low %v1125_v57, %v1129_v58  ;;  %v6339_v3 = vcombine.high %v1116_v51, %v1120_v59  ;;  %v6341_v4 = vcombine.high %v1117_v62, %v1121_v63  ;;  %v1109_v7 = vld [vmem:[#allocation10 + $0x218] sm:$0xff]  ;;  %v1070_v54 = vld [vmem:[#allocation10 + $0xe8] sm:$0xff] }
 0x254   :  { %v1028_v16 = vadd.f32 %v6325_v35, %v1013_v12  ;;  %v1011_v17 = vadd.f32 %v994_v14, %v873_v13  ;;  %v7708_v18 = vrot.slane %v7705_v10, 4  ;;  %v1033_v28 = vmax.f32 %v1025_v11, 0.0  ;;  %v1097_v14 = vld [vmem:[#allocation10 + $0x1c0] sm:$0xff] }
 0x255   :  { %v6338_v9 = vcombine.low %v1116_v51, %v1120_v59  ;;  %v6340_v11 = vcombine.low %v1117_v62, %v1121_v63  ;;  %v6331_v12 = vcombine.high %v1108_v5, %v1112_v6  ;;  %v6333_v13 = vcombine.high %v1109_v7, %v1113_v8  ;;  %v1062_v51 = vld [vmem:[#allocation10 + $0xa8] sm:$0xff] }
 0x256   :  { %v1036_v25 = vmax.f32 %v1028_v16, 0.0  ;;  %v1026_v26 = vadd.f32 %v6325_v35, %v1011_v17  ;;  %1526 = vmatmul.mubr.bf16.vlgmr.msra.gmra.mxu0 %v7708_v18  ;;  %1567 = vmatmul.mubr.bf16.vlgmr.msra.gmra.mxu1 %v7708_v18  ;;  %v1144_v35 = vld [vmem:[#allocation10 + $0x330] sm:$0xff]  ;;  %v1098_v16 = vld [vmem:[#allocation10 + $0x1c8] sm:$0xff]  ;;  %v6332_v20 = vcombine.low %v1109_v7, %v1113_v8 }
 0x257   :  { %1576 = vmatpush1.bf16.msra.mxu0 %v6386_v44  ;;  %1617 = vmatpush1.bf16.msra.mxu1 %v6388_v45  ;;  %v6363_v43 = vcombine.high %v1140_v34, %v1144_v35  ;;  %v6365_v44 = vcombine.high %v1141_v36, %v1145_v37  ;;  %v1132_v45 = vld [vmem:[#allocation10 + $0x2d0] sm:$0xff]  ;;  %v6362_v48 = vcombine.low %v1140_v34, %v1144_v35  ;;  %v1102_v17 = vld [vmem:[#allocation10 + $0x1e8] sm:$0xff] }
 0x258   :  { %v7718_v31 = vpack.c.bf16 %v1036_v25, %v1035_v24  ;;  %v1034_v32 = vmax.f32 %v1026_v26, 0.0  ;;  %1577 = vmatprep.subr.bf16.mxu0 %v6379_v15  ;;  %1618 = vmatprep.subr.bf16.mxu1 %v6381_v19  ;;  %v6355_v52 = vcombine.high %v1132_v45, %v1136_v38  ;;  %v6354_v60 = vcombine.low %v1132_v45, %v1136_v38  ;;  %v1101_v15 = vld [vmem:[#allocation10 + $0x1e0] sm:$0xff]  ;;  %v1090_v25 = vld [vmem:[#allocation10 + $0x188] sm:$0xff] }
 0x259   :  { %1607 = vmatprep.mubr.bf16.mxu0 %v7529_v47  ;;  %1648 = vmatprep.mubr.bf16.mxu1 %v7529_v47  ;;  %v6330_v19 = vcombine.low %v1108_v5, %v1112_v6  ;;  %v6447_v21 = vcombine.high %v1097_v14, %v1101_v15  ;;  %v6449_v22 = vcombine.high %v1098_v16, %v1102_v17  ;;  %v1093_v24 = vld [vmem:[#allocation10 + $0x1a0] sm:$0xff]  ;;  %v1094_v26 = vld [vmem:[#allocation10 + $0x1a8] sm:$0xff] }
 0x25a   :  { %v7722_v39 = vpack.c.bf16 %v1034_v32, %v1033_v28  ;;  %v6441_v28 = vcombine.high %v1090_v25, %v1094_v26  ;;  %v1081_v32 = vld [vmem:[#allocation10 + $0x140] sm:$0xff]  ;;  %v1082_v34 = vld [vmem:[#allocation10 + $0x148] sm:$0xff]  ;;  %v6438_v36 = vcombine.low %v1089_v23, %v1093_v24  ;;  %v6440_v37 = vcombine.low %v1090_v25, %v1094_v26 }
 0x25b   :  { %1578 = vmatpush1.bf16.msra.mxu0 %v6378_v27  ;;  %1619 = vmatpush1.bf16.msra.mxu1 %v6380_v29  ;;  %v6446_v27 = vcombine.low %v1097_v14, %v1101_v15  ;;  %v6448_v29 = vcombine.low %v1098_v16, %v1102_v17  ;;  %v1086_v35 = vld [vmem:[#allocation10 + $0x168] sm:$0xff] }
 0x25c   :  { %1579 = vmatprep.subr.bf16.mxu0 %v6371_v30  ;;  %1620 = vmatprep.subr.bf16.mxu1 %v6373_v33  ;;  %v6439_v30 = vcombine.high %v1089_v23, %v1093_v24  ;;  %v1085_v33 = vld [vmem:[#allocation10 + $0x160] sm:$0xff]  ;;  %v1074_v45 = vld [vmem:[#allocation10 + $0x108] sm:$0xff]  ;;  %v1104_v23 = vld [vmem:[#allocation10 + $0x1f8] sm:$0xff] }
 0x25d   :  { %v1078_v38 = vld [vmem:[#allocation10 + $0x128] sm:$0xff]  ;;  %v6430_v42 = vcombine.low %v1081_v32, %v1085_v33 }
 0x25e   :  { %v6424_v57 = vcombine.low %v1074_v45, %v1078_v38  ;;  %v1054_v5 = vld [vmem:[#allocation10 + $0x68] sm:$0xff] }
 0x25f   :  { %1580 = vmatpush1.bf16.msra.mxu0 %v6370_v40  ;;  %1621 = vmatpush1.bf16.msra.mxu1 %v6372_v41  ;;  %v6431_v40 = vcombine.high %v1081_v32, %v1085_v33  ;;  %v6433_v41 = vcombine.high %v1082_v34, %v1086_v35  ;;  %v1046_v14 = vld [vmem:[#allocation10 + $0x28] sm:$0xff]  ;;  %v1096_v32 = vld [vmem:[#allocation10 + $0x1b8] sm:$0xff] }
 0x260   :  { %1581 = vmatprep.subr.bf16.mxu0 %v6363_v43  ;;  %1622 = vmatprep.subr.bf16.mxu1 %v6365_v44  ;;  %v1073_v43 = vld [vmem:[#allocation10 + $0x100] sm:$0xff] }
 0x261   :  { %v1077_v44 = vld [vmem:[#allocation10 + $0x120] sm:$0xff] }
 0x262   :  { %v6423_v46 = vcombine.high %v1073_v43, %v1077_v44  ;;  %v6422_v56 = vcombine.low %v1073_v43, %v1077_v44  ;;  %v1088_v43 = vld [vmem:[#allocation10 + $0x178] sm:$0xff] }
 0x263   :  { %1582 = vmatpush1.bf16.msra.mxu0 %v6362_v48  ;;  %1623 = vmatpush1.bf16.msra.mxu1 %v6364_v50  ;;  %v6425_v48 = vcombine.high %v1074_v45, %v1078_v38  ;;  %v1065_v50 = vld [vmem:[#allocation10 + $0xc0] sm:$0xff] }
 0x264   :  { %1583 = vmatprep.subr.bf16.mxu0 %v6355_v52  ;;  %1624 = vmatprep.subr.bf16.mxu1 %v6357_v53  ;;  %v1069_v52 = vld [vmem:[#allocation10 + $0xe0] sm:$0xff]  ;;  %v1066_v53 = vld [vmem:[#allocation10 + $0xc8] sm:$0xff] }
 0x265   :  { %v6415_v58 = vcombine.high %v1065_v50, %v1069_v52  ;;  %v6414_v59 = vcombine.low %v1065_v50, %v1069_v52  ;;  %v6416_v62 = vcombine.low %v1066_v53, %v1070_v54  ;;  %v1080_v50 = vld [vmem:[#allocation10 + $0x138] sm:$0xff] }
 0x267   :  { %1584 = vmatpush1.bf16.msra.mxu0 %v6354_v60  ;;  %1625 = vmatpush1.bf16.msra.mxu1 %v6356_v61  ;;  %v6417_v60 = vcombine.high %v1066_v53, %v1070_v54  ;;  %v1057_v61 = vld [vmem:[#allocation10 + $0x80] sm:$0xff] }
 0x268   :  { %1585 = vmatprep.subr.bf16.mxu0 %v6347_v49  ;;  %1626 = vmatprep.subr.bf16.mxu1 %v6349_v55  ;;  %v1061_v49 = vld [vmem:[#allocation10 + $0xa0] sm:$0xff]  ;;  %v1058_v55 = vld [vmem:[#allocation10 + $0x88] sm:$0xff] }
 0x269   :  { %v6407_v63 = vcombine.high %v1057_v61, %v1061_v49  ;;  %v6406_v6 = vcombine.low %v1057_v61, %v1061_v49  ;;  %v6408_v7 = vcombine.low %v1058_v55, %v1062_v51  ;;  %v1072_v61 = vld [vmem:[#allocation10 + $0xf8] sm:$0xff] }
 0x26b   :  { %1586 = vmatpush1.bf16.msra.mxu0 %v6346_v1  ;;  %1627 = vmatpush1.bf16.msra.mxu1 %v6348_v2  ;;  %v6409_v1 = vcombine.high %v1058_v55, %v1062_v51  ;;  %v1049_v2 = vld [vmem:[#allocation10 + $0x40] sm:$0xff] }
 0x26c   :  { %1587 = vmatprep.subr.bf16.mxu0 %v6339_v3  ;;  %1628 = vmatprep.subr.bf16.mxu1 %v6341_v4  ;;  %v1053_v3 = vld [vmem:[#allocation10 + $0x60] sm:$0xff]  ;;  %v1050_v4 = vld [vmem:[#allocation10 + $0x48] sm:$0xff] }
 0x26d   :  { %v6399_v8 = vcombine.high %v1049_v2, %v1053_v3  ;;  %v6398_v15 = vcombine.low %v1049_v2, %v1053_v3  ;;  %v6400_v16 = vcombine.low %v1050_v4, %v1054_v5  ;;  %v1064_v2 = vld [vmem:[#allocation10 + $0xb8] sm:$0xff] }
 0x26f   :  { %1588 = vmatpush1.bf16.msra.mxu0 %v6338_v9  ;;  %1629 = vmatpush1.bf16.msra.mxu1 %v6340_v11  ;;  %v6401_v9 = vcombine.high %v1050_v4, %v1054_v5  ;;  %v1041_v11 = vld [vmem:[#allocation10] sm:$0xff] }
 0x270   :  { %1589 = vmatprep.subr.bf16.mxu0 %v6331_v12  ;;  %1630 = vmatprep.subr.bf16.mxu1 %v6333_v13  ;;  %v1045_v12 = vld [vmem:[#allocation10 + $0x20] sm:$0xff]  ;;  %v1042_v13 = vld [vmem:[#allocation10 + $0x8] sm:$0xff] }
 0x271   :  { %v6391_v17 = vcombine.high %v1041_v11, %v1045_v12  ;;  %v6390_v24 = vcombine.low %v1041_v11, %v1045_v12  ;;  %v6392_v25 = vcombine.low %v1042_v13, %v1046_v14  ;;  %v1056_v11 = vld [vmem:[#allocation10 + $0x78] sm:$0xff] }
 0x273   :  { %1590 = vmatpush1.bf16.msra.mxu0 %v6330_v19  ;;  %1631 = vmatpush1.bf16.msra.mxu1 %v6332_v20  ;;  %v6393_v19 = vcombine.high %v1042_v13, %v1046_v14  ;;  %v1099_v20 = vld [vmem:[#allocation10 + $0x1d0] sm:$0xff] }
 0x274   :  { %1977 = vmatprep.subr.bf16.mxu0 %v6447_v21  ;;  %2018 = vmatprep.subr.bf16.mxu1 %v6449_v22  ;;  %v1103_v21 = vld [vmem:[#allocation10 + $0x1f0] sm:$0xff]  ;;  %v1100_v22 = vld [vmem:[#allocation10 + $0x1d8] sm:$0xff] }
 0x275   :  { %v6451_v26 = vcombine.high %v1099_v20, %v1103_v21  ;;  %v6450_v33 = vcombine.low %v1099_v20, %v1103_v21  ;;  %v1048_v20 = vld [vmem:[#allocation10 + $0x38] sm:$0xff] }
 0x276   :  { %1608 = vmatmul.mubr.bf16.vlgmr.msra.gmra.mxu0 %v7708_v18  ;;  %1649 = vmatmul.mubr.bf16.vlgmr.msra.gmra.mxu1 %v7708_v18  ;;  %v6432_v18 = vcombine.low %v1082_v34, %v1086_v35  ;;  %v6452_v34 = vcombine.low %v1100_v22, %v1104_v23 }
 0x277   :  { %1978 = vmatpush1.bf16.msra.mxu0 %v6446_v27  ;;  %2019 = vmatpush1.bf16.msra.mxu1 %v6448_v29  ;;  %v6453_v27 = vcombine.high %v1100_v22, %v1104_v23  ;;  %v1091_v29 = vld [vmem:[#allocation10 + $0x190] sm:$0xff] }
 0x278   :  { %1979 = vmatprep.subr.bf16.mxu0 %v6439_v30  ;;  %2020 = vmatprep.subr.bf16.mxu1 %v6441_v28  ;;  %v1095_v30 = vld [vmem:[#allocation10 + $0x1b0] sm:$0xff]  ;;  %v1092_v28 = vld [vmem:[#allocation10 + $0x198] sm:$0xff] }
 0x279   :  { %2009 = vmatprep.mubr.bf16.mxu0 %v7529_v47  ;;  %2050 = vmatprep.mubr.bf16.mxu1 %v7529_v47  ;;  %v6443_v35 = vcombine.high %v1091_v29, %v1095_v30  ;;  %v6442_v44 = vcombine.low %v1091_v29, %v1095_v30  ;;  %v6444_v45 = vcombine.low %v1092_v28, %v1096_v32  ;;  %v2203_v29 = vld [vmem:[#allocation10 + $0x5e8] sm:$0xff] }
 0x27b   :  { %1980 = vmatpush1.bf16.msra.mxu0 %v6438_v36  ;;  %2021 = vmatpush1.bf16.msra.mxu1 %v6440_v37  ;;  %v6445_v36 = vcombine.high %v1092_v28, %v1096_v32  ;;  %v1083_v37 = vld [vmem:[#allocation10 + $0x150] sm:$0xff] }
 0x27c   :  { %1981 = vmatprep.subr.bf16.mxu0 %v6431_v40  ;;  %2022 = vmatprep.subr.bf16.mxu1 %v6433_v41  ;;  %v1087_v40 = vld [vmem:[#allocation10 + $0x170] sm:$0xff]  ;;  %v1084_v41 = vld [vmem:[#allocation10 + $0x158] sm:$0xff] }
 0x27d   :  { %v6435_v38 = vcombine.high %v1083_v37, %v1087_v40  ;;  %v6434_v52 = vcombine.low %v1083_v37, %v1087_v40  ;;  %v6436_v53 = vcombine.low %v1084_v41, %v1088_v43  ;;  %v2195_v37 = vld [vmem:[#allocation10 + $0x5a8] sm:$0xff] }
 0x27f   :  { %1982 = vmatpush1.bf16.msra.mxu0 %v6430_v42  ;;  %2023 = vmatpush1.bf16.msra.mxu1 %v6432_v18  ;;  %v6437_v42 = vcombine.high %v1084_v41, %v1088_v43  ;;  %v1075_v18 = vld [vmem:[#allocation10 + $0x110] sm:$0xff] }
 0x280   :  { %1983 = vmatprep.subr.bf16.mxu0 %v6423_v46  ;;  %2024 = vmatprep.subr.bf16.mxu1 %v6425_v48  ;;  %v1079_v46 = vld [vmem:[#allocation10 + $0x130] sm:$0xff]  ;;  %v1076_v48 = vld [vmem:[#allocation10 + $0x118] sm:$0xff] }
 0x281   :  { %v6427_v54 = vcombine.high %v1075_v18, %v1079_v46  ;;  %v6426_v49 = vcombine.low %v1075_v18, %v1079_v46  ;;  %v6428_v55 = vcombine.low %v1076_v48, %v1080_v50  ;;  %v2187_v18 = vld [vmem:[#allocation10 + $0x568] sm:$0xff] }
 0x283   :  { %1984 = vmatpush1.bf16.msra.mxu0 %v6422_v56  ;;  %2025 = vmatpush1.bf16.msra.mxu1 %v6424_v57  ;;  %v6429_v56 = vcombine.high %v1076_v48, %v1080_v50  ;;  %v1067_v57 = vld [vmem:[#allocation10 + $0xd0] sm:$0xff] }
 0x284   :  { %1985 = vmatprep.subr.bf16.mxu0 %v6415_v58  ;;  %2026 = vmatprep.subr.bf16.mxu1 %v6417_v60  ;;  %v1071_v58 = vld [vmem:[#allocation10 + $0xf0] sm:$0xff]  ;;  %v1068_v60 = vld [vmem:[#allocation10 + $0xd8] sm:$0xff] }
 0x285   :  { %v6419_v51 = vcombine.high %v1067_v57, %v1071_v58  ;;  %v6418_v3 = vcombine.low %v1067_v57, %v1071_v58  ;;  %v6420_v4 = vcombine.low %v1068_v60, %v1072_v61  ;;  %v2179_v57 = vld [vmem:[#allocation10 + $0x528] sm:$0xff] }
 0x287   :  { %1986 = vmatpush1.bf16.msra.mxu0 %v6414_v59  ;;  %2027 = vmatpush1.bf16.msra.mxu1 %v6416_v62  ;;  %v6421_v59 = vcombine.high %v1068_v60, %v1072_v61  ;;  %v1059_v62 = vld [vmem:[#allocation10 + $0x90] sm:$0xff] }
 0x288   :  { %1987 = vmatprep.subr.bf16.mxu0 %v6407_v63  ;;  %2028 = vmatprep.subr.bf16.mxu1 %v6409_v1  ;;  %v1063_v63 = vld [vmem:[#allocation10 + $0xb0] sm:$0xff]  ;;  %v1060_v1 = vld [vmem:[#allocation10 + $0x98] sm:$0xff] }
 0x289   :  { %v6411_v5 = vcombine.high %v1059_v62, %v1063_v63  ;;  %v6410_v12 = vcombine.low %v1059_v62, %v1063_v63  ;;  %v6412_v13 = vcombine.low %v1060_v1, %v1064_v2 }
 0x28b   :  { %1988 = vmatpush1.bf16.msra.mxu0 %v6406_v6  ;;  %2029 = vmatpush1.bf16.msra.mxu1 %v6408_v7  ;;  %v6413_v6 = vcombine.high %v1060_v1, %v1064_v2  ;;  %v1051_v7 = vld [vmem:[#allocation10 + $0x50] sm:$0xff] }
 0x28c   :  { %1989 = vmatprep.subr.bf16.mxu0 %v6399_v8  ;;  %2030 = vmatprep.subr.bf16.mxu1 %v6401_v9  ;;  %v1055_v8 = vld [vmem:[#allocation10 + $0x70] sm:$0xff]  ;;  %v1052_v9 = vld [vmem:[#allocation10 + $0x58] sm:$0xff] }
 0x28d   :  { %v6403_v14 = vcombine.high %v1051_v7, %v1055_v8  ;;  %v6402_v21 = vcombine.low %v1051_v7, %v1055_v8  ;;  %v6404_v22 = vcombine.low %v1052_v9, %v1056_v11 }
 0x28f   :  { %1990 = vmatpush1.bf16.msra.mxu0 %v6398_v15  ;;  %2031 = vmatpush1.bf16.msra.mxu1 %v6400_v16  ;;  %v6405_v15 = vcombine.high %v1052_v9, %v1056_v11  ;;  %v1043_v16 = vld [vmem:[#allocation10 + $0x10] sm:$0xff] }
 0x290   :  { %1991 = vmatprep.subr.bf16.mxu0 %v6391_v17  ;;  %2032 = vmatprep.subr.bf16.mxu1 %v6393_v19  ;;  %v1047_v17 = vld [vmem:[#allocation10 + $0x30] sm:$0xff]  ;;  %v1044_v19 = vld [vmem:[#allocation10 + $0x18] sm:$0xff] }
 0x291   :  { %v6395_v23 = vcombine.high %v1043_v16, %v1047_v17  ;;  %v6394_v30 = vcombine.low %v1043_v16, %v1047_v17  ;;  %v6396_v28 = vcombine.low %v1044_v19, %v1048_v20 }
 0x293   :  { %1992 = vmatpush1.bf16.msra.mxu0 %v6390_v24  ;;  %2033 = vmatpush1.bf16.msra.mxu1 %v6392_v25  ;;  %v6397_v24 = vcombine.high %v1044_v19, %v1048_v20  ;;  %v2198_v25 = vld [vmem:[#allocation10 + $0x5c0] sm:$0xff] }
 0x294   :  { %2059 = vmatprep.subr.bf16.mxu0 %v6451_v26  ;;  %2100 = vmatprep.subr.bf16.mxu1 %v6453_v27  ;;  %v2202_v26 = vld [vmem:[#allocation10 + $0x5e0] sm:$0xff]  ;;  %v2199_v27 = vld [vmem:[#allocation10 + $0x5c8] sm:$0xff] }
 0x295   :  { %v6511_v32 = vcombine.high %v2198_v25, %v2202_v26  ;;  %v6510_v40 = vcombine.low %v2198_v25, %v2202_v26  ;;  %v6512_v41 = vcombine.low %v2199_v27, %v2203_v29 }
 0x296   :  { %2010 = vmatmul.mubr.bf16.vlgmr.msra.gmra.mxu0 %v7705_v10  ;;  %2051 = vmatmul.mubr.bf16.vlgmr.msra.gmra.mxu1 %v7705_v10 }
 0x297   :  { %2060 = vmatpush1.bf16.msra.mxu0 %v6450_v33  ;;  %2101 = vmatpush1.bf16.msra.mxu1 %v6452_v34  ;;  %v6513_v33 = vcombine.high %v2199_v27, %v2203_v29  ;;  %v2190_v34 = vld [vmem:[#allocation10 + $0x580] sm:$0xff] }
 0x298   :  { %2061 = vmatprep.subr.bf16.mxu0 %v6443_v35  ;;  %2102 = vmatprep.subr.bf16.mxu1 %v6445_v36  ;;  %v2194_v35 = vld [vmem:[#allocation10 + $0x5a0] sm:$0xff]  ;;  %v2191_v36 = vld [vmem:[#allocation10 + $0x588] sm:$0xff] }
 0x299   :  { %2091 = vmatprep.mubr.bf16.mxu0 %v7529_v47  ;;  %2132 = vmatprep.mubr.bf16.mxu1 %v7529_v47  ;;  %v6503_v43 = vcombine.high %v2190_v34, %v2194_v35  ;;  %v6502_v46 = vcombine.low %v2190_v34, %v2194_v35  ;;  %v6504_v48 = vcombine.low %v2191_v36, %v2195_v37 }
 0x29b   :  { %2062 = vmatpush1.bf16.msra.mxu0 %v6442_v44  ;;  %2103 = vmatpush1.bf16.msra.mxu1 %v6444_v45  ;;  %v6505_v44 = vcombine.high %v2191_v36, %v2195_v37  ;;  %v2182_v45 = vld [vmem:[#allocation10 + $0x540] sm:$0xff] }
 0x29c   :  { %2063 = vmatprep.subr.bf16.mxu0 %v6435_v38  ;;  %2104 = vmatprep.subr.bf16.mxu1 %v6437_v42  ;;  %v2186_v38 = vld [vmem:[#allocation10 + $0x560] sm:$0xff]  ;;  %v2183_v42 = vld [vmem:[#allocation10 + $0x548] sm:$0xff] }
 0x29d   :  { %v6495_v50 = vcombine.high %v2182_v45, %v2186_v38  ;;  %v6494_v58 = vcombine.low %v2182_v45, %v2186_v38 }
 0x29f   :  { %2064 = vmatpush1.bf16.msra.mxu0 %v6434_v52  ;;  %2105 = vmatpush1.bf16.msra.mxu1 %v6436_v53  ;;  %v6497_v52 = vcombine.high %v2183_v42, %v2187_v18  ;;  %v2174_v53 = vld [vmem:[#allocation10 + $0x500] sm:$0xff] }
 0x2a0   :  { %2065 = vmatprep.subr.bf16.mxu0 %v6427_v54  ;;  %2106 = vmatprep.subr.bf16.mxu1 %v6429_v56  ;;  %v2178_v54 = vld [vmem:[#allocation10 + $0x520] sm:$0xff]  ;;  %v2175_v56 = vld [vmem:[#allocation10 + $0x508] sm:$0xff] }
 0x2a1   :  { %v6487_v60 = vcombine.high %v2174_v53, %v2178_v54  ;;  %v6489_v61 = vcombine.high %v2175_v56, %v2179_v57  ;;  %v6486_v62 = vcombine.low %v2174_v53, %v2178_v54  ;;  %v6488_v63 = vcombine.low %v2175_v56, %v2179_v57 }
 0x2a3   :  { %2066 = vmatpush1.bf16.msra.mxu0 %v6426_v49  ;;  %2107 = vmatpush1.bf16.msra.mxu1 %v6428_v55  ;;  %v2166_v49 = vld [vmem:[#allocation10 + $0x4c0] sm:$0xff] }
 0x2a4   :  { %2067 = vmatprep.subr.bf16.mxu0 %v6419_v51  ;;  %2108 = vmatprep.subr.bf16.mxu1 %v6421_v59  ;;  %v2170_v55 = vld [vmem:[#allocation10 + $0x4e0] sm:$0xff]  ;;  %v2167_v51 = vld [vmem:[#allocation10 + $0x4c8] sm:$0xff] }
 0x2a5   :  { %v2171_v59 = vld [vmem:[#allocation10 + $0x4e8] sm:$0xff]  ;;  %v6479_v1 = vcombine.high %v2166_v49, %v2170_v55  ;;  %v6478_v7 = vcombine.low %v2166_v49, %v2170_v55 }
 0x2a6   :  { %v6481_v2 = vcombine.high %v2167_v51, %v2171_v59  ;;  %v6480_v8 = vcombine.low %v2167_v51, %v2171_v59 }
 0x2a7   :  { %2068 = vmatpush1.bf16.msra.mxu0 %v6418_v3  ;;  %2109 = vmatpush1.bf16.msra.mxu1 %v6420_v4  ;;  %v2158_v3 = vld [vmem:[#allocation10 + $0x480] sm:$0xff] }
 0x2a8   :  { %2069 = vmatprep.subr.bf16.mxu0 %v6411_v5  ;;  %2110 = vmatprep.subr.bf16.mxu1 %v6413_v6  ;;  %v2162_v4 = vld [vmem:[#allocation10 + $0x4a0] sm:$0xff]  ;;  %v2159_v5 = vld [vmem:[#allocation10 + $0x488] sm:$0xff] }
 0x2a9   :  { %v2163_v6 = vld [vmem:[#allocation10 + $0x4a8] sm:$0xff]  ;;  %v6471_v9 = vcombine.high %v2158_v3, %v2162_v4  ;;  %v6470_v16 = vcombine.low %v2158_v3, %v2162_v4 }
 0x2aa   :  { %v6473_v11 = vcombine.high %v2159_v5, %v2163_v6  ;;  %v6472_v17 = vcombine.low %v2159_v5, %v2163_v6 }
 0x2ab   :  { %2070 = vmatpush1.bf16.msra.mxu0 %v6410_v12  ;;  %2111 = vmatpush1.bf16.msra.mxu1 %v6412_v13  ;;  %v2150_v12 = vld [vmem:[#allocation10 + $0x440] sm:$0xff] }
 0x2ac   :  { %2071 = vmatprep.subr.bf16.mxu0 %v6403_v14  ;;  %2112 = vmatprep.subr.bf16.mxu1 %v6405_v15  ;;  %v2154_v13 = vld [vmem:[#allocation10 + $0x460] sm:$0xff]  ;;  %v2151_v14 = vld [vmem:[#allocation10 + $0x448] sm:$0xff] }
 0x2ad   :  { %v2155_v15 = vld [vmem:[#allocation10 + $0x468] sm:$0xff]  ;;  %v6463_v19 = vcombine.high %v2150_v12, %v2154_v13  ;;  %v6462_v25 = vcombine.low %v2150_v12, %v2154_v13 }
 0x2ae   :  { %v6465_v20 = vcombine.high %v2151_v14, %v2155_v15  ;;  %v6464_v26 = vcombine.low %v2151_v14, %v2155_v15 }
 0x2af   :  { %2072 = vmatpush1.bf16.msra.mxu0 %v6402_v21  ;;  %2113 = vmatpush1.bf16.msra.mxu1 %v6404_v22  ;;  %v2142_v21 = vld [vmem:[#allocation10 + $0x400] sm:$0xff] }
 0x2b0   :  { %2073 = vmatprep.subr.bf16.mxu0 %v6395_v23  ;;  %2114 = vmatprep.subr.bf16.mxu1 %v6397_v24  ;;  %v2146_v22 = vld [vmem:[#allocation10 + $0x420] sm:$0xff]  ;;  %v2143_v23 = vld [vmem:[#allocation10 + $0x408] sm:$0xff] }
 0x2b1   :  { %v2147_v24 = vld [vmem:[#allocation10 + $0x428] sm:$0xff]  ;;  %v6455_v27 = vcombine.high %v2142_v21, %v2146_v22  ;;  %v6454_v34 = vcombine.low %v2142_v21, %v2146_v22 }
 0x2b2   :  { %v6457_v29 = vcombine.high %v2143_v23, %v2147_v24  ;;  %v6456_v35 = vcombine.low %v2143_v23, %v2147_v24 }
 0x2b3   :  { %2074 = vmatpush1.bf16.msra.mxu0 %v6394_v30  ;;  %2115 = vmatpush1.bf16.msra.mxu1 %v6396_v28  ;;  %v2200_v30 = vld [vmem:[#allocation10 + $0x5d0] sm:$0xff] }
 0x2b4   :  { %2526 = vmatprep.subr.bf16.mxu0 %v6511_v32  ;;  %2567 = vmatprep.subr.bf16.mxu1 %v6513_v33  ;;  %v2204_v28 = vld [vmem:[#allocation10 + $0x5f0] sm:$0xff]  ;;  %v2201_v32 = vld [vmem:[#allocation10 + $0x5d8] sm:$0xff] }
 0x2b5   :  { %v2205_v33 = vld [vmem:[#allocation10 + $0x5f8] sm:$0xff]  ;;  %v6515_v36 = vcombine.high %v2200_v30, %v2204_v28  ;;  %v6514_v45 = vcombine.low %v2200_v30, %v2204_v28 }
 0x2b6   :  { %2092 = vmatmul.mubr.bf16.vlgmr.msra.gmra.mxu0 %v7705_v10  ;;  %2133 = vmatmul.mubr.bf16.vlgmr.msra.gmra.mxu1 %v7705_v10  ;;  %v6496_v10 = vcombine.low %v2183_v42, %v2187_v18  ;;  %v6517_v37 = vcombine.high %v2201_v32, %v2205_v33  ;;  %v6516_v38 = vcombine.low %v2201_v32, %v2205_v33 }
 0x2b7   :  { %2527 = vmatpush1.bf16.msra.mxu0 %v6510_v40  ;;  %2568 = vmatpush1.bf16.msra.mxu1 %v6512_v41  ;;  %v2192_v40 = vld [vmem:[#allocation10 + $0x590] sm:$0xff] }
 0x2b8   :  { %2528 = vmatprep.subr.bf16.mxu0 %v6503_v43  ;;  %2569 = vmatprep.subr.bf16.mxu1 %v6505_v44  ;;  %v2196_v41 = vld [vmem:[#allocation10 + $0x5b0] sm:$0xff]  ;;  %v2193_v43 = vld [vmem:[#allocation10 + $0x598] sm:$0xff] }
 0x2b9   :  { %2558 = vmatprep.mubr.bf16.mxu0 %v7529_v47  ;;  %2599 = vmatprep.mubr.bf16.mxu1 %v7529_v47  ;;  %v2197_v44 = vld [vmem:[#allocation10 + $0x5b8] sm:$0xff]  ;;  %v6507_v42 = vcombine.high %v2192_v40, %v2196_v41  ;;  %v6506_v53 = vcombine.low %v2192_v40, %v2196_v41 }
 0x2ba   :  { %v6509_v18 = vcombine.high %v2193_v43, %v2197_v44  ;;  %v6508_v54 = vcombine.low %v2193_v43, %v2197_v44 }
 0x2bb   :  { %2529 = vmatpush1.bf16.msra.mxu0 %v6502_v46  ;;  %2570 = vmatpush1.bf16.msra.mxu1 %v6504_v48  ;;  %v2184_v46 = vld [vmem:[#allocation10 + $0x550] sm:$0xff] }
 0x2bc   :  { %2530 = vmatprep.subr.bf16.mxu0 %v6495_v50  ;;  %2571 = vmatprep.subr.bf16.mxu1 %v6497_v52  ;;  %v2188_v48 = vld [vmem:[#allocation10 + $0x570] sm:$0xff]  ;;  %v2185_v50 = vld [vmem:[#allocation10 + $0x558] sm:$0xff] }
 0x2bd   :  { %v2189_v52 = vld [vmem:[#allocation10 + $0x578] sm:$0xff]  ;;  %v6499_v56 = vcombine.high %v2184_v46, %v2188_v48  ;;  %v6498_v49 = vcombine.low %v2184_v46, %v2188_v48 }
 0x2be   :  { %v6501_v57 = vcombine.high %v2185_v50, %v2189_v52  ;;  %v6500_v55 = vcombine.low %v2185_v50, %v2189_v52 }
 0x2bf   :  { %2531 = vmatpush1.bf16.msra.mxu0 %v6494_v58  ;;  %2572 = vmatpush1.bf16.msra.mxu1 %v6496_v10  ;;  %v2176_v58 = vld [vmem:[#allocation10 + $0x510] sm:$0xff] }
 0x2c0   :  { %2532 = vmatprep.subr.bf16.mxu0 %v6487_v60  ;;  %2573 = vmatprep.subr.bf16.mxu1 %v6489_v61  ;;  %v2180_v10 = vld [vmem:[#allocation10 + $0x530] sm:$0xff]  ;;  %v2177_v60 = vld [vmem:[#allocation10 + $0x518] sm:$0xff] }
 0x2c1   :  { %v2181_v61 = vld [vmem:[#allocation10 + $0x538] sm:$0xff]  ;;  %v6491_v51 = vcombine.high %v2176_v58, %v2180_v10  ;;  %v6490_v3 = vcombine.low %v2176_v58, %v2180_v10 }
 0x2c2   :  { %v6493_v59 = vcombine.high %v2177_v60, %v2181_v61  ;;  %v6492_v4 = vcombine.low %v2177_v60, %v2181_v61 }
 0x2c3   :  { %2533 = vmatpush1.bf16.msra.mxu0 %v6486_v62  ;;  %2574 = vmatpush1.bf16.msra.mxu1 %v6488_v63  ;;  %v2168_v62 = vld [vmem:[#allocation10 + $0x4d0] sm:$0xff] }
 0x2c4   :  { %2534 = vmatprep.subr.bf16.mxu0 %v6479_v1  ;;  %2575 = vmatprep.subr.bf16.mxu1 %v6481_v2  ;;  %v2172_v63 = vld [vmem:[#allocation10 + $0x4f0] sm:$0xff]  ;;  %v2169_v1 = vld [vmem:[#allocation10 + $0x4d8] sm:$0xff] }
 0x2c5   :  { %v2173_v2 = vld [vmem:[#allocation10 + $0x4f8] sm:$0xff]  ;;  %v6483_v5 = vcombine.high %v2168_v62, %v2172_v63  ;;  %v6482_v12 = vcombine.low %v2168_v62, %v2172_v63 }
 0x2c6   :  { %v6485_v6 = vcombine.high %v2169_v1, %v2173_v2  ;;  %v6484_v13 = vcombine.low %v2169_v1, %v2173_v2 }
 0x2c7   :  { %2535 = vmatpush1.bf16.msra.mxu0 %v6478_v7  ;;  %2576 = vmatpush1.bf16.msra.mxu1 %v6480_v8  ;;  %v2160_v7 = vld [vmem:[#allocation10 + $0x490] sm:$0xff] }
 0x2c8   :  { %2536 = vmatprep.subr.bf16.mxu0 %v6471_v9  ;;  %2577 = vmatprep.subr.bf16.mxu1 %v6473_v11  ;;  %v2164_v8 = vld [vmem:[#allocation10 + $0x4b0] sm:$0xff]  ;;  %v2161_v9 = vld [vmem:[#allocation10 + $0x498] sm:$0xff] }
 0x2c9   :  { %v2165_v11 = vld [vmem:[#allocation10 + $0x4b8] sm:$0xff]  ;;  %v6475_v14 = vcombine.high %v2160_v7, %v2164_v8  ;;  %v6474_v21 = vcombine.low %v2160_v7, %v2164_v8 }
 0x2ca   :  { %v6477_v15 = vcombine.high %v2161_v9, %v2165_v11  ;;  %v6476_v22 = vcombine.low %v2161_v9, %v2165_v11 }
 0x2cb   :  { %2537 = vmatpush1.bf16.msra.mxu0 %v6470_v16  ;;  %2578 = vmatpush1.bf16.msra.mxu1 %v6472_v17  ;;  %v2152_v16 = vld [vmem:[#allocation10 + $0x450] sm:$0xff] }
 0x2cc   :  { %2538 = vmatprep.subr.bf16.mxu0 %v6463_v19  ;;  %2579 = vmatprep.subr.bf16.mxu1 %v6465_v20  ;;  %v2156_v17 = vld [vmem:[#allocation10 + $0x470] sm:$0xff]  ;;  %v2153_v19 = vld [vmem:[#allocation10 + $0x458] sm:$0xff] }
 0x2cd   :  { %v2157_v20 = vld [vmem:[#allocation10 + $0x478] sm:$0xff]  ;;  %v6467_v23 = vcombine.high %v2152_v16, %v2156_v17  ;;  %v6466_v30 = vcombine.low %v2152_v16, %v2156_v17 }
 0x2ce   :  { %v6469_v24 = vcombine.high %v2153_v19, %v2157_v20  ;;  %v6468_v28 = vcombine.low %v2153_v19, %v2157_v20 }
 0x2cf   :  { %2539 = vmatpush1.bf16.msra.mxu0 %v6462_v25  ;;  %2580 = vmatpush1.bf16.msra.mxu1 %v6464_v26  ;;  %v2144_v25 = vld [vmem:[#allocation10 + $0x410] sm:$0xff] }
 0x2d0   :  { %2540 = vmatprep.subr.bf16.mxu0 %v6455_v27  ;;  %2581 = vmatprep.subr.bf16.mxu1 %v6457_v29  ;;  %v2148_v26 = vld [vmem:[#allocation10 + $0x430] sm:$0xff]  ;;  %v2145_v27 = vld [vmem:[#allocation10 + $0x418] sm:$0xff] }
 0x2d1   :  { %v2149_v29 = vld [vmem:[#allocation10 + $0x438] sm:$0xff]  ;;  %v6459_v32 = vcombine.high %v2144_v25, %v2148_v26  ;;  %v6458_v40 = vcombine.low %v2144_v25, %v2148_v26 }
 0x2d2   :  { %v6461_v33 = vcombine.high %v2145_v27, %v2149_v29  ;;  %v6460_v41 = vcombine.low %v2145_v27, %v2149_v29 }
 0x2d3   :  { %2541 = vmatpush1.bf16.msra.mxu0 %v6454_v34  ;;  %2582 = vmatpush1.bf16.msra.mxu1 %v6456_v35  ;;  %v2755_v34 = vld [vmem:[#allocation10 + $0x7c0] sm:$0xff] }
 0x2d4   :  { %2608 = vmatprep.subr.bf16.mxu0 %v6515_v36  ;;  %2649 = vmatprep.subr.bf16.mxu1 %v6517_v37  ;;  %v2759_v35 = vld [vmem:[#allocation10 + $0x7e0] sm:$0xff]  ;;  %v2756_v36 = vld [vmem:[#allocation10 + $0x7c8] sm:$0xff] }
 0x2d5   :  { %v2760_v37 = vld [vmem:[#allocation10 + $0x7e8] sm:$0xff]  ;;  %v6575_v43 = vcombine.high %v2755_v34, %v2759_v35  ;;  %v6574_v46 = vcombine.low %v2755_v34, %v2759_v35 }
 0x2d6   :  { %2559 = vmatmul.mubr.bf16.vlgmr.msra.gmra.mxu0 %v7703_v0  ;;  %2600 = vmatmul.mubr.bf16.vlgmr.msra.gmra.mxu1 %v7703_v0  ;;  %v6577_v44 = vcombine.high %v2756_v36, %v2760_v37  ;;  %v6576_v48 = vcombine.low %v2756_v36, %v2760_v37 }
 0x2d7   :  { %2609 = vmatpush1.bf16.msra.mxu0 %v6514_v45  ;;  %2650 = vmatpush1.bf16.msra.mxu1 %v6516_v38  ;;  %v2747_v45 = vld [vmem:[#allocation10 + $0x780] sm:$0xff] }
 0x2d8   :  { %2610 = vmatprep.subr.bf16.mxu0 %v6507_v42  ;;  %2651 = vmatprep.subr.bf16.mxu1 %v6509_v18  ;;  %v2751_v38 = vld [vmem:[#allocation10 + $0x7a0] sm:$0xff]  ;;  %v2748_v42 = vld [vmem:[#allocation10 + $0x788] sm:$0xff] }
 0x2d9   :  { %2640 = vmatprep.mubr.bf16.mxu0 %v7529_v47  ;;  %2681 = vmatprep.mubr.bf16.mxu1 %v7529_v47  ;;  %v2752_v18 = vld [vmem:[#allocation10 + $0x7a8] sm:$0xff]  ;;  %v6567_v50 = vcombine.high %v2747_v45, %v2751_v38  ;;  %v6566_v58 = vcombine.low %v2747_v45, %v2751_v38 }
 0x2da   :  { %v6569_v52 = vcombine.high %v2748_v42, %v2752_v18  ;;  %v6568_v10 = vcombine.low %v2748_v42, %v2752_v18 }
 0x2db   :  { %2611 = vmatpush1.bf16.msra.mxu0 %v6506_v53  ;;  %2652 = vmatpush1.bf16.msra.mxu1 %v6508_v54  ;;  %v2739_v53 = vld [vmem:[#allocation10 + $0x740] sm:$0xff] }
 0x2dc   :  { %2612 = vmatprep.subr.bf16.mxu0 %v6499_v56  ;;  %2653 = vmatprep.subr.bf16.mxu1 %v6501_v57  ;;  %v2743_v54 = vld [vmem:[#allocation10 + $0x760] sm:$0xff]  ;;  %v2740_v56 = vld [vmem:[#allocation10 + $0x748] sm:$0xff] }
 0x2dd   :  { %v2744_v57 = vld [vmem:[#allocation10 + $0x768] sm:$0xff]  ;;  %v6559_v60 = vcombine.high %v2739_v53, %v2743_v54  ;;  %v6558_v62 = vcombine.low %v2739_v53, %v2743_v54 }
 0x2de   :  { %v6561_v61 = vcombine.high %v2740_v56, %v2744_v57  ;;  %v6560_v63 = vcombine.low %v2740_v56, %v2744_v57  ;;  %v7745_v56 = vrot.slane %v7703_v0, 4 }
 0x2df   :  { %2613 = vmatpush1.bf16.msra.mxu0 %v6498_v49  ;;  %2654 = vmatpush1.bf16.msra.mxu1 %v6500_v55  ;;  %v2731_v49 = vld [vmem:[#allocation10 + $0x700] sm:$0xff] }
 0x2e0   :  { %2614 = vmatprep.subr.bf16.mxu0 %v6491_v51  ;;  %2655 = vmatprep.subr.bf16.mxu1 %v6493_v59  ;;  %v2735_v55 = vld [vmem:[#allocation10 + $0x720] sm:$0xff]  ;;  %v2732_v51 = vld [vmem:[#allocation10 + $0x708] sm:$0xff] }
 0x2e1   :  { %v2736_v59 = vld [vmem:[#allocation10 + $0x728] sm:$0xff]  ;;  %v6551_v1 = vcombine.high %v2731_v49, %v2735_v55  ;;  %v6550_v7 = vcombine.low %v2731_v49, %v2735_v55  ;;  %v2746_v49 = vld [vmem:[#allocation10 + $0x778] sm:$0xff] }
 0x2e2   :  { %v6553_v2 = vcombine.high %v2732_v51, %v2736_v59  ;;  %v6552_v8 = vcombine.low %v2732_v51, %v2736_v59 }
 0x2e3   :  { %2615 = vmatpush1.bf16.msra.mxu0 %v6490_v3  ;;  %2656 = vmatpush1.bf16.msra.mxu1 %v6492_v4  ;;  %v2723_v3 = vld [vmem:[#allocation10 + $0x6c0] sm:$0xff] }
 0x2e4   :  { %2616 = vmatprep.subr.bf16.mxu0 %v6483_v5  ;;  %2657 = vmatprep.subr.bf16.mxu1 %v6485_v6  ;;  %v2727_v4 = vld [vmem:[#allocation10 + $0x6e0] sm:$0xff]  ;;  %v2724_v5 = vld [vmem:[#allocation10 + $0x6c8] sm:$0xff] }
 0x2e5   :  { %v2728_v6 = vld [vmem:[#allocation10 + $0x6e8] sm:$0xff]  ;;  %v6543_v9 = vcombine.high %v2723_v3, %v2727_v4  ;;  %v6542_v16 = vcombine.low %v2723_v3, %v2727_v4  ;;  %v2733_v3 = vld [vmem:[#allocation10 + $0x710] sm:$0xff] }
 0x2e6   :  { %v6545_v11 = vcombine.high %v2724_v5, %v2728_v6  ;;  %v6544_v17 = vcombine.low %v2724_v5, %v2728_v6  ;;  %v2737_v4 = vld [vmem:[#allocation10 + $0x730] sm:$0xff]  ;;  %v2734_v5 = vld [vmem:[#allocation10 + $0x718] sm:$0xff] }
 0x2e7   :  { %2617 = vmatpush1.bf16.msra.mxu0 %v6482_v12  ;;  %2658 = vmatpush1.bf16.msra.mxu1 %v6484_v13  ;;  %v2715_v12 = vld [vmem:[#allocation10 + $0x680] sm:$0xff]  ;;  %v2738_v6 = vld [vmem:[#allocation10 + $0x738] sm:$0xff] }
 0x2e8   :  { %2618 = vmatprep.subr.bf16.mxu0 %v6475_v14  ;;  %2659 = vmatprep.subr.bf16.mxu1 %v6477_v15  ;;  %v2719_v13 = vld [vmem:[#allocation10 + $0x6a0] sm:$0xff]  ;;  %v2716_v14 = vld [vmem:[#allocation10 + $0x688] sm:$0xff] }
 0x2e9   :  { %v2720_v15 = vld [vmem:[#allocation10 + $0x6a8] sm:$0xff]  ;;  %v6535_v19 = vcombine.high %v2715_v12, %v2719_v13  ;;  %v6534_v25 = vcombine.low %v2715_v12, %v2719_v13 }
 0x2ea   :  { %v6537_v20 = vcombine.high %v2716_v14, %v2720_v15  ;;  %v6536_v26 = vcombine.low %v2716_v14, %v2720_v15  ;;  %v6555_v14 = vcombine.high %v2733_v3, %v2737_v4  ;;  %v6557_v15 = vcombine.high %v2734_v5, %v2738_v6 }
 0x2eb   :  { %2619 = vmatpush1.bf16.msra.mxu0 %v6474_v21  ;;  %2660 = vmatpush1.bf16.msra.mxu1 %v6476_v22  ;;  %v2707_v21 = vld [vmem:[#allocation10 + $0x640] sm:$0xff] }
 0x2ec   :  { %2620 = vmatprep.subr.bf16.mxu0 %v6467_v23  ;;  %2661 = vmatprep.subr.bf16.mxu1 %v6469_v24  ;;  %v2711_v22 = vld [vmem:[#allocation10 + $0x660] sm:$0xff]  ;;  %v2708_v23 = vld [vmem:[#allocation10 + $0x648] sm:$0xff] }
 0x2ed   :  { %v2712_v24 = vld [vmem:[#allocation10 + $0x668] sm:$0xff]  ;;  %v6527_v27 = vcombine.high %v2707_v21, %v2711_v22  ;;  %v6526_v34 = vcombine.low %v2707_v21, %v2711_v22  ;;  %v6554_v21 = vcombine.low %v2733_v3, %v2737_v4  ;;  %v6556_v22 = vcombine.low %v2734_v5, %v2738_v6 }
 0x2ee   :  { %v6529_v29 = vcombine.high %v2708_v23, %v2712_v24  ;;  %v6528_v35 = vcombine.low %v2708_v23, %v2712_v24 }
 0x2ef   :  { %2621 = vmatpush1.bf16.msra.mxu0 %v6466_v30  ;;  %2662 = vmatpush1.bf16.msra.mxu1 %v6468_v28  ;;  %v2699_v30 = vld [vmem:[#allocation10 + $0x600] sm:$0xff] }
 0x2f0   :  { %2622 = vmatprep.subr.bf16.mxu0 %v6459_v32  ;;  %2663 = vmatprep.subr.bf16.mxu1 %v6461_v33  ;;  %v2703_v28 = vld [vmem:[#allocation10 + $0x620] sm:$0xff]  ;;  %v2700_v32 = vld [vmem:[#allocation10 + $0x608] sm:$0xff] }
 0x2f1   :  { %v2704_v33 = vld [vmem:[#allocation10 + $0x628] sm:$0xff]  ;;  %v6519_v36 = vcombine.high %v2699_v30, %v2703_v28  ;;  %v6518_v45 = vcombine.low %v2699_v30, %v2703_v28 }
 0x2f2   :  { %v6521_v37 = vcombine.high %v2700_v32, %v2704_v33  ;;  %v6520_v38 = vcombine.low %v2700_v32, %v2704_v33 }
 0x2f3   :  { %2623 = vmatpush1.bf16.msra.mxu0 %v6458_v40  ;;  %2664 = vmatpush1.bf16.msra.mxu1 %v6460_v41  ;;  %v2757_v40 = vld [vmem:[#allocation10 + $0x7d0] sm:$0xff] }
 0x2f4   :  { %3086 = vmatprep.subr.bf16.mxu0 %v6575_v43  ;;  %3127 = vmatprep.subr.bf16.mxu1 %v6577_v44  ;;  %v2761_v41 = vld [vmem:[#allocation10 + $0x7f0] sm:$0xff]  ;;  %v2758_v43 = vld [vmem:[#allocation10 + $0x7d8] sm:$0xff] }
 0x2f5   :  { %v2762_v44 = vld [vmem:[#allocation10 + $0x7f8] sm:$0xff]  ;;  %v6579_v42 = vcombine.high %v2757_v40, %v2761_v41  ;;  %v6578_v53 = vcombine.low %v2757_v40, %v2761_v41 }
 0x2f6   :  { %2641 = vmatmul.mubr.bf16.vlgmr.msra.gmra.mxu0 %v7703_v0  ;;  %2682 = vmatmul.mubr.bf16.vlgmr.msra.gmra.mxu1 %v7703_v0  ;;  %v6581_v18 = vcombine.high %v2758_v43, %v2762_v44  ;;  %v6580_v54 = vcombine.low %v2758_v43, %v2762_v44 }
 0x2f7   :  { %3087 = vmatpush1.bf16.msra.mxu0 %v6574_v46  ;;  %3128 = vmatpush1.bf16.msra.mxu1 %v6576_v48  ;;  %v2749_v46 = vld [vmem:[#allocation10 + $0x790] sm:$0xff] }
 0x2f8   :  { %3088 = vmatprep.subr.bf16.mxu0 %v6567_v50  ;;  %3129 = vmatprep.subr.bf16.mxu1 %v6569_v52  ;;  %v2753_v48 = vld [vmem:[#allocation10 + $0x7b0] sm:$0xff]  ;;  %v2750_v50 = vld [vmem:[#allocation10 + $0x798] sm:$0xff] }
 0x2f9   :  { %3118 = vmatprep.mubr.bf16.mxu0 %v7529_v47  ;;  %3159 = vmatprep.mubr.bf16.mxu1 %v7529_v47  ;;  %v2754_v52 = vld [vmem:[#allocation10 + $0x7b8] sm:$0xff]  ;;  %v6571_v57 = vcombine.high %v2749_v46, %v2753_v48  ;;  %v6570_v0 = vcombine.low %v2749_v46, %v2753_v48 }
 0x2fa   :  { %v6572_v59 = vcombine.low %v2750_v50, %v2754_v52 }
 0x2fb   :  { %3089 = vmatpush1.bf16.msra.mxu0 %v6566_v58  ;;  %3130 = vmatpush1.bf16.msra.mxu1 %v6568_v10  ;;  %v6573_v58 = vcombine.high %v2750_v50, %v2754_v52  ;;  %v2741_v10 = vld [vmem:[#allocation10 + $0x750] sm:$0xff] }
 0x2fc   :  { %3090 = vmatprep.subr.bf16.mxu0 %v6559_v60  ;;  %3131 = vmatprep.subr.bf16.mxu1 %v6561_v61  ;;  %v2745_v60 = vld [vmem:[#allocation10 + $0x770] sm:$0xff]  ;;  %v2742_v61 = vld [vmem:[#allocation10 + $0x758] sm:$0xff] }
 0x2ff   :  { %3091 = vmatpush1.bf16.msra.mxu0 %v6558_v62  ;;  %3132 = vmatpush1.bf16.msra.mxu1 %v6560_v63 }
 0x300   :  { %3092 = vmatprep.subr.bf16.mxu0 %v6551_v1  ;;  %3133 = vmatprep.subr.bf16.mxu1 %v6553_v2  ;;  %v6563_v1 = vcombine.high %v2741_v10, %v2745_v60  ;;  %v6565_v2 = vcombine.high %v2742_v61, %v2746_v49 }
 0x303   :  { %3093 = vmatpush1.bf16.msra.mxu0 %v6550_v7  ;;  %3134 = vmatpush1.bf16.msra.mxu1 %v6552_v8 }
 0x304   :  { %3094 = vmatprep.subr.bf16.mxu0 %v6543_v9  ;;  %3135 = vmatprep.subr.bf16.mxu1 %v6545_v11  ;;  %v6562_v9 = vcombine.low %v2741_v10, %v2745_v60  ;;  %v6564_v11 = vcombine.low %v2742_v61, %v2746_v49 }
 0x307   :  { %3095 = vmatpush1.bf16.msra.mxu0 %v6542_v16  ;;  %3136 = vmatpush1.bf16.msra.mxu1 %v6544_v17  ;;  %v2725_v16 = vld [vmem:[#allocation10 + $0x6d0] sm:$0xff] }
 0x308   :  { %3096 = vmatprep.subr.bf16.mxu0 %v6535_v19  ;;  %3137 = vmatprep.subr.bf16.mxu1 %v6537_v20  ;;  %v2729_v17 = vld [vmem:[#allocation10 + $0x6f0] sm:$0xff]  ;;  %v2726_v19 = vld [vmem:[#allocation10 + $0x6d8] sm:$0xff] }
 0x309   :  { %v2730_v20 = vld [vmem:[#allocation10 + $0x6f8] sm:$0xff]  ;;  %v6547_v23 = vcombine.high %v2725_v16, %v2729_v17  ;;  %v6546_v30 = vcombine.low %v2725_v16, %v2729_v17 }
 0x30a   :  { %v6549_v24 = vcombine.high %v2726_v19, %v2730_v20  ;;  %v6548_v28 = vcombine.low %v2726_v19, %v2730_v20 }
 0x30b   :  { %3097 = vmatpush1.bf16.msra.mxu0 %v6534_v25  ;;  %3138 = vmatpush1.bf16.msra.mxu1 %v6536_v26  ;;  %v2717_v25 = vld [vmem:[#allocation10 + $0x690] sm:$0xff] }
 0x30c   :  { %3098 = vmatprep.subr.bf16.mxu0 %v6527_v27  ;;  %3139 = vmatprep.subr.bf16.mxu1 %v6529_v29  ;;  %v2721_v26 = vld [vmem:[#allocation10 + $0x6b0] sm:$0xff]  ;;  %v2718_v27 = vld [vmem:[#allocation10 + $0x698] sm:$0xff] }
 0x30d   :  { %v2722_v29 = vld [vmem:[#allocation10 + $0x6b8] sm:$0xff]  ;;  %v6539_v32 = vcombine.high %v2717_v25, %v2721_v26  ;;  %v6538_v40 = vcombine.low %v2717_v25, %v2721_v26 }
 0x30e   :  { %v6541_v33 = vcombine.high %v2718_v27, %v2722_v29  ;;  %v6540_v41 = vcombine.low %v2718_v27, %v2722_v29 }
 0x30f   :  { %3099 = vmatpush1.bf16.msra.mxu0 %v6526_v34  ;;  %3140 = vmatpush1.bf16.msra.mxu1 %v6528_v35  ;;  %v2709_v34 = vld [vmem:[#allocation10 + $0x650] sm:$0xff] }
 0x310   :  { %3100 = vmatprep.subr.bf16.mxu0 %v6519_v36  ;;  %3141 = vmatprep.subr.bf16.mxu1 %v6521_v37  ;;  %v2713_v35 = vld [vmem:[#allocation10 + $0x670] sm:$0xff]  ;;  %v2710_v36 = vld [vmem:[#allocation10 + $0x658] sm:$0xff] }
 0x311   :  { %v2714_v37 = vld [vmem:[#allocation10 + $0x678] sm:$0xff]  ;;  %v6531_v43 = vcombine.high %v2709_v34, %v2713_v35  ;;  %v6530_v46 = vcombine.low %v2709_v34, %v2713_v35  ;;  %v3287_v34 = vld [vmem:[#allocation10 + $0x8e0] sm:$0xff]  ;;  %v3284_v35 = vld [vmem:[#allocation10 + $0x8c8] sm:$0xff] }
 0x312   :  { %v6533_v44 = vcombine.high %v2710_v36, %v2714_v37  ;;  %v6532_v48 = vcombine.low %v2710_v36, %v2714_v37  ;;  %v3288_v36 = vld [vmem:[#allocation10 + $0x8e8] sm:$0xff] }
 0x313   :  { %3101 = vmatpush1.bf16.msra.mxu0 %v6518_v45  ;;  %3142 = vmatpush1.bf16.msra.mxu1 %v6520_v38  ;;  %v2701_v45 = vld [vmem:[#allocation10 + $0x610] sm:$0xff] }
 0x314   :  { %3168 = vmatprep.subr.bf16.mxu0 %v6579_v42  ;;  %3209 = vmatprep.subr.bf16.mxu1 %v6581_v18  ;;  %v2705_v38 = vld [vmem:[#allocation10 + $0x630] sm:$0xff]  ;;  %v2702_v42 = vld [vmem:[#allocation10 + $0x618] sm:$0xff] }
 0x315   :  { %v2706_v18 = vld [vmem:[#allocation10 + $0x638] sm:$0xff]  ;;  %v6523_v50 = vcombine.high %v2701_v45, %v2705_v38  ;;  %v6522_v10 = vcombine.low %v2701_v45, %v2705_v38  ;;  %v3279_v45 = vld [vmem:[#allocation10 + $0x8a0] sm:$0xff]  ;;  %v3276_v38 = vld [vmem:[#allocation10 + $0x888] sm:$0xff] }
 0x316   :  { %3119 = vmatmul.mubr.bf16.vlgmr.msra.gmra.mxu0 %v7745_v56  ;;  %3160 = vmatmul.mubr.bf16.vlgmr.msra.gmra.mxu1 %v7745_v56  ;;  %v7749_v55 = vpop.f32.mrf.mxu0  ;;  %v7751_v51 = vpop.f32.mrf.mxu1  ;;  %v6525_v52 = vcombine.high %v2702_v42, %v2706_v18  ;;  %v6524_v60 = vcombine.low %v2702_v42, %v2706_v18  ;;  %v3280_v42 = vld [vmem:[#allocation10 + $0x8a8] sm:$0xff] }
 0x317   :  { %3169 = vmatpush1.bf16.msra.mxu0 %v6578_v53  ;;  %3210 = vmatpush1.bf16.msra.mxu1 %v6580_v54  ;;  %v3315_v53 = vld [vmem:[#allocation10 + $0x9c0] sm:$0xff] }
 0x318   :  { %v7753_v62 = vpop.f32.mrf.mxu0  ;;  %v7755_v63 = vpop.f32.mrf.mxu1  ;;  %3170 = vmatprep.subr.bf16.mxu0 %v6571_v57  ;;  %3211 = vmatprep.subr.bf16.mxu1 %v6573_v58  ;;  %v3319_v54 = vld [vmem:[#allocation10 + $0x9e0] sm:$0xff]  ;;  %v3316_v57 = vld [vmem:[#allocation10 + $0x9c8] sm:$0xff] }
 0x319   :  { %3200 = vmatprep.mubr.bf16.mxu0 %v7529_v47  ;;  %3241 = vmatprep.mubr.bf16.mxu1 %v7529_v47  ;;  %v3320_v58 = vld [vmem:[#allocation10 + $0x9e8] sm:$0xff]  ;;  %v6639_v61 = vcombine.high %v3315_v53, %v3319_v54  ;;  %v6638_v3 = vcombine.low %v3315_v53, %v3319_v54  ;;  %v3271_v53 = vld [vmem:[#allocation10 + $0x860] sm:$0xff] }
 0x31a   :  { %v1531_v7 = vpop.f32.mrf.mxu0  ;;  %v1572_v8 = vpop.f32.mrf.mxu1  ;;  %v6641_v49 = vcombine.high %v3316_v57, %v3320_v58  ;;  %v6640_v4 = vcombine.low %v3316_v57, %v3320_v58  ;;  %v3268_v54 = vld [vmem:[#allocation10 + $0x848] sm:$0xff] }
 0x31b   :  { %3171 = vmatpush1.bf16.msra.mxu0 %v6570_v0  ;;  %3212 = vmatpush1.bf16.msra.mxu1 %v6572_v59  ;;  %v3307_v0 = vld [vmem:[#allocation10 + $0x980] sm:$0xff]  ;;  %v3272_v57 = vld [vmem:[#allocation10 + $0x868] sm:$0xff] }
 0x31c   :  { %v1532_v12 = vpop.f32.mrf.mxu0  ;;  %v1573_v13 = vpop.f32.mrf.mxu1  ;;  %3172 = vmatprep.subr.bf16.mxu0 %v6563_v1  ;;  %3213 = vmatprep.subr.bf16.mxu1 %v6565_v2  ;;  %v3311_v59 = vld [vmem:[#allocation10 + $0x9a0] sm:$0xff]  ;;  %v3308_v1 = vld [vmem:[#allocation10 + $0x988] sm:$0xff] }
 0x31d   :  { %v3312_v2 = vld [vmem:[#allocation10 + $0x9a8] sm:$0xff]  ;;  %v6631_v5 = vcombine.high %v3307_v0, %v3311_v59  ;;  %v3299_v7 = vld [vmem:[#allocation10 + $0x940] sm:$0xff] }
 0x31e   :  { %v6633_v6 = vcombine.high %v3308_v1, %v3312_v2  ;;  %v3303_v8 = vld [vmem:[#allocation10 + $0x960] sm:$0xff] }
 0x31f   :  { %3173 = vmatpush1.bf16.msra.mxu0 %v6562_v9  ;;  %3214 = vmatpush1.bf16.msra.mxu1 %v6564_v11  ;;  %v3300_v9 = vld [vmem:[#allocation10 + $0x948] sm:$0xff]  ;;  %v6623_v19 = vcombine.high %v3299_v7, %v3303_v8  ;;  %v6622_v26 = vcombine.low %v3299_v7, %v3303_v8  ;;  %v3321_v7 = vld [vmem:[#allocation10 + $0x9f0] sm:$0xff]  ;;  %v3318_v8 = vld [vmem:[#allocation10 + $0x9d8] sm:$0xff] }
 0x320   :  { %3174 = vmatprep.subr.bf16.mxu0 %v6555_v14  ;;  %3215 = vmatprep.subr.bf16.mxu1 %v6557_v15  ;;  %v3304_v11 = vld [vmem:[#allocation10 + $0x968] sm:$0xff]  ;;  %v6630_v14 = vcombine.low %v3307_v0, %v3311_v59  ;;  %v6632_v15 = vcombine.low %v3308_v1, %v3312_v2  ;;  %v3263_v0 = vld [vmem:[#allocation10 + $0x820] sm:$0xff] }
 0x321   :  { %v6625_v20 = vcombine.high %v3300_v9, %v3304_v11  ;;  %v6624_v27 = vcombine.low %v3300_v9, %v3304_v11  ;;  %v3260_v59 = vld [vmem:[#allocation10 + $0x808] sm:$0xff]  ;;  %v3322_v9 = vld [vmem:[#allocation10 + $0x9f8] sm:$0xff] }
 0x322   :  { %v3264_v1 = vld [vmem:[#allocation10 + $0x828] sm:$0xff] }
 0x323   :  { %3175 = vmatpush1.bf16.msra.mxu0 %v6554_v21  ;;  %3216 = vmatpush1.bf16.msra.mxu1 %v6556_v22  ;;  %v3291_v21 = vld [vmem:[#allocation10 + $0x900] sm:$0xff] }
 0x324   :  { %3176 = vmatprep.subr.bf16.mxu0 %v6547_v23  ;;  %3217 = vmatprep.subr.bf16.mxu1 %v6549_v24  ;;  %v3295_v22 = vld [vmem:[#allocation10 + $0x920] sm:$0xff]  ;;  %v3292_v23 = vld [vmem:[#allocation10 + $0x908] sm:$0xff] }
 0x325   :  { %v3296_v24 = vld [vmem:[#allocation10 + $0x928] sm:$0xff]  ;;  %v6614_v37 = vcombine.low %v3291_v21, %v3295_v22 }
 0x327   :  { %3177 = vmatpush1.bf16.msra.mxu0 %v6546_v30  ;;  %3218 = vmatpush1.bf16.msra.mxu1 %v6548_v28  ;;  %v6615_v28 = vcombine.high %v3291_v21, %v3295_v22  ;;  %v3313_v21 = vld [vmem:[#allocation10 + $0x9b0] sm:$0xff]  ;;  %v3310_v22 = vld [vmem:[#allocation10 + $0x998] sm:$0xff] }
 0x328   :  { %3178 = vmatprep.subr.bf16.mxu0 %v6539_v32  ;;  %3219 = vmatprep.subr.bf16.mxu1 %v6541_v33  ;;  %v6617_v32 = vcombine.high %v3292_v23, %v3296_v24  ;;  %v3283_v33 = vld [vmem:[#allocation10 + $0x8c0] sm:$0xff] }
 0x329   :  { %v6606_v18 = vcombine.low %v3283_v33, %v3287_v34 }
 0x32b   :  { %3179 = vmatpush1.bf16.msra.mxu0 %v6538_v40  ;;  %3220 = vmatpush1.bf16.msra.mxu1 %v6540_v41  ;;  %v6616_v40 = vcombine.low %v3292_v23, %v3296_v24  ;;  %v6607_v41 = vcombine.high %v3283_v33, %v3287_v34  ;;  %v3314_v23 = vld [vmem:[#allocation10 + $0x9b8] sm:$0xff] }
 0x32c   :  { %3180 = vmatprep.subr.bf16.mxu0 %v6531_v43  ;;  %3221 = vmatprep.subr.bf16.mxu1 %v6533_v44  ;;  %v6609_v43 = vcombine.high %v3284_v35, %v3288_v36  ;;  %v3275_v44 = vld [vmem:[#allocation10 + $0x880] sm:$0xff] }
 0x32d   :  { %v6598_v58 = vcombine.low %v3275_v44, %v3279_v45 }
 0x32f   :  { %3181 = vmatpush1.bf16.msra.mxu0 %v6530_v46  ;;  %3222 = vmatpush1.bf16.msra.mxu1 %v6532_v48  ;;  %v6608_v46 = vcombine.low %v3284_v35, %v3288_v36  ;;  %v6599_v48 = vcombine.high %v3275_v44, %v3279_v45  ;;  %v3293_v45 = vld [vmem:[#allocation10 + $0x910] sm:$0xff] }
 0x330   :  { %3182 = vmatprep.subr.bf16.mxu0 %v6523_v50  ;;  %3223 = vmatprep.subr.bf16.mxu1 %v6525_v52  ;;  %v6601_v50 = vcombine.high %v3276_v38, %v3280_v42  ;;  %v3267_v52 = vld [vmem:[#allocation10 + $0x840] sm:$0xff] }
 0x331   :  { %v6590_v2 = vcombine.low %v3267_v52, %v3271_v53 }
 0x333   :  { %3183 = vmatpush1.bf16.msra.mxu0 %v6522_v10  ;;  %3224 = vmatpush1.bf16.msra.mxu1 %v6524_v60  ;;  %v6600_v10 = vcombine.low %v3276_v38, %v3280_v42  ;;  %v6591_v60 = vcombine.high %v3267_v52, %v3271_v53 }
 0x334   :  { %3643 = vmatprep.subr.bf16.mxu0 %v6639_v61  ;;  %3684 = vmatprep.subr.bf16.mxu1 %v6641_v49  ;;  %v6593_v61 = vcombine.high %v3268_v54, %v3272_v57  ;;  %v3259_v49 = vld [vmem:[#allocation10 + $0x800] sm:$0xff] }
 0x335   :  { %v6582_v11 = vcombine.low %v3259_v49, %v3263_v0 }
 0x336   :  { %v7759_v12 = vpop.f32.mrf.mxu0  ;;  %v7761_v13 = vpop.f32.mrf.mxu1  ;;  %3201 = vmatmul.mubr.bf16.vlgmr.msra.gmra.mxu0 %v7745_v56  ;;  %3242 = vmatmul.mubr.bf16.vlgmr.msra.gmra.mxu1 %v7745_v56 }
 0x337   :  { %3644 = vmatpush1.bf16.msra.mxu0 %v6638_v3  ;;  %3685 = vmatpush1.bf16.msra.mxu1 %v6640_v4  ;;  %v6592_v3 = vcombine.low %v3268_v54, %v3272_v57  ;;  %v6583_v4 = vcombine.high %v3259_v49, %v3263_v0  ;;  %v3285_v57 = vld [vmem:[#allocation10 + $0x8d0] sm:$0xff] }
 0x338   :  { %v7765_v16 = vpop.f32.mrf.mxu0  ;;  %v7767_v17 = vpop.f32.mrf.mxu1  ;;  %3645 = vmatprep.subr.bf16.mxu0 %v6631_v5  ;;  %3686 = vmatprep.subr.bf16.mxu1 %v6633_v6  ;;  %v6585_v5 = vcombine.high %v3260_v59, %v3264_v1  ;;  %v3317_v6 = vld [vmem:[#allocation10 + $0x9d0] sm:$0xff] }
 0x339   :  { %3675 = vmatprep.mubr.bf16.mxu0 %v7529_v47  ;;  %3716 = vmatprep.mubr.bf16.mxu1 %v7529_v47  ;;  %v6642_v24 = vcombine.low %v3317_v6, %v3321_v7 }
 0x33a   :  { %v1613_v56 = vpop.f32.mrf.mxu0  ;;  %v1654_v25 = vpop.f32.mrf.mxu1 }
 0x33b   :  { %3646 = vmatpush1.bf16.msra.mxu0 %v6630_v14  ;;  %3687 = vmatpush1.bf16.msra.mxu1 %v6632_v15  ;;  %v6584_v14 = vcombine.low %v3260_v59, %v3264_v1  ;;  %v6643_v15 = vcombine.high %v3317_v6, %v3321_v7  ;;  %v6644_v56 = vcombine.low %v3318_v8, %v3322_v9  ;;  %v3277_v1 = vld [vmem:[#allocation10 + $0x890] sm:$0xff] }
 0x33c   :  { %v1614_v29 = vpop.f32.mrf.mxu0  ;;  %v1655_v30 = vpop.f32.mrf.mxu1  ;;  %3647 = vmatprep.subr.bf16.mxu0 %v6623_v19  ;;  %3688 = vmatprep.subr.bf16.mxu1 %v6625_v20  ;;  %v6645_v19 = vcombine.high %v3318_v8, %v3322_v9  ;;  %v3309_v20 = vld [vmem:[#allocation10 + $0x990] sm:$0xff] }
 0x33d   :  { %v6635_v25 = vcombine.high %v3309_v20, %v3313_v21  ;;  %v3305_v29 = vld [vmem:[#allocation10 + $0x970] sm:$0xff]  ;;  %v3302_v30 = vld [vmem:[#allocation10 + $0x958] sm:$0xff]  ;;  %v6634_v34 = vcombine.low %v3309_v20, %v3313_v21 }
 0x33e   :  { %v3269_v9 = vld [vmem:[#allocation10 + $0x850] sm:$0xff] }
 0x33f   :  { %3648 = vmatpush1.bf16.msra.mxu0 %v6622_v26  ;;  %3689 = vmatpush1.bf16.msra.mxu1 %v6624_v27  ;;  %v6637_v26 = vcombine.high %v3310_v22, %v3314_v23  ;;  %v3301_v27 = vld [vmem:[#allocation10 + $0x950] sm:$0xff] }
 0x340   :  { %3649 = vmatprep.subr.bf16.mxu0 %v6615_v28  ;;  %3690 = vmatprep.subr.bf16.mxu1 %v6617_v32  ;;  %v3306_v28 = vld [vmem:[#allocation10 + $0x978] sm:$0xff] }
 0x341   :  { %v6629_v44 = vcombine.high %v3302_v30, %v3306_v28  ;;  %v6628_v52 = vcombine.low %v3302_v30, %v3306_v28  ;;  %v3872_v28 = vld [vmem:[#allocation10 + $0xbc0] sm:$0xff] }
 0x343   :  { %3650 = vmatpush1.bf16.msra.mxu0 %v6614_v37  ;;  %3691 = vmatpush1.bf16.msra.mxu1 %v6616_v40  ;;  %v6636_v37 = vcombine.low %v3310_v22, %v3314_v23  ;;  %v3261_v23 = vld [vmem:[#allocation10 + $0x810] sm:$0xff] }
 0x344   :  { %3651 = vmatprep.subr.bf16.mxu0 %v6607_v41  ;;  %3692 = vmatprep.subr.bf16.mxu1 %v6609_v43  ;;  %v6627_v43 = vcombine.high %v3301_v27, %v3305_v29 }
 0x347   :  { %3652 = vmatpush1.bf16.msra.mxu0 %v6606_v18  ;;  %3693 = vmatpush1.bf16.msra.mxu1 %v6608_v46  ;;  %v3294_v18 = vld [vmem:[#allocation10 + $0x918] sm:$0xff] }
 0x348   :  { %3653 = vmatprep.subr.bf16.mxu0 %v6599_v48  ;;  %3694 = vmatprep.subr.bf16.mxu1 %v6601_v50  ;;  %v6626_v50 = vcombine.low %v3301_v27, %v3305_v29 }
 0x34b   :  { %3654 = vmatpush1.bf16.msra.mxu0 %v6598_v58  ;;  %3695 = vmatpush1.bf16.msra.mxu1 %v6600_v10  ;;  %v3289_v58 = vld [vmem:[#allocation10 + $0x8f0] sm:$0xff]  ;;  %v3286_v10 = vld [vmem:[#allocation10 + $0x8d8] sm:$0xff] }
 0x34c   :  { %3655 = vmatprep.subr.bf16.mxu0 %v6591_v60  ;;  %3696 = vmatprep.subr.bf16.mxu1 %v6593_v61  ;;  %v3290_v60 = vld [vmem:[#allocation10 + $0x8f8] sm:$0xff]  ;;  %v6611_v0 = vcombine.high %v3285_v57, %v3289_v58 }
 0x34d   :  { %v6613_v59 = vcombine.high %v3286_v10, %v3290_v60  ;;  %v6612_v6 = vcombine.low %v3286_v10, %v3290_v60 }
 0x34f   :  { %3656 = vmatpush1.bf16.msra.mxu0 %v6590_v2  ;;  %3697 = vmatpush1.bf16.msra.mxu1 %v6592_v3  ;;  %v3281_v2 = vld [vmem:[#allocation10 + $0x8b0] sm:$0xff]  ;;  %v3278_v3 = vld [vmem:[#allocation10 + $0x898] sm:$0xff] }
 0x350   :  { %3657 = vmatprep.subr.bf16.mxu0 %v6583_v4  ;;  %3698 = vmatprep.subr.bf16.mxu1 %v6585_v5  ;;  %v3282_v4 = vld [vmem:[#allocation10 + $0x8b8] sm:$0xff]  ;;  %v6610_v5 = vcombine.low %v3285_v57, %v3289_v58  ;;  %v6603_v7 = vcombine.high %v3277_v1, %v3281_v2 }
 0x351   :  { %v6605_v8 = vcombine.high %v3278_v3, %v3282_v4  ;;  %v6604_v20 = vcombine.low %v3278_v3, %v3282_v4 }
 0x353   :  { %3658 = vmatpush1.bf16.msra.mxu0 %v6582_v11  ;;  %3699 = vmatpush1.bf16.msra.mxu1 %v6584_v14  ;;  %v3273_v11 = vld [vmem:[#allocation10 + $0x870] sm:$0xff]  ;;  %v3270_v14 = vld [vmem:[#allocation10 + $0x858] sm:$0xff] }
 0x354   :  { %3725 = vmatprep.subr.bf16.mxu0 %v6643_v15  ;;  %3766 = vmatprep.subr.bf16.mxu1 %v6645_v19  ;;  %v3274_v15 = vld [vmem:[#allocation10 + $0x878] sm:$0xff]  ;;  %v6602_v19 = vcombine.low %v3277_v1, %v3281_v2  ;;  %v6595_v21 = vcombine.high %v3269_v9, %v3273_v11  ;;  %v3848_v2 = vld [vmem:[#allocation10 + $0xb00] sm:$0xff] }
 0x355   :  { %v6597_v22 = vcombine.high %v3270_v14, %v3274_v15  ;;  %v6596_v27 = vcombine.low %v3270_v14, %v3274_v15  ;;  %v3840_v15 = vld [vmem:[#allocation10 + $0xac0] sm:$0xff] }
 0x356   :  { %v2011_v32 = vpop.f32.mrf.mxu0  ;;  %v2052_v33 = vpop.f32.mrf.mxu1  ;;  %3676 = vmatmul.mubr.bf16.vlgmr.msra.gmra.mxu0 %v7722_v39  ;;  %3717 = vmatmul.mubr.bf16.vlgmr.msra.gmra.mxu1 %v7722_v39 }
 0x357   :  { %v7774_v35 = vadd.f32 %v2011_v32, %v7749_v55  ;;  %v7777_v36 = vadd.f32 %v2052_v33, %v7751_v51  ;;  %3726 = vmatpush1.bf16.msra.mxu0 %v6642_v24  ;;  %3767 = vmatpush1.bf16.msra.mxu1 %v6644_v56  ;;  %v3297_v55 = vld [vmem:[#allocation10 + $0x930] sm:$0xff]  ;;  %v3298_v51 = vld [vmem:[#allocation10 + $0x938] sm:$0xff]  ;;  %v3876_v32 = vld [vmem:[#allocation10 + $0xbe0] sm:$0xff] }
 0x358   :  { %v2013_v40 = vpop.f32.mrf.mxu0  ;;  %v2054_v41 = vpop.f32.mrf.mxu1  ;;  %3727 = vmatprep.subr.bf16.mxu0 %v6635_v25  ;;  %3768 = vmatprep.subr.bf16.mxu1 %v6637_v26  ;;  %v6618_v61 = vcombine.low %v3293_v45, %v3297_v55  ;;  %v6620_v49 = vcombine.low %v3294_v18, %v3298_v51  ;;  %v3265_v24 = vld [vmem:[#allocation10 + $0x830] sm:$0xff]  ;;  %v3262_v56 = vld [vmem:[#allocation10 + $0x818] sm:$0xff]  ;;  %v6594_v26 = vcombine.low %v3269_v9, %v3273_v11  ;;  %v3873_v33 = vld [vmem:[#allocation10 + $0xbc8] sm:$0xff] }
 0x359   :  { %v7780_v38 = vadd.f32 %v2013_v40, %v7753_v62  ;;  %v7783_v42 = vadd.f32 %v2054_v41, %v7755_v63  ;;  %3757 = vmatprep.mubr.bf16.mxu0 %v7529_v47  ;;  %3798 = vmatprep.mubr.bf16.mxu1 %v7529_v47  ;;  %v6619_v62 = vcombine.high %v3293_v45, %v3297_v55  ;;  %v3266_v25 = vld [vmem:[#allocation10 + $0x838] sm:$0xff]  ;;  %v3868_v45 = vld [vmem:[#allocation10 + $0xba0] sm:$0xff]  ;;  %v3865_v55 = vld [vmem:[#allocation10 + $0xb88] sm:$0xff] }
 0x35a   :  { %v2015_v46 = vpop.f32.mrf.mxu0  ;;  %v2056_v48 = vpop.f32.mrf.mxu1  ;;  %v6621_v63 = vcombine.high %v3294_v18, %v3298_v51  ;;  %v6587_v29 = vcombine.high %v3261_v23, %v3265_v24  ;;  %v6589_v30 = vcombine.high %v3262_v56, %v3266_v25  ;;  %v6588_v40 = vcombine.low %v3262_v56, %v3266_v25  ;;  %v3869_v18 = vld [vmem:[#allocation10 + $0xba8] sm:$0xff]  ;;  %v3832_v25 = vld [vmem:[#allocation10 + $0xa80] sm:$0xff] }
 0x35b   :  { %3728 = vmatpush1.bf16.msra.mxu0 %v6634_v34  ;;  %3769 = vmatpush1.bf16.msra.mxu1 %v6636_v37  ;;  %v3877_v34 = vld [vmem:[#allocation10 + $0xbe8] sm:$0xff]  ;;  %v6586_v37 = vcombine.low %v3261_v23, %v3265_v24  ;;  %v6703_v41 = vcombine.high %v3872_v28, %v3876_v32  ;;  %v6702_v51 = vcombine.low %v3872_v28, %v3876_v32 }
 0x35c   :  { %v2016_v53 = vpop.f32.mrf.mxu0  ;;  %v2057_v54 = vpop.f32.mrf.mxu1  ;;  %3729 = vmatprep.subr.bf16.mxu0 %v6627_v43  ;;  %3770 = vmatprep.subr.bf16.mxu1 %v6629_v44  ;;  %v6705_v43 = vcombine.high %v3873_v33, %v3877_v34  ;;  %v3864_v44 = vld [vmem:[#allocation10 + $0xb80] sm:$0xff]  ;;  %v6704_v46 = vcombine.low %v3873_v33, %v3877_v34 }
 0x35d   :  { %v6695_v48 = vcombine.high %v3864_v44, %v3868_v45  ;;  %v3860_v53 = vld [vmem:[#allocation10 + $0xb60] sm:$0xff]  ;;  %v3857_v54 = vld [vmem:[#allocation10 + $0xb48] sm:$0xff]  ;;  %v6694_v58 = vcombine.low %v3864_v44, %v3868_v45 }
 0x35e   :  { %v3824_v34 = vld [vmem:[#allocation10 + $0xa40] sm:$0xff] }
 0x35f   :  { %3730 = vmatpush1.bf16.msra.mxu0 %v6626_v50  ;;  %3771 = vmatpush1.bf16.msra.mxu1 %v6628_v52  ;;  %v6697_v50 = vcombine.high %v3865_v55, %v3869_v18  ;;  %v3856_v52 = vld [vmem:[#allocation10 + $0xb40] sm:$0xff] }
 0x360   :  { %3731 = vmatprep.subr.bf16.mxu0 %v6619_v62  ;;  %3772 = vmatprep.subr.bf16.mxu1 %v6621_v63  ;;  %v3861_v62 = vld [vmem:[#allocation10 + $0xb68] sm:$0xff] }
 0x361   :  { %v6689_v1 = vcombine.high %v3857_v54, %v3861_v62  ;;  %v6688_v9 = vcombine.low %v3857_v54, %v3861_v62  ;;  %v3874_v62 = vld [vmem:[#allocation10 + $0xbd0] sm:$0xff] }
 0x363   :  { %3732 = vmatpush1.bf16.msra.mxu0 %v6618_v61  ;;  %3773 = vmatpush1.bf16.msra.mxu1 %v6620_v49  ;;  %v6696_v61 = vcombine.low %v3865_v55, %v3869_v18  ;;  %v3816_v18 = vld [vmem:[#allocation10 + $0xa00] sm:$0xff] }
 0x364   :  { %3733 = vmatprep.subr.bf16.mxu0 %v6611_v0  ;;  %3774 = vmatprep.subr.bf16.mxu1 %v6613_v59  ;;  %v6687_v59 = vcombine.high %v3856_v52, %v3860_v53 }
 0x367   :  { %3734 = vmatpush1.bf16.msra.mxu0 %v6610_v5  ;;  %3775 = vmatpush1.bf16.msra.mxu1 %v6612_v6  ;;  %v3849_v5 = vld [vmem:[#allocation10 + $0xb08] sm:$0xff] }
 0x368   :  { %3735 = vmatprep.subr.bf16.mxu0 %v6603_v7  ;;  %3776 = vmatprep.subr.bf16.mxu1 %v6605_v8  ;;  %v6686_v8 = vcombine.low %v3856_v52, %v3860_v53 }
 0x36b   :  { %3736 = vmatpush1.bf16.msra.mxu0 %v6602_v19  ;;  %3777 = vmatpush1.bf16.msra.mxu1 %v6604_v20  ;;  %v3844_v19 = vld [vmem:[#allocation10 + $0xae0] sm:$0xff]  ;;  %v3841_v20 = vld [vmem:[#allocation10 + $0xac8] sm:$0xff] }
 0x36c   :  { %3737 = vmatprep.subr.bf16.mxu0 %v6595_v21  ;;  %3778 = vmatprep.subr.bf16.mxu1 %v6597_v22  ;;  %v3845_v21 = vld [vmem:[#allocation10 + $0xae8] sm:$0xff]  ;;  %v6671_v24 = vcombine.high %v3840_v15, %v3844_v19 }
 0x36d   :  { %v6673_v56 = vcombine.high %v3841_v20, %v3845_v21  ;;  %v6672_v28 = vcombine.low %v3841_v20, %v3845_v21 }
 0x36f   :  { %3738 = vmatpush1.bf16.msra.mxu0 %v6594_v26  ;;  %3779 = vmatpush1.bf16.msra.mxu1 %v6596_v27  ;;  %v3836_v26 = vld [vmem:[#allocation10 + $0xaa0] sm:$0xff]  ;;  %v3833_v27 = vld [vmem:[#allocation10 + $0xa88] sm:$0xff] }
 0x370   :  { %3739 = vmatprep.subr.bf16.mxu0 %v6587_v29  ;;  %3780 = vmatprep.subr.bf16.mxu1 %v6589_v30  ;;  %v3837_v29 = vld [vmem:[#allocation10 + $0xaa8] sm:$0xff]  ;;  %v6670_v30 = vcombine.low %v3840_v15, %v3844_v19  ;;  %v6663_v32 = vcombine.high %v3832_v25, %v3836_v26 }
 0x371   :  { %v6665_v33 = vcombine.high %v3833_v27, %v3837_v29  ;;  %v6664_v44 = vcombine.low %v3833_v27, %v3837_v29 }
 0x373   :  { %3740 = vmatpush1.bf16.msra.mxu0 %v6586_v37  ;;  %3781 = vmatpush1.bf16.msra.mxu1 %v6588_v40  ;;  %v3828_v37 = vld [vmem:[#allocation10 + $0xa60] sm:$0xff]  ;;  %v3825_v40 = vld [vmem:[#allocation10 + $0xa48] sm:$0xff] }
 0x374   :  { %4203 = vmatprep.subr.bf16.mxu0 %v6703_v41  ;;  %4244 = vmatprep.subr.bf16.mxu1 %v6705_v43  ;;  %v3829_v41 = vld [vmem:[#allocation10 + $0xa68] sm:$0xff]  ;;  %v6662_v43 = vcombine.low %v3832_v25, %v3836_v26  ;;  %v6655_v45 = vcombine.high %v3824_v34, %v3828_v37  ;;  %v3850_v26 = vld [vmem:[#allocation10 + $0xb10] sm:$0xff] }
 0x375   :  { %v6657_v55 = vcombine.high %v3825_v40, %v3829_v41  ;;  %v6656_v52 = vcombine.low %v3825_v40, %v3829_v41  ;;  %v3842_v41 = vld [vmem:[#allocation10 + $0xad0] sm:$0xff] }
 0x376   :  { %v2093_v63 = vpop.f32.mrf.mxu0  ;;  %v2134_v57 = vpop.f32.mrf.mxu1  ;;  %3758 = vmatmul.mubr.bf16.vlgmr.msra.gmra.mxu0 %v7722_v39  ;;  %3799 = vmatmul.mubr.bf16.vlgmr.msra.gmra.mxu1 %v7722_v39 }
 0x377   :  { %v7790_v10 = vadd.f32 %v2093_v63, %v7759_v12  ;;  %v7793_v60 = vadd.f32 %v2134_v57, %v7761_v13  ;;  %4204 = vmatpush1.bf16.msra.mxu0 %v6702_v51  ;;  %4245 = vmatpush1.bf16.msra.mxu1 %v6704_v46  ;;  %v3852_v12 = vld [vmem:[#allocation10 + $0xb20] sm:$0xff]  ;;  %v3853_v13 = vld [vmem:[#allocation10 + $0xb28] sm:$0xff]  ;;  %v3878_v63 = vld [vmem:[#allocation10 + $0xbf0] sm:$0xff] }
 0x378   :  { %v2095_v49 = vpop.f32.mrf.mxu0  ;;  %v2136_v0 = vpop.f32.mrf.mxu1  ;;  %4205 = vmatprep.subr.bf16.mxu0 %v6695_v48  ;;  %4246 = vmatprep.subr.bf16.mxu1 %v6697_v50  ;;  %v6678_v22 = vcombine.low %v3848_v2, %v3852_v12  ;;  %v6680_v23 = vcombine.low %v3849_v5, %v3853_v13  ;;  %v3820_v51 = vld [vmem:[#allocation10 + $0xa20] sm:$0xff]  ;;  %v3817_v46 = vld [vmem:[#allocation10 + $0xa08] sm:$0xff]  ;;  %v6654_v50 = vcombine.low %v3824_v34, %v3828_v37  ;;  %v3875_v57 = vld [vmem:[#allocation10 + $0xbd8] sm:$0xff] }
 0x379   :  { %v7796_v3 = vadd.f32 %v2095_v49, %v7765_v16  ;;  %v7799_v4 = vadd.f32 %v2136_v0, %v7767_v17  ;;  %4235 = vmatprep.mubr.bf16.mxu0 %v7529_v47  ;;  %4276 = vmatprep.mubr.bf16.mxu1 %v7529_v47  ;;  %v6679_v16 = vcombine.high %v3848_v2, %v3852_v12  ;;  %v3821_v48 = vld [vmem:[#allocation10 + $0xa28] sm:$0xff]  ;;  %v3870_v2 = vld [vmem:[#allocation10 + $0xbb0] sm:$0xff]  ;;  %v3867_v12 = vld [vmem:[#allocation10 + $0xb98] sm:$0xff] }
 0x37a   :  { %v2097_v6 = vpop.f32.mrf.mxu0  ;;  %v2138_v7 = vpop.f32.mrf.mxu1  ;;  %v6681_v17 = vcombine.high %v3849_v5, %v3853_v13  ;;  %v6647_v53 = vcombine.high %v3816_v18, %v3820_v51  ;;  %v6649_v54 = vcombine.high %v3817_v46, %v3821_v48  ;;  %v6648_v49 = vcombine.low %v3817_v46, %v3821_v48  ;;  %v3871_v5 = vld [vmem:[#allocation10 + $0xbb8] sm:$0xff]  ;;  %v3834_v48 = vld [vmem:[#allocation10 + $0xa90] sm:$0xff] }
 0x37b   :  { %4206 = vmatpush1.bf16.msra.mxu0 %v6694_v58  ;;  %4247 = vmatpush1.bf16.msra.mxu1 %v6696_v61  ;;  %v3879_v58 = vld [vmem:[#allocation10 + $0xbf8] sm:$0xff]  ;;  %v6646_v61 = vcombine.low %v3816_v18, %v3820_v51  ;;  %v6707_v0 = vcombine.high %v3874_v62, %v3878_v63  ;;  %v6706_v13 = vcombine.low %v3874_v62, %v3878_v63  ;;  %v7804_v7 = vrot.slane %v7722_v39, 4 }
 0x37c   :  { %v2098_v11 = vpop.f32.mrf.mxu0  ;;  %v2139_v14 = vpop.f32.mrf.mxu1  ;;  %4207 = vmatprep.subr.bf16.mxu0 %v6687_v59  ;;  %4248 = vmatprep.subr.bf16.mxu1 %v6689_v1  ;;  %v6709_v59 = vcombine.high %v3875_v57, %v3879_v58  ;;  %v3866_v1 = vld [vmem:[#allocation10 + $0xb90] sm:$0xff]  ;;  %v6708_v6 = vcombine.low %v3875_v57, %v3879_v58 }
 0x37d   :  { %v3858_v11 = vld [vmem:[#allocation10 + $0xb50] sm:$0xff]  ;;  %v6698_v20 = vcombine.low %v3866_v1, %v3870_v2 }
 0x37e   :  { %v3862_v14 = vld [vmem:[#allocation10 + $0xb70] sm:$0xff] }
 0x37f   :  { %4208 = vmatpush1.bf16.msra.mxu0 %v6686_v8  ;;  %4249 = vmatpush1.bf16.msra.mxu1 %v6688_v9  ;;  %v6699_v8 = vcombine.high %v3866_v1, %v3870_v2  ;;  %v6701_v9 = vcombine.high %v3867_v12, %v3871_v5  ;;  %v3826_v58 = vld [vmem:[#allocation10 + $0xa50] sm:$0xff] }
 0x380   :  { %4209 = vmatprep.subr.bf16.mxu0 %v6679_v16  ;;  %4250 = vmatprep.subr.bf16.mxu1 %v6681_v17  ;;  %v3859_v16 = vld [vmem:[#allocation10 + $0xb58] sm:$0xff] }
 0x381   :  { %v3863_v17 = vld [vmem:[#allocation10 + $0xb78] sm:$0xff] }
 0x382   :  { %v6693_v25 = vcombine.high %v3859_v16, %v3863_v17  ;;  %v6692_v34 = vcombine.low %v3859_v16, %v3863_v17  ;;  %v4432_v17 = vld [vmem:[#allocation10 + $0xdc0] sm:$0xff] }
 0x383   :  { %4210 = vmatpush1.bf16.msra.mxu0 %v6678_v22  ;;  %4251 = vmatpush1.bf16.msra.mxu1 %v6680_v23  ;;  %v6700_v22 = vcombine.low %v3867_v12, %v3871_v5  ;;  %v3818_v5 = vld [vmem:[#allocation10 + $0xa10] sm:$0xff] }
 0x384   :  { %4211 = vmatprep.subr.bf16.mxu0 %v6671_v24  ;;  %4252 = vmatprep.subr.bf16.mxu1 %v6673_v56  ;;  %v6691_v56 = vcombine.high %v3858_v11, %v3862_v14 }
 0x387   :  { %4212 = vmatpush1.bf16.msra.mxu0 %v6670_v30  ;;  %4253 = vmatpush1.bf16.msra.mxu1 %v6672_v28  ;;  %v3851_v30 = vld [vmem:[#allocation10 + $0xb18] sm:$0xff] }
 0x388   :  { %4213 = vmatprep.subr.bf16.mxu0 %v6663_v32  ;;  %4254 = vmatprep.subr.bf16.mxu1 %v6665_v33  ;;  %v6690_v33 = vcombine.low %v3858_v11, %v3862_v14 }
 0x38b   :  { %4214 = vmatpush1.bf16.msra.mxu0 %v6662_v43  ;;  %4255 = vmatpush1.bf16.msra.mxu1 %v6664_v44  ;;  %v3846_v43 = vld [vmem:[#allocation10 + $0xaf0] sm:$0xff]  ;;  %v3843_v44 = vld [vmem:[#allocation10 + $0xad8] sm:$0xff] }
 0x38c   :  { %4215 = vmatprep.subr.bf16.mxu0 %v6655_v45  ;;  %4256 = vmatprep.subr.bf16.mxu1 %v6657_v55  ;;  %v3847_v45 = vld [vmem:[#allocation10 + $0xaf8] sm:$0xff]  ;;  %v6675_v51 = vcombine.high %v3842_v41, %v3846_v43 }
 0x38d   :  { %v6677_v46 = vcombine.high %v3843_v44, %v3847_v45  ;;  %v6676_v62 = vcombine.low %v3843_v44, %v3847_v45 }
 0x38f   :  { %4216 = vmatpush1.bf16.msra.mxu0 %v6654_v50  ;;  %4257 = vmatpush1.bf16.msra.mxu1 %v6656_v52  ;;  %v3838_v50 = vld [vmem:[#allocation10 + $0xab0] sm:$0xff]  ;;  %v3835_v52 = vld [vmem:[#allocation10 + $0xa98] sm:$0xff] }
 0x390   :  { %4217 = vmatprep.subr.bf16.mxu0 %v6647_v53  ;;  %4258 = vmatprep.subr.bf16.mxu1 %v6649_v54  ;;  %v3839_v53 = vld [vmem:[#allocation10 + $0xab8] sm:$0xff]  ;;  %v6674_v54 = vcombine.low %v3842_v41, %v3846_v43  ;;  %v6667_v63 = vcombine.high %v3834_v48, %v3838_v50 }
 0x391   :  { %v6669_v57 = vcombine.high %v3835_v52, %v3839_v53  ;;  %v6668_v1 = vcombine.low %v3835_v52, %v3839_v53  ;;  %v4409_v53 = vld [vmem:[#allocation10 + $0xd08] sm:$0xff] }
 0x393   :  { %4218 = vmatpush1.bf16.msra.mxu0 %v6646_v61  ;;  %4259 = vmatpush1.bf16.msra.mxu1 %v6648_v49  ;;  %v3830_v61 = vld [vmem:[#allocation10 + $0xa70] sm:$0xff]  ;;  %v3827_v49 = vld [vmem:[#allocation10 + $0xa58] sm:$0xff] }
 0x394   :  { %4285 = vmatprep.subr.bf16.mxu0 %v6707_v0  ;;  %4326 = vmatprep.subr.bf16.mxu1 %v6709_v59  ;;  %v3831_v0 = vld [vmem:[#allocation10 + $0xa78] sm:$0xff]  ;;  %v6666_v59 = vcombine.low %v3834_v48, %v3838_v50  ;;  %v6659_v2 = vcombine.high %v3826_v58, %v3830_v61  ;;  %v4408_v50 = vld [vmem:[#allocation10 + $0xd00] sm:$0xff] }
 0x395   :  { %v6661_v12 = vcombine.high %v3827_v49, %v3831_v0  ;;  %v6660_v11 = vcombine.low %v3827_v49, %v3831_v0  ;;  %v4400_v49 = vld [vmem:[#allocation10 + $0xcc0] sm:$0xff] }
 0x396   :  { %v2560_v15 = vpop.f32.mrf.mxu0  ;;  %v2601_v19 = vpop.f32.mrf.mxu1  ;;  %4236 = vmatmul.mubr.bf16.vlgmr.msra.gmra.mxu0 %v7804_v7  ;;  %4277 = vmatmul.mubr.bf16.vlgmr.msra.gmra.mxu1 %v7804_v7  ;;  %v4404_v0 = vld [vmem:[#allocation10 + $0xce0] sm:$0xff] }
 0x397   :  { %v7809_v21 = vadd.f32 %v2560_v15, %v7774_v35  ;;  %v7812_v39 = vadd.f32 %v2601_v19, %v7777_v36  ;;  %4286 = vmatpush1.bf16.msra.mxu0 %v6706_v13  ;;  %4327 = vmatpush1.bf16.msra.mxu1 %v6708_v6  ;;  %v3854_v35 = vld [vmem:[#allocation10 + $0xb30] sm:$0xff]  ;;  %v3855_v36 = vld [vmem:[#allocation10 + $0xb38] sm:$0xff]  ;;  %v4436_v15 = vld [vmem:[#allocation10 + $0xde0] sm:$0xff] }
 0x398   :  { %v2562_v23 = vpop.f32.mrf.mxu0  ;;  %v2603_v24 = vpop.f32.mrf.mxu1  ;;  %4287 = vmatprep.subr.bf16.mxu0 %v6699_v8  ;;  %4328 = vmatprep.subr.bf16.mxu1 %v6701_v9  ;;  %v6682_v55 = vcombine.low %v3850_v26, %v3854_v35  ;;  %v6684_v18 = vcombine.low %v3851_v30, %v3855_v36  ;;  %v3822_v13 = vld [vmem:[#allocation10 + $0xa30] sm:$0xff]  ;;  %v3819_v6 = vld [vmem:[#allocation10 + $0xa18] sm:$0xff]  ;;  %v6658_v9 = vcombine.low %v3826_v58, %v3830_v61  ;;  %v4433_v19 = vld [vmem:[#allocation10 + $0xdc8] sm:$0xff] }
 0x399   :  { %v7815_v27 = vadd.f32 %v2562_v23, %v7780_v38  ;;  %v7818_v29 = vadd.f32 %v2603_v24, %v7783_v42  ;;  %4317 = vmatprep.mubr.bf16.mxu0 %v7529_v47  ;;  %4358 = vmatprep.mubr.bf16.mxu1 %v7529_v47  ;;  %v6683_v38 = vcombine.high %v3850_v26, %v3854_v35  ;;  %v3823_v8 = vld [vmem:[#allocation10 + $0xa38] sm:$0xff]  ;;  %v4428_v26 = vld [vmem:[#allocation10 + $0xda0] sm:$0xff]  ;;  %v4425_v35 = vld [vmem:[#allocation10 + $0xd88] sm:$0xff] }
 0x39a   :  { %v2564_v28 = vpop.f32.mrf.mxu0  ;;  %v2605_v32 = vpop.f32.mrf.mxu1  ;;  %v6685_v42 = vcombine.high %v3851_v30, %v3855_v36  ;;  %v6651_v14 = vcombine.high %v3818_v5, %v3822_v13  ;;  %v6653_v16 = vcombine.high %v3819_v6, %v3823_v8  ;;  %v6652_v23 = vcombine.low %v3819_v6, %v3823_v8  ;;  %v4429_v30 = vld [vmem:[#allocation10 + $0xda8] sm:$0xff]  ;;  %v4392_v6 = vld [vmem:[#allocation10 + $0xc80] sm:$0xff] }
 0x39b   :  { %4288 = vmatpush1.bf16.msra.mxu0 %v6698_v20  ;;  %4329 = vmatpush1.bf16.msra.mxu1 %v6700_v22  ;;  %v4437_v20 = vld [vmem:[#allocation10 + $0xde8] sm:$0xff]  ;;  %v6650_v22 = vcombine.low %v3818_v5, %v3822_v13  ;;  %v6767_v24 = vcombine.high %v4432_v17, %v4436_v15  ;;  %v6766_v36 = vcombine.low %v4432_v17, %v4436_v15  ;;  %v4396_v8 = vld [vmem:[#allocation10 + $0xca0] sm:$0xff] }
 0x39c   :  { %v2565_v37 = vpop.f32.mrf.mxu0  ;;  %v2606_v40 = vpop.f32.mrf.mxu1  ;;  %4289 = vmatprep.subr.bf16.mxu0 %v6691_v56  ;;  %4330 = vmatprep.subr.bf16.mxu1 %v6693_v25  ;;  %v6769_v56 = vcombine.high %v4433_v19, %v4437_v20  ;;  %v4424_v25 = vld [vmem:[#allocation10 + $0xd80] sm:$0xff]  ;;  %v6768_v28 = vcombine.low %v4433_v19, %v4437_v20  ;;  %v6735_v5 = vcombine.high %v4400_v49, %v4404_v0 }
 0x39d   :  { %v6759_v32 = vcombine.high %v4424_v25, %v4428_v26  ;;  %v4420_v37 = vld [vmem:[#allocation10 + $0xd60] sm:$0xff]  ;;  %v4417_v40 = vld [vmem:[#allocation10 + $0xd48] sm:$0xff]  ;;  %v6758_v43 = vcombine.low %v4424_v25, %v4428_v26  ;;  %v6727_v17 = vcombine.high %v4392_v6, %v4396_v8 }
 0x39e   :  { %v4384_v19 = vld [vmem:[#allocation10 + $0xc40] sm:$0xff] }
 0x39f   :  { %4290 = vmatpush1.bf16.msra.mxu0 %v6690_v33  ;;  %4331 = vmatpush1.bf16.msra.mxu1 %v6692_v34  ;;  %v6761_v33 = vcombine.high %v4425_v35, %v4429_v30  ;;  %v4416_v34 = vld [vmem:[#allocation10 + $0xd40] sm:$0xff] }
 0x3a0   :  { %4291 = vmatprep.subr.bf16.mxu0 %v6683_v38  ;;  %4332 = vmatprep.subr.bf16.mxu1 %v6685_v42  ;;  %v4421_v38 = vld [vmem:[#allocation10 + $0xd68] sm:$0xff]  ;;  %v4388_v20 = vld [vmem:[#allocation10 + $0xc60] sm:$0xff] }
 0x3a1   :  { %v6753_v48 = vcombine.high %v4417_v40, %v4421_v38  ;;  %v6719_v25 = vcombine.high %v4384_v19, %v4388_v20 }
 0x3a3   :  { %4292 = vmatpush1.bf16.msra.mxu0 %v6682_v55  ;;  %4333 = vmatpush1.bf16.msra.mxu1 %v6684_v18  ;;  %v6760_v55 = vcombine.low %v4425_v35, %v4429_v30  ;;  %v4376_v35 = vld [vmem:[#allocation10 + $0xc00] sm:$0xff] }
 0x3a4   :  { %4293 = vmatprep.subr.bf16.mxu0 %v6675_v51  ;;  %4334 = vmatprep.subr.bf16.mxu1 %v6677_v46  ;;  %v6751_v46 = vcombine.high %v4416_v34, %v4420_v37  ;;  %v4380_v30 = vld [vmem:[#allocation10 + $0xc20] sm:$0xff] }
 0x3a7   :  { %4294 = vmatpush1.bf16.msra.mxu0 %v6674_v54  ;;  %4335 = vmatpush1.bf16.msra.mxu1 %v6676_v62 }
 0x3a8   :  { %4295 = vmatprep.subr.bf16.mxu0 %v6667_v63  ;;  %4336 = vmatprep.subr.bf16.mxu1 %v6669_v57  ;;  %v6750_v63 = vcombine.low %v4416_v34, %v4420_v37  ;;  %v6752_v57 = vcombine.low %v4417_v40, %v4421_v38  ;;  %v6711_v34 = vcombine.high %v4376_v35, %v4380_v30  ;;  %v4434_v40 = vld [vmem:[#allocation10 + $0xdd0] sm:$0xff] }
 0x3a9   :  { %v4438_v38 = vld [vmem:[#allocation10 + $0xdf0] sm:$0xff] }
 0x3ab   :  { %4296 = vmatpush1.bf16.msra.mxu0 %v6666_v59  ;;  %4337 = vmatpush1.bf16.msra.mxu1 %v6668_v1  ;;  %v4401_v59 = vld [vmem:[#allocation10 + $0xcc8] sm:$0xff] }
 0x3ac   :  { %4297 = vmatprep.subr.bf16.mxu0 %v6659_v2  ;;  %4338 = vmatprep.subr.bf16.mxu1 %v6661_v12  ;;  %v4405_v1 = vld [vmem:[#allocation10 + $0xce8] sm:$0xff] }
 0x3ad   :  { %v6737_v13 = vcombine.high %v4401_v59, %v4405_v1 }
 0x3af   :  { %4298 = vmatpush1.bf16.msra.mxu0 %v6658_v9  ;;  %4339 = vmatpush1.bf16.msra.mxu1 %v6660_v11  ;;  %v4393_v9 = vld [vmem:[#allocation10 + $0xc88] sm:$0xff] }
 0x3b0   :  { %4299 = vmatprep.subr.bf16.mxu0 %v6651_v14  ;;  %4340 = vmatprep.subr.bf16.mxu1 %v6653_v16  ;;  %v4397_v11 = vld [vmem:[#allocation10 + $0xca8] sm:$0xff]  ;;  %v6734_v14 = vcombine.low %v4400_v49, %v4404_v0  ;;  %v6736_v16 = vcombine.low %v4401_v59, %v4405_v1 }
 0x3b1   :  { %v6729_v15 = vcombine.high %v4393_v9, %v4397_v11 }
 0x3b3   :  { %4300 = vmatpush1.bf16.msra.mxu0 %v6650_v22  ;;  %4341 = vmatpush1.bf16.msra.mxu1 %v6652_v23  ;;  %v4385_v22 = vld [vmem:[#allocation10 + $0xc48] sm:$0xff] }
 0x3b4   :  { %4760 = vmatprep.subr.bf16.mxu0 %v6767_v24  ;;  %4801 = vmatprep.subr.bf16.mxu1 %v6769_v56  ;;  %v4389_v23 = vld [vmem:[#allocation10 + $0xc68] sm:$0xff]  ;;  %v6726_v24 = vcombine.low %v4392_v6, %v4396_v8  ;;  %v6728_v56 = vcombine.low %v4393_v9, %v4397_v11  ;;  %v4410_v6 = vld [vmem:[#allocation10 + $0xd10] sm:$0xff]  ;;  %v4411_v11 = vld [vmem:[#allocation10 + $0xd18] sm:$0xff] }
 0x3b5   :  { %v6721_v26 = vcombine.high %v4385_v22, %v4389_v23 }
 0x3b6   :  { %v2642_v42 = vpop.f32.mrf.mxu0  ;;  %v2683_v41 = vpop.f32.mrf.mxu1  ;;  %4318 = vmatmul.mubr.bf16.vlgmr.msra.gmra.mxu0 %v7804_v7  ;;  %4359 = vmatmul.mubr.bf16.vlgmr.msra.gmra.mxu1 %v7804_v7 }
 0x3b7   :  { %v7825_v44 = vadd.f32 %v2642_v42, %v7790_v10  ;;  %v7828_v45 = vadd.f32 %v2683_v41, %v7793_v60  ;;  %4761 = vmatpush1.bf16.msra.mxu0 %v6766_v36  ;;  %4802 = vmatpush1.bf16.msra.mxu1 %v6768_v28  ;;  %v4412_v10 = vld [vmem:[#allocation10 + $0xd20] sm:$0xff]  ;;  %v4413_v60 = vld [vmem:[#allocation10 + $0xd28] sm:$0xff]  ;;  %v4435_v42 = vld [vmem:[#allocation10 + $0xdd8] sm:$0xff] }
 0x3b8   :  { %v2644_v18 = vpop.f32.mrf.mxu0  ;;  %v2685_v51 = vpop.f32.mrf.mxu1  ;;  %4762 = vmatprep.subr.bf16.mxu0 %v6759_v32  ;;  %4803 = vmatprep.subr.bf16.mxu1 %v6761_v33  ;;  %v6742_v2 = vcombine.low %v4408_v50, %v4412_v10  ;;  %v6744_v12 = vcombine.low %v4409_v53, %v4413_v60  ;;  %v4377_v36 = vld [vmem:[#allocation10 + $0xc08] sm:$0xff]  ;;  %v6718_v32 = vcombine.low %v4384_v19, %v4388_v20  ;;  %v4439_v41 = vld [vmem:[#allocation10 + $0xdf8] sm:$0xff] }
 0x3b9   :  { %v7831_v52 = vadd.f32 %v2644_v18, %v7796_v3  ;;  %v7834_v7 = vadd.f32 %v2685_v51, %v7799_v4  ;;  %4792 = vmatprep.mubr.bf16.mxu0 %v7529_v47  ;;  %4833 = vmatprep.mubr.bf16.mxu1 %v7529_v47  ;;  %v6743_v3 = vcombine.high %v4408_v50, %v4412_v10  ;;  %v4381_v28 = vld [vmem:[#allocation10 + $0xc28] sm:$0xff]  ;;  %v4427_v50 = vld [vmem:[#allocation10 + $0xd98] sm:$0xff] }
 0x3ba   :  { %v2646_v54 = vpop.f32.mrf.mxu0  ;;  %v2687_v62 = vpop.f32.mrf.mxu1  ;;  %v6745_v4 = vcombine.high %v4409_v53, %v4413_v60  ;;  %v6720_v33 = vcombine.low %v4385_v22, %v4389_v23  ;;  %v6713_v37 = vcombine.high %v4377_v36, %v4381_v28  ;;  %v6771_v18 = vcombine.high %v4434_v40, %v4438_v38  ;;  %v4431_v10 = vld [vmem:[#allocation10 + $0xdb8] sm:$0xff]  ;;  %v4402_v22 = vld [vmem:[#allocation10 + $0xcd0] sm:$0xff] }
 0x3bb   :  { %4763 = vmatpush1.bf16.msra.mxu0 %v6758_v43  ;;  %4804 = vmatpush1.bf16.msra.mxu1 %v6760_v55  ;;  %v6710_v43 = vcombine.low %v4376_v35, %v4380_v30  ;;  %v6712_v55 = vcombine.low %v4377_v36, %v4381_v28  ;;  %v6773_v51 = vcombine.high %v4435_v42, %v4439_v41  ;;  %v4406_v23 = vld [vmem:[#allocation10 + $0xcf0] sm:$0xff] }
 0x3bc   :  { %v2647_v58 = vpop.f32.mrf.mxu0  ;;  %v2688_v61 = vpop.f32.mrf.mxu1  ;;  %4764 = vmatprep.subr.bf16.mxu0 %v6751_v46  ;;  %4805 = vmatprep.subr.bf16.mxu1 %v6753_v48  ;;  %v4426_v46 = vld [vmem:[#allocation10 + $0xd90] sm:$0xff]  ;;  %v6770_v53 = vcombine.low %v4434_v40, %v4438_v38  ;;  %v6772_v60 = vcombine.low %v4435_v42, %v4439_v41  ;;  %v6765_v62 = vcombine.high %v4427_v50, %v4431_v10 }
 0x3bd   :  { %v4430_v48 = vld [vmem:[#allocation10 + $0xdb0] sm:$0xff]  ;;  %v4419_v58 = vld [vmem:[#allocation10 + $0xd58] sm:$0xff]  ;;  %v6764_v1 = vcombine.low %v4427_v50, %v4431_v10  ;;  %v6739_v35 = vcombine.high %v4402_v22, %v4406_v23 }
 0x3be   :  { %v6763_v54 = vcombine.high %v4426_v46, %v4430_v48  ;;  %v4423_v61 = vld [vmem:[#allocation10 + $0xd78] sm:$0xff]  ;;  %v6762_v49 = vcombine.low %v4426_v46, %v4430_v48  ;;  %v4394_v36 = vld [vmem:[#allocation10 + $0xc90] sm:$0xff] }
 0x3bf   :  { %4765 = vmatpush1.bf16.msra.mxu0 %v6750_v63  ;;  %4806 = vmatpush1.bf16.msra.mxu1 %v6752_v57  ;;  %v4418_v63 = vld [vmem:[#allocation10 + $0xd50] sm:$0xff] }
 0x3c0   :  { %4766 = vmatprep.subr.bf16.mxu0 %v6743_v3  ;;  %4807 = vmatprep.subr.bf16.mxu1 %v6745_v4  ;;  %v4422_v57 = vld [vmem:[#allocation10 + $0xd70] sm:$0xff] }
 0x3c1   :  { %v4398_v28 = vld [vmem:[#allocation10 + $0xcb0] sm:$0xff] }
 0x3c2   :  { %v6731_v40 = vcombine.high %v4394_v36, %v4398_v28  ;;  %v4386_v42 = vld [vmem:[#allocation10 + $0xc50] sm:$0xff] }
 0x3c3   :  { %4767 = vmatpush1.bf16.msra.mxu0 %v6742_v2  ;;  %4808 = vmatpush1.bf16.msra.mxu1 %v6744_v12  ;;  %v4390_v41 = vld [vmem:[#allocation10 + $0xc70] sm:$0xff] }
 0x3c4   :  { %4768 = vmatprep.subr.bf16.mxu0 %v6735_v5  ;;  %4809 = vmatprep.subr.bf16.mxu1 %v6737_v13  ;;  %v6755_v5 = vcombine.high %v4418_v63, %v4422_v57  ;;  %v6757_v13 = vcombine.high %v4419_v58, %v4423_v61  ;;  %v6723_v46 = vcombine.high %v4386_v42, %v4390_v41  ;;  %v4378_v50 = vld [vmem:[#allocation10 + $0xc10] sm:$0xff] }
 0x3c5   :  { %v4382_v10 = vld [vmem:[#allocation10 + $0xc30] sm:$0xff] }
 0x3c7   :  { %4769 = vmatpush1.bf16.msra.mxu0 %v6734_v14  ;;  %4810 = vmatpush1.bf16.msra.mxu1 %v6736_v16 }
 0x3c8   :  { %4770 = vmatprep.subr.bf16.mxu0 %v6727_v17  ;;  %4811 = vmatprep.subr.bf16.mxu1 %v6729_v15  ;;  %v6754_v17 = vcombine.low %v4418_v63, %v4422_v57  ;;  %v6756_v15 = vcombine.low %v4419_v58, %v4423_v61  ;;  %v6715_v63 = vcombine.high %v4378_v50, %v4382_v10  ;;  %v4989_v58 = vld [vmem:[#allocation10 + $0xfc0] sm:$0xff] }
 0x3c9   :  { %v4993_v61 = vld [vmem:[#allocation10 + $0xfe0] sm:$0xff] }
 0x3cb   :  { %4771 = vmatpush1.bf16.msra.mxu0 %v6726_v24  ;;  %4812 = vmatpush1.bf16.msra.mxu1 %v6728_v56  ;;  %v4403_v24 = vld [vmem:[#allocation10 + $0xcd8] sm:$0xff] }
 0x3cc   :  { %4772 = vmatprep.subr.bf16.mxu0 %v6719_v25  ;;  %4813 = vmatprep.subr.bf16.mxu1 %v6721_v26  ;;  %v4407_v56 = vld [vmem:[#allocation10 + $0xcf8] sm:$0xff] }
 0x3cd   :  { %v6741_v30 = vcombine.high %v4403_v24, %v4407_v56 }
 0x3cf   :  { %4773 = vmatpush1.bf16.msra.mxu0 %v6718_v32  ;;  %4814 = vmatpush1.bf16.msra.mxu1 %v6720_v33  ;;  %v4395_v32 = vld [vmem:[#allocation10 + $0xc98] sm:$0xff] }
 0x3d0   :  { %4774 = vmatprep.subr.bf16.mxu0 %v6711_v34  ;;  %4815 = vmatprep.subr.bf16.mxu1 %v6713_v37  ;;  %v4399_v33 = vld [vmem:[#allocation10 + $0xcb8] sm:$0xff]  ;;  %v6738_v34 = vcombine.low %v4402_v22, %v4406_v23  ;;  %v6740_v37 = vcombine.low %v4403_v24, %v4407_v56 }
 0x3d1   :  { %v6733_v38 = vcombine.high %v4395_v32, %v4399_v33 }
 0x3d3   :  { %4775 = vmatpush1.bf16.msra.mxu0 %v6710_v43  ;;  %4816 = vmatpush1.bf16.msra.mxu1 %v6712_v55  ;;  %v4387_v43 = vld [vmem:[#allocation10 + $0xc58] sm:$0xff] }
 0x3d4   :  { %4842 = vmatprep.subr.bf16.mxu0 %v6771_v18  ;;  %4883 = vmatprep.subr.bf16.mxu1 %v6773_v51  ;;  %v4391_v55 = vld [vmem:[#allocation10 + $0xc78] sm:$0xff]  ;;  %v6730_v18 = vcombine.low %v4394_v36, %v4398_v28  ;;  %v6732_v51 = vcombine.low %v4395_v32, %v4399_v33  ;;  %v4965_v36 = vld [vmem:[#allocation10 + $0xf00] sm:$0xff]  ;;  %v4966_v33 = vld [vmem:[#allocation10 + $0xf08] sm:$0xff] }
 0x3d5   :  { %v6725_v48 = vcombine.high %v4387_v43, %v4391_v55 }
 0x3d6   :  { %v3120_v3 = vpop.f32.mrf.mxu0  ;;  %v3161_v4 = vpop.f32.mrf.mxu1  ;;  %4793 = vmatmul.mubr.bf16.vlgmr.msra.gmra.mxu0 %v7718_v31  ;;  %4834 = vmatmul.mubr.bf16.vlgmr.msra.gmra.mxu1 %v7718_v31 }
 0x3d7   :  { %v7841_v0 = vadd.f32 %v3120_v3, %v7809_v21  ;;  %v7844_v59 = vadd.f32 %v3161_v4, %v7812_v39  ;;  %4843 = vmatpush1.bf16.msra.mxu0 %v6770_v53  ;;  %4884 = vmatpush1.bf16.msra.mxu1 %v6772_v60  ;;  %v4414_v21 = vld [vmem:[#allocation10 + $0xd30] sm:$0xff]  ;;  %v4415_v39 = vld [vmem:[#allocation10 + $0xd38] sm:$0xff]  ;;  %v4990_v3 = vld [vmem:[#allocation10 + $0xfc8] sm:$0xff] }
 0x3d8   :  { %v3122_v2 = vpop.f32.mrf.mxu0  ;;  %v3163_v12 = vpop.f32.mrf.mxu1  ;;  %4844 = vmatprep.subr.bf16.mxu0 %v6763_v54  ;;  %4885 = vmatprep.subr.bf16.mxu1 %v6765_v62  ;;  %v6746_v25 = vcombine.low %v4410_v6, %v4414_v21  ;;  %v6748_v26 = vcombine.low %v4411_v11, %v4415_v39  ;;  %v4379_v53 = vld [vmem:[#allocation10 + $0xc18] sm:$0xff]  ;;  %v6722_v54 = vcombine.low %v4386_v42, %v4390_v41  ;;  %v4994_v4 = vld [vmem:[#allocation10 + $0xfe8] sm:$0xff] }
 0x3d9   :  { %v7847_v8 = vadd.f32 %v3122_v2, %v7815_v27  ;;  %v7850_v9 = vadd.f32 %v3163_v12, %v7818_v29  ;;  %4874 = vmatprep.mubr.bf16.mxu0 %v7529_v47  ;;  %4915 = vmatprep.mubr.bf16.mxu1 %v7529_v47  ;;  %v6747_v27 = vcombine.high %v4410_v6, %v4414_v21  ;;  %v4383_v60 = vld [vmem:[#allocation10 + $0xc38] sm:$0xff]  ;;  %v4982_v6 = vld [vmem:[#allocation10 + $0xf88] sm:$0xff] }
 0x3da   :  { %v3124_v14 = vpop.f32.mrf.mxu0  ;;  %v3165_v16 = vpop.f32.mrf.mxu1  ;;  %v6749_v29 = vcombine.high %v4411_v11, %v4415_v39  ;;  %v6724_v62 = vcombine.low %v4387_v43, %v4391_v55  ;;  %v6717_v57 = vcombine.high %v4379_v53, %v4383_v60  ;;  %v6831_v2 = vcombine.high %v4989_v58, %v4993_v61  ;;  %v4986_v21 = vld [vmem:[#allocation10 + $0xfa8] sm:$0xff]  ;;  %v4957_v43 = vld [vmem:[#allocation10 + $0xec0] sm:$0xff] }
 0x3db   :  { %4845 = vmatpush1.bf16.msra.mxu0 %v6762_v49  ;;  %4886 = vmatpush1.bf16.msra.mxu1 %v6764_v1  ;;  %v6714_v49 = vcombine.low %v4378_v50, %v4382_v10  ;;  %v6716_v1 = vcombine.low %v4379_v53, %v4383_v60  ;;  %v6833_v12 = vcombine.high %v4990_v3, %v4994_v4  ;;  %v4961_v55 = vld [vmem:[#allocation10 + $0xee0] sm:$0xff] }
 0x3dc   :  { %v3125_v19 = vpop.f32.mrf.mxu0  ;;  %v3166_v20 = vpop.f32.mrf.mxu1  ;;  %4846 = vmatprep.subr.bf16.mxu0 %v6755_v5  ;;  %4887 = vmatprep.subr.bf16.mxu1 %v6757_v13  ;;  %v4981_v5 = vld [vmem:[#allocation10 + $0xf80] sm:$0xff]  ;;  %v6830_v11 = vcombine.low %v4989_v58, %v4993_v61  ;;  %v6832_v39 = vcombine.low %v4990_v3, %v4994_v4  ;;  %v6825_v16 = vcombine.high %v4982_v6, %v4986_v21 }
 0x3dd   :  { %v4985_v13 = vld [vmem:[#allocation10 + $0xfa0] sm:$0xff]  ;;  %v4974_v19 = vld [vmem:[#allocation10 + $0xf48] sm:$0xff]  ;;  %v6824_v56 = vcombine.low %v4982_v6, %v4986_v21  ;;  %v6799_v50 = vcombine.high %v4957_v43, %v4961_v55 }
 0x3de   :  { %v6823_v14 = vcombine.high %v4981_v5, %v4985_v13  ;;  %v4978_v20 = vld [vmem:[#allocation10 + $0xf68] sm:$0xff]  ;;  %v6822_v22 = vcombine.low %v4981_v5, %v4985_v13  ;;  %v4949_v53 = vld [vmem:[#allocation10 + $0xe80] sm:$0xff] }
 0x3df   :  { %4847 = vmatpush1.bf16.msra.mxu0 %v6754_v17  ;;  %4888 = vmatpush1.bf16.msra.mxu1 %v6756_v15  ;;  %v4973_v17 = vld [vmem:[#allocation10 + $0xf40] sm:$0xff] }
 0x3e0   :  { %4848 = vmatprep.subr.bf16.mxu0 %v6747_v27  ;;  %4889 = vmatprep.subr.bf16.mxu1 %v6749_v29  ;;  %v4977_v15 = vld [vmem:[#allocation10 + $0xf60] sm:$0xff] }
 0x3e1   :  { %v4953_v60 = vld [vmem:[#allocation10 + $0xea0] sm:$0xff] }
 0x3e2   :  { %v6791_v58 = vcombine.high %v4949_v53, %v4953_v60  ;;  %v4941_v3 = vld [vmem:[#allocation10 + $0xe40] sm:$0xff] }
 0x3e3   :  { %4849 = vmatpush1.bf16.msra.mxu0 %v6746_v25  ;;  %4890 = vmatpush1.bf16.msra.mxu1 %v6748_v26  ;;  %v4945_v4 = vld [vmem:[#allocation10 + $0xe60] sm:$0xff] }
 0x3e4   :  { %4850 = vmatprep.subr.bf16.mxu0 %v6739_v35  ;;  %4891 = vmatprep.subr.bf16.mxu1 %v6741_v30  ;;  %v6815_v35 = vcombine.high %v4973_v17, %v4977_v15  ;;  %v6817_v30 = vcombine.high %v4974_v19, %v4978_v20  ;;  %v6783_v5 = vcombine.high %v4941_v3, %v4945_v4  ;;  %v4933_v6 = vld [vmem:[#allocation10 + $0xe00] sm:$0xff] }
 0x3e5   :  { %v4937_v21 = vld [vmem:[#allocation10 + $0xe20] sm:$0xff] }
 0x3e7   :  { %4851 = vmatpush1.bf16.msra.mxu0 %v6738_v34  ;;  %4892 = vmatpush1.bf16.msra.mxu1 %v6740_v37 }
 0x3e8   :  { %4852 = vmatprep.subr.bf16.mxu0 %v6731_v40  ;;  %4893 = vmatprep.subr.bf16.mxu1 %v6733_v38  ;;  %v6814_v40 = vcombine.low %v4973_v17, %v4977_v15  ;;  %v6816_v38 = vcombine.low %v4974_v19, %v4978_v20  ;;  %v6775_v17 = vcombine.high %v4933_v6, %v4937_v21  ;;  %v4991_v19 = vld [vmem:[#allocation10 + $0xfd0] sm:$0xff] }
 0x3e9   :  { %v4995_v20 = vld [vmem:[#allocation10 + $0xff0] sm:$0xff] }
 0x3eb   :  { %4853 = vmatpush1.bf16.msra.mxu0 %v6730_v18  ;;  %4894 = vmatpush1.bf16.msra.mxu1 %v6732_v51  ;;  %v4958_v18 = vld [vmem:[#allocation10 + $0xec8] sm:$0xff] }
 0x3ec   :  { %4854 = vmatprep.subr.bf16.mxu0 %v6723_v46  ;;  %4895 = vmatprep.subr.bf16.mxu1 %v6725_v48  ;;  %v4962_v51 = vld [vmem:[#allocation10 + $0xee8] sm:$0xff] }
 0x3ed   :  { %v6801_v10 = vcombine.high %v4958_v18, %v4962_v51 }
 0x3ef   :  { %4855 = vmatpush1.bf16.msra.mxu0 %v6722_v54  ;;  %4896 = vmatpush1.bf16.msra.mxu1 %v6724_v62  ;;  %v4950_v54 = vld [vmem:[#allocation10 + $0xe88] sm:$0xff] }
 0x3f0   :  { %4856 = vmatprep.subr.bf16.mxu0 %v6715_v63  ;;  %4897 = vmatprep.subr.bf16.mxu1 %v6717_v57  ;;  %v4954_v62 = vld [vmem:[#allocation10 + $0xea8] sm:$0xff]  ;;  %v6798_v63 = vcombine.low %v4957_v43, %v4961_v55  ;;  %v6800_v57 = vcombine.low %v4958_v18, %v4962_v51 }
 0x3f1   :  { %v6793_v61 = vcombine.high %v4950_v54, %v4954_v62 }
 0x3f3   :  { %4857 = vmatpush1.bf16.msra.mxu0 %v6714_v49  ;;  %4898 = vmatpush1.bf16.msra.mxu1 %v6716_v1  ;;  %v4942_v49 = vld [vmem:[#allocation10 + $0xe48] sm:$0xff] }
 0x3f4   :  { %5320 = vmatprep.subr.bf16.mxu0 %v6831_v2  ;;  %5361 = vmatprep.subr.bf16.mxu1 %v6833_v12  ;;  %v4946_v1 = vld [vmem:[#allocation10 + $0xe68] sm:$0xff]  ;;  %v6790_v2 = vcombine.low %v4949_v53, %v4953_v60  ;;  %v6792_v12 = vcombine.low %v4950_v54, %v4954_v62  ;;  %v4967_v53 = vld [vmem:[#allocation10 + $0xf10] sm:$0xff]  ;;  %v4968_v62 = vld [vmem:[#allocation10 + $0xf18] sm:$0xff] }
 0x3f5   :  { %v6785_v13 = vcombine.high %v4942_v49, %v4946_v1 }
 0x3f6   :  { %v3202_v27 = vpop.f32.mrf.mxu0  ;;  %v3243_v29 = vpop.f32.mrf.mxu1  ;;  %4875 = vmatmul.mubr.bf16.vlgmr.msra.gmra.mxu0 %v7718_v31  ;;  %4916 = vmatmul.mubr.bf16.vlgmr.msra.gmra.mxu1 %v7718_v31 }
 0x3f7   :  { %v7857_v23 = vadd.f32 %v3202_v27, %v7825_v44  ;;  %v7860_v24 = vadd.f32 %v3243_v29, %v7828_v45  ;;  %5321 = vmatpush1.bf16.msra.mxu0 %v6830_v11  ;;  %5362 = vmatpush1.bf16.msra.mxu1 %v6832_v39  ;;  %v4969_v44 = vld [vmem:[#allocation10 + $0xf20] sm:$0xff]  ;;  %v4970_v45 = vld [vmem:[#allocation10 + $0xf28] sm:$0xff]  ;;  %v4992_v27 = vld [vmem:[#allocation10 + $0xfd8] sm:$0xff] }
 0x3f8   :  { %v3204_v25 = vpop.f32.mrf.mxu0  ;;  %v3245_v26 = vpop.f32.mrf.mxu1  ;;  %5322 = vmatprep.subr.bf16.mxu0 %v6823_v14  ;;  %5363 = vmatprep.subr.bf16.mxu1 %v6825_v16  ;;  %v6806_v46 = vcombine.low %v4965_v36, %v4969_v44  ;;  %v6808_v48 = vcombine.low %v4966_v33, %v4970_v45  ;;  %v4934_v11 = vld [vmem:[#allocation10 + $0xe08] sm:$0xff]  ;;  %v6782_v14 = vcombine.low %v4941_v3, %v4945_v4  ;;  %v4996_v29 = vld [vmem:[#allocation10 + $0xff8] sm:$0xff] }
 0x3f9   :  { %v7863_v28 = vadd.f32 %v3204_v25, %v7831_v52  ;;  %v7866_v32 = vadd.f32 %v3245_v26, %v7834_v7  ;;  %5352 = vmatprep.mubr.bf16.mxu0 %v7529_v47  ;;  %5393 = vmatprep.mubr.bf16.mxu1 %v7529_v47  ;;  %v6807_v52 = vcombine.high %v4965_v36, %v4969_v44  ;;  %v4938_v39 = vld [vmem:[#allocation10 + $0xe28] sm:$0xff]  ;;  %v4984_v36 = vld [vmem:[#allocation10 + $0xf98] sm:$0xff] }
 0x3fa   :  { %v3206_v34 = vpop.f32.mrf.mxu0  ;;  %v3247_v37 = vpop.f32.mrf.mxu1  ;;  %v6809_v7 = vcombine.high %v4966_v33, %v4970_v45  ;;  %v6784_v16 = vcombine.low %v4942_v49, %v4946_v1  ;;  %v6777_v15 = vcombine.high %v4934_v11, %v4938_v39  ;;  %v6835_v25 = vcombine.high %v4991_v19, %v4995_v20  ;;  %v4988_v44 = vld [vmem:[#allocation10 + $0xfb8] sm:$0xff]  ;;  %v4959_v49 = vld [vmem:[#allocation10 + $0xed0] sm:$0xff] }
 0x3fb   :  { %5323 = vmatpush1.bf16.msra.mxu0 %v6822_v22  ;;  %5364 = vmatpush1.bf16.msra.mxu1 %v6824_v56  ;;  %v6774_v22 = vcombine.low %v4933_v6, %v4937_v21  ;;  %v6776_v56 = vcombine.low %v4934_v11, %v4938_v39  ;;  %v6837_v26 = vcombine.high %v4992_v27, %v4996_v29  ;;  %v7871_v34 = vrot.slane %v7718_v31, 4  ;;  %v4963_v1 = vld [vmem:[#allocation10 + $0xef0] sm:$0xff]  ;;  %v4952_v39 = vld [vmem:[#allocation10 + $0xe98] sm:$0xff] }
 0x3fc   :  { %v3207_v42 = vpop.f32.mrf.mxu0  ;;  %v3248_v41 = vpop.f32.mrf.mxu1  ;;  %5324 = vmatprep.subr.bf16.mxu0 %v6815_v35  ;;  %5365 = vmatprep.subr.bf16.mxu1 %v6817_v30  ;;  %v4983_v35 = vld [vmem:[#allocation10 + $0xf90] sm:$0xff]  ;;  %v6834_v33 = vcombine.low %v4991_v19, %v4995_v20  ;;  %v6836_v45 = vcombine.low %v4992_v27, %v4996_v29  ;;  %v6828_v51 = vcombine.low %v4984_v36, %v4988_v44  ;;  %v4944_v29 = vld [vmem:[#allocation10 + $0xe58] sm:$0xff] }
 0x3fd   :  { %v4987_v30 = vld [vmem:[#allocation10 + $0xfb0] sm:$0xff]  ;;  %v4976_v41 = vld [vmem:[#allocation10 + $0xf58] sm:$0xff] }
 0x3fe   :  { %v6827_v37 = vcombine.high %v4983_v35, %v4987_v30  ;;  %v4979_v42 = vld [vmem:[#allocation10 + $0xf70] sm:$0xff]  ;;  %v6826_v55 = vcombine.low %v4983_v35, %v4987_v30 }
 0x3ff   :  { %5325 = vmatpush1.bf16.msra.mxu0 %v6814_v40  ;;  %5366 = vmatpush1.bf16.msra.mxu1 %v6816_v38  ;;  %v6829_v40 = vcombine.high %v4984_v36, %v4988_v44  ;;  %v4975_v38 = vld [vmem:[#allocation10 + $0xf50] sm:$0xff]  ;;  %v4936_v44 = vld [vmem:[#allocation10 + $0xe18] sm:$0xff] }
 0x400   :  { %5326 = vmatprep.subr.bf16.mxu0 %v6807_v52  ;;  %5367 = vmatprep.subr.bf16.mxu1 %v6809_v7  ;;  %v4980_v52 = vld [vmem:[#allocation10 + $0xf78] sm:$0xff]  ;;  %v4951_v21 = vld [vmem:[#allocation10 + $0xe90] sm:$0xff] }
 0x401   :  { %v4955_v11 = vld [vmem:[#allocation10 + $0xeb0] sm:$0xff] }
 0x402   :  { %v4943_v20 = vld [vmem:[#allocation10 + $0xe50] sm:$0xff] }
 0x403   :  { %5327 = vmatpush1.bf16.msra.mxu0 %v6806_v46  ;;  %5368 = vmatpush1.bf16.msra.mxu1 %v6808_v48  ;;  %v4947_v27 = vld [vmem:[#allocation10 + $0xe70] sm:$0xff] }
 0x404   :  { %5328 = vmatprep.subr.bf16.mxu0 %v6799_v50  ;;  %5369 = vmatprep.subr.bf16.mxu1 %v6801_v10  ;;  %v6819_v50 = vcombine.high %v4975_v38, %v4979_v42  ;;  %v6821_v10 = vcombine.high %v4976_v41, %v4980_v52  ;;  %v4935_v30 = vld [vmem:[#allocation10 + $0xe10] sm:$0xff] }
 0x405   :  { %v4939_v36 = vld [vmem:[#allocation10 + $0xe30] sm:$0xff] }
 0x407   :  { %5329 = vmatpush1.bf16.msra.mxu0 %v6798_v63  ;;  %5370 = vmatpush1.bf16.msra.mxu1 %v6800_v57 }
 0x408   :  { %5330 = vmatprep.subr.bf16.mxu0 %v6791_v58  ;;  %5371 = vmatprep.subr.bf16.mxu1 %v6793_v61  ;;  %v6818_v58 = vcombine.low %v4975_v38, %v4979_v42  ;;  %v6820_v61 = vcombine.low %v4976_v41, %v4980_v52  ;;  %v6778_v42 = vcombine.low %v4935_v30, %v4939_v36 }
 0x40b   :  { %5331 = vmatpush1.bf16.msra.mxu0 %v6790_v2  ;;  %5372 = vmatpush1.bf16.msra.mxu1 %v6792_v12  ;;  %v4960_v2 = vld [vmem:[#allocation10 + $0xed8] sm:$0xff] }
 0x40c   :  { %5332 = vmatprep.subr.bf16.mxu0 %v6783_v5  ;;  %5373 = vmatprep.subr.bf16.mxu1 %v6785_v13  ;;  %v4964_v12 = vld [vmem:[#allocation10 + $0xef8] sm:$0xff]  ;;  %v6803_v13 = vcombine.high %v4959_v49, %v4963_v1 }
 0x40d   :  { %v6805_v6 = vcombine.high %v4960_v2, %v4964_v12 }
 0x40f   :  { %5333 = vmatpush1.bf16.msra.mxu0 %v6782_v14  ;;  %5374 = vmatpush1.bf16.msra.mxu1 %v6784_v16  ;;  %v4956_v14 = vld [vmem:[#allocation10 + $0xeb8] sm:$0xff]  ;;  %v6802_v16 = vcombine.low %v4959_v49, %v4963_v1  ;;  %v7275_v49 = vld [vmem:[#allocation13 + $0x20] sm:$0xff]  }
 0x410   :  { %5334 = vmatprep.subr.bf16.mxu0 %v6775_v17  ;;  %5375 = vmatprep.subr.bf16.mxu1 %v6777_v15  ;;  %v6804_v17 = vcombine.low %v4960_v2, %v4964_v12  ;;  %v6795_v15 = vcombine.high %v4951_v21, %v4955_v11  ;;  %v6797_v19 = vcombine.high %v4952_v39, %v4956_v14  ;;  %v7276_v1 = vld [vmem:[#allocation13 + $0xa0] sm:$0xff]   ;;  %v7277_v2 = vld [vmem:[#allocation13 + $0x58] sm:$0xff]  }
 0x411   :  { %v7278_v12 = vld [vmem:[#allocation13 + $0xd8] sm:$0xff]  }
 0x413   :  { %5335 = vmatpush1.bf16.msra.mxu0 %v6774_v22  ;;  %5376 = vmatpush1.bf16.msra.mxu1 %v6776_v56  ;;  %v4948_v22 = vld [vmem:[#allocation10 + $0xe78] sm:$0xff]  ;;  %v6794_v56 = vcombine.low %v4951_v21, %v4955_v11 }
 0x414   :  { %5402 = vmatprep.subr.bf16.mxu0 %v6835_v25  ;;  %5443 = vmatprep.subr.bf16.mxu1 %v6837_v26  ;;  %v6796_v25 = vcombine.low %v4952_v39, %v4956_v14  ;;  %v6787_v26 = vcombine.high %v4943_v20, %v4947_v27  ;;  %v6789_v35 = vcombine.high %v4944_v29, %v4948_v22  ;;  %v7283_v21 = vld [vmem:[#allocation13 + $0x10] sm:$0xff]  }
 0x415   :  { %v7284_v11 = vld [vmem:[#allocation13 + $0x90] sm:$0xff]  }
 0x416   :  { %v3677_v7 = vpop.f32.mrf.mxu0  ;;  %v3718_v43 = vpop.f32.mrf.mxu1  ;;  %5353 = vmatmul.mubr.bf16.vlgmr.msra.gmra.mxu0 %v7871_v34  ;;  %5394 = vmatmul.mubr.bf16.vlgmr.msra.gmra.mxu1 %v7871_v34 }
 0x417   :  { %v7876_v18 = vadd.f32 %v3677_v7, %v7841_v0  ;;  %v7879_v31 = vadd.f32 %v3718_v43, %v7844_v59  ;;  %5403 = vmatpush1.bf16.msra.mxu0 %v6834_v33  ;;  %5444 = vmatpush1.bf16.msra.mxu1 %v6836_v45  ;;  %v4971_v0 = vld [vmem:[#allocation10 + $0xf30] sm:$0xff]  ;;  %v4972_v59 = vld [vmem:[#allocation10 + $0xf38] sm:$0xff]  ;;  %v6786_v45 = vcombine.low %v4943_v20, %v4947_v27 }
 0x418   :  { %v3679_v46 = vpop.f32.mrf.mxu0  ;;  %v3720_v48 = vpop.f32.mrf.mxu1  ;;  %5404 = vmatprep.subr.bf16.mxu0 %v6827_v37  ;;  %5445 = vmatprep.subr.bf16.mxu1 %v6829_v40  ;;  %v6810_v5 = vcombine.low %v4967_v53, %v4971_v0  ;;  %v4940_v33 = vld [vmem:[#allocation10 + $0xe38] sm:$0xff]  ;;  %v6788_v37 = vcombine.low %v4944_v29, %v4948_v22  ;;  %v6779_v40 = vcombine.high %v4935_v30, %v4939_v36  ;;  %v7285_v20 = vld [vmem:[#allocation13 + $0x48] sm:$0xff]   ;;  %v7289_v30 = vld [vmem:[#allocation13 + $0x40] sm:$0xff]  }
 0x419   :  { %v7882_v60 = vadd.f32 %v3679_v46, %v7847_v8  ;;  %v7885_v54 = vadd.f32 %v3720_v48, %v7850_v9  ;;  %5434 = vmatprep.mubr.bf16.mxu0 %v7529_v47  ;;  %5475 = vmatprep.mubr.bf16.mxu1 %v7529_v47  ;;  %v6811_v8 = vcombine.high %v4967_v53, %v4971_v0  ;;  %v7286_v27 = vld [vmem:[#allocation13 + $0xc8] sm:$0xff]   ;;  %v7290_v36 = vld [vmem:[#allocation13 + $0xc0] sm:$0xff]  }
 0x41a   :  { %v3681_v63 = vpop.f32.mrf.mxu0  ;;  %v3722_v57 = vpop.f32.mrf.mxu1  ;;  %v6813_v9 = vcombine.high %v4968_v62, %v4972_v59  ;;  %v6812_v47 = vcombine.low %v4968_v62, %v4972_v59  ;;  %v6781_v38 = vcombine.high %v4936_v44, %v4940_v33  ;;  %v6780_v41 = vcombine.low %v4936_v44, %v4940_v33  ;;  %v7261_v59 = vld [vmem:[#allocation13 + $0x78] sm:$0xff]   ;;  %v7291_v44 = vld [vmem:[#allocation13] sm:$0xff]  }
 0x41b   :  { %5405 = vmatpush1.bf16.msra.mxu0 %v6826_v55  ;;  %5446 = vmatpush1.bf16.msra.mxu1 %v6828_v51  ;;  %v7263_v63 = vld [vmem:[#allocation13 + $0x38] sm:$0xff]   ;;  %v7265_v57 = vld [vmem:[#allocation13 + $0x70] sm:$0xff]   ;;  %v7292_v33 = vld [vmem:[#allocation13 + $0x80] sm:$0xff]  }
 0x41c   :  { %v3682_v3 = vpop.f32.mrf.mxu0  ;;  %v3723_v4 = vpop.f32.mrf.mxu1  ;;  %5406 = vmatprep.subr.bf16.mxu0 %v6819_v50  ;;  %5447 = vmatprep.subr.bf16.mxu1 %v6821_v10 }
 0x41d   :  { %v7271_v3 = vld [vmem:[#allocation13 + $0x28] sm:$0xff]  }
 0x41e   :  { %v7272_v4 = vld [vmem:[#allocation13 + $0xa8] sm:$0xff]  }
 0x41f   :  { %5407 = vmatpush1.bf16.msra.mxu0 %v6818_v58  ;;  %5448 = vmatpush1.bf16.msra.mxu1 %v6820_v61  ;;  %v7266_v58 = vld [vmem:[#allocation13 + $0xf0] sm:$0xff]   ;;  %v7270_v61 = vld [vmem:[#allocation13 + $0xe8] sm:$0xff]  }
 0x420   :  { %5408 = vmatprep.subr.bf16.mxu0 %v6811_v8  ;;  %5449 = vmatprep.subr.bf16.mxu1 %v6813_v9  ;;  %v7273_v8 = vld [vmem:[#allocation13 + $0x60] sm:$0xff]  }
 0x421   :  { %v7274_v9 = vld [vmem:[#allocation13 + $0xe0] sm:$0xff]  }
 0x423   :  { %5409 = vmatpush1.bf16.msra.mxu0 %v6810_v5  ;;  %5450 = vmatpush1.bf16.msra.mxu1 %v6812_v47  ;;  %v7279_v5 = vld [vmem:[#allocation13 + $0x18] sm:$0xff]  }
 0x424   :  { %5410 = vmatprep.subr.bf16.mxu0 %v6803_v13  ;;  %5451 = vmatprep.subr.bf16.mxu1 %v6805_v6  ;;  %v7280_v47 = vld [vmem:[#allocation13 + $0x98] sm:$0xff]   ;;  %v7281_v13 = vld [vmem:[#allocation13 + $0x50] sm:$0xff]  }
 0x425   :  { %v7282_v6 = vld [vmem:[#allocation13 + $0xd0] sm:$0xff]  }
 0x427   :  { %5411 = vmatpush1.bf16.msra.mxu0 %v6802_v16  ;;  %5452 = vmatpush1.bf16.msra.mxu1 %v6804_v17 }
 0x428   :  { %5412 = vmatprep.subr.bf16.mxu0 %v6795_v15  ;;  %5453 = vmatprep.subr.bf16.mxu1 %v6797_v19 }
 0x42b   :  { %5413 = vmatpush1.bf16.msra.mxu0 %v6794_v56  ;;  %5454 = vmatpush1.bf16.msra.mxu1 %v6796_v25  ;;  %v7287_v56 = vld [vmem:[#allocation13 + $0x8] sm:$0xff]  }
 0x42c   :  { %5414 = vmatprep.subr.bf16.mxu0 %v6787_v26  ;;  %5455 = vmatprep.subr.bf16.mxu1 %v6789_v35  ;;  %v7288_v25 = vld [vmem:[#allocation13 + $0x88] sm:$0xff]  }
 0x42f   :  { %5415 = vmatpush1.bf16.msra.mxu0 %v6786_v45  ;;  %5456 = vmatpush1.bf16.msra.mxu1 %v6788_v37 }
 0x430   :  { %5416 = vmatprep.subr.bf16.mxu0 %v6779_v40  ;;  %5457 = vmatprep.subr.bf16.mxu1 %v6781_v38 }
 0x433   :  { %5417 = vmatpush1.bf16.msra.mxu0 %v6778_v42  ;;  %5458 = vmatpush1.bf16.msra.mxu1 %v6780_v41 }
 0x434   :  { %6971 = vmatprep.subr.bf16.mxu0 %v7261_v59 }
 0x436   :  { %v3759_v52 = vpop.f32.mrf.mxu0  ;;  %v3800_v7 = vpop.f32.mrf.mxu1  ;;  %5435 = vmatmul.mubr.bf16.vlgmr.msra.gmra.mxu0 %v7871_v34  ;;  %5476 = vmatmul.mubr.bf16.vlgmr.msra.gmra.mxu1 %v7871_v34  ;;  %v7262_v34 = vld [vmem:[#allocation13 + $0xf8] sm:$0xff]  }
 0x437   :  { %v7892_v43 = vadd.f32 %v3759_v52, %v7857_v23  ;;  %v7895_v55 = vadd.f32 %v3800_v7, %v7860_v24  ;;  %v7264_v23 = vld [vmem:[#allocation13 + $0xb8] sm:$0xff]   ;;  %6993 = vmatprep.subr.bf16.mxu1 %v7262_v34  ;;  %6972 = vmatpush3.bf16.msra.mxu0 %v7263_v63  ;;  %v7267_v24 = vld [vmem:[#allocation13 + $0x30] sm:$0xff]  }
 0x438   :  { %v3761_v51 = vpop.f32.mrf.mxu0  ;;  %v3802_v46 = vpop.f32.mrf.mxu1  ;;  %6994 = vmatpush3.bf16.msra.mxu1 %v7264_v23  ;;  %6973 = vmatprep.subr.bf16.mxu0 %v7265_v57 }
 0x439   :  { %v7898_v48 = vadd.f32 %v3761_v51, %v7863_v28  ;;  %v7901_v50 = vadd.f32 %v3802_v46, %v7866_v32  ;;  %v7268_v28 = vld [vmem:[#allocation13 + $0xb0] sm:$0xff]   ;;  %6995 = vmatprep.subr.bf16.mxu1 %v7266_v58  ;;  %v7269_v32 = vld [vmem:[#allocation13 + $0x68] sm:$0xff]  }
 0x43a   :  { %v3763_v10 = vpop.f32.mrf.mxu0  ;;  %v3804_v53 = vpop.f32.mrf.mxu1 }
 0x43b   :  { %6974 = vmatpush3.bf16.msra.mxu0 %v7267_v24 }
 0x43c   :  { %v3764_v0 = vpop.f32.mrf.mxu0  ;;  %v3805_v62 = vpop.f32.mrf.mxu1  ;;  %6996 = vmatpush3.bf16.msra.mxu1 %v7268_v28  ;;  %6975 = vmatprep.subr.bf16.mxu0 %v7269_v32 }
 0x43d   :  { %6997 = vmatprep.subr.bf16.mxu1 %v7270_v61 }
 0x43f   :  { %6976 = vmatpush3.bf16.msra.mxu0 %v7271_v3 }
 0x440   :  { %6998 = vmatpush3.bf16.msra.mxu1 %v7272_v4  ;;  %6977 = vmatprep.subr.bf16.mxu0 %v7273_v8 }
 0x441   :  { %6999 = vmatprep.subr.bf16.mxu1 %v7274_v9 }
 0x443   :  { %6978 = vmatpush3.bf16.msra.mxu0 %v7275_v49  ;;  %v5494_v49 = vlaneseq }
 0x444   :  { %7000 = vmatpush3.bf16.msra.mxu1 %v7276_v1  ;;  %6979 = vmatprep.subr.bf16.mxu0 %v7277_v2 }
 0x445   :  { %7001 = vmatprep.subr.bf16.mxu1 %v7278_v12  ;;  %v7927_v1 = vshrl.u32 %v5494_v49, 7 }
 0x447   :  { %6980 = vmatpush3.bf16.msra.mxu0 %v7279_v5  ;;  %v5496_v2 = vsub.s32 0, %v7927_v1  ;;  %v5504_v12 = vsub.s32 2, %v7927_v1  ;;  %v7931_v5 = vld [vmem:[#allocation11] sm:$0xff]  ;;  %v5520_v49 = vsub.s32 6, %v7927_v1 }
 0x448   :  { %7002 = vmatpush3.bf16.msra.mxu1 %v7280_v47  ;;  %6981 = vmatprep.subr.bf16.mxu0 %v7281_v13  ;;  %v5500_v47 = vsub.s32 1, %v7927_v1  ;;  %v5508_v13 = vsub.s32 3, %v7927_v1 }
 0x449   :  { %7003 = vmatprep.subr.bf16.mxu1 %v7282_v6  ;;  %v5497_v6 = vrot.slane %v7931_v5, %v5496_v2  ;;  %v5516_v2 = vsub.s32 5, %v7927_v1 }
 0x44b   :  { %6982 = vmatpush3.bf16.msra.mxu0 %v7283_v21  ;;  %v5505_v21 = vrot.slane %v7931_v5, %v5504_v12  ;;  %v5524_v12 = vsub.s32 7, %v7927_v1 }
 0x44c   :  { %7004 = vmatpush3.bf16.msra.mxu1 %v7284_v11  ;;  %6983 = vmatprep.subr.bf16.mxu0 %v7285_v20 }
 0x44d   :  { %7005 = vmatprep.subr.bf16.mxu1 %v7286_v27 }
 0x44f   :  { %6984 = vmatpush3.bf16.msra.mxu0 %v7287_v56 }
 0x450   :  { %7006 = vmatpush3.bf16.msra.mxu1 %v7288_v25  ;;  %6985 = vmatprep.subr.bf16.mxu0 %v7289_v30 }
 0x451   :  { %7007 = vmatprep.subr.bf16.mxu1 %v7290_v36 }
 0x453   :  { %6986 = vmatpush3.bf16.msra.mxu0 %v7291_v44 }
 0x454   :  { %7008 = vmatpush3.bf16.msra.mxu1 %v7292_v33 }
 0x456   :  { %v4237_v39 = vpop.f32.mrf.mxu0  ;;  %v4278_v14 = vpop.f32.mrf.mxu1 }
 0x457   :  { %v4367_v16 = vadd.f32 %v4237_v39, %v7876_v18  ;;  %v4369_v17 = vadd.f32 %v4278_v14, %v7879_v31  ;;  %v5501_v14 = vrot.slane %v7931_v5, %v5500_v47  ;;  %v7315_v47 = vld [vmem:[#allocation13 + $0x110] sm:$0xff]  }
 0x458   :  { %v4239_v15 = vpop.f32.mrf.mxu0  ;;  %v4280_v19 = vpop.f32.mrf.mxu1 }
 0x459   :  { %v7906_v29 = vadd.f32 %v4239_v15, %v7882_v60  ;;  %v7909_v22 = vadd.f32 %v4280_v19, %v7885_v54  ;;  %v7293_v60 = vld [vmem:[#allocation13 + $0x178] sm:$0xff]  }
 0x45a   :  { %v4241_v26 = vpop.f32.mrf.mxu0  ;;  %v4282_v35 = vpop.f32.mrf.mxu1  ;;  %v7294_v54 = vld [vmem:[#allocation13 + $0x1f8] sm:$0xff]   ;;  %7015 = vmatprep.subr.bf16.mxu0 %v7293_v60 }
 0x45b   :  { %7037 = vmatprep.subr.bf16.mxu1 %v7294_v54 }
 0x45c   :  { %v4242_v18 = vpop.f32.mrf.mxu0  ;;  %v4283_v31 = vpop.f32.mrf.mxu1 }
 0x476   :  { %v4319_v45 = vpop.f32.mrf.mxu0  ;;  %v4360_v37 = vpop.f32.mrf.mxu1 }
 0x477   :  { %v4371_v40 = vadd.f32 %v4319_v45, %v7892_v43  ;;  %v4373_v38 = vadd.f32 %v4360_v37, %v7895_v55 }
 0x478   :  { %v4321_v42 = vpop.f32.mrf.mxu0  ;;  %v4362_v41 = vpop.f32.mrf.mxu1 }
 0x479   :  { %v7914_v52 = vadd.f32 %v4321_v42, %v7898_v48  ;;  %v7917_v7 = vadd.f32 %v4362_v41, %v7901_v50  ;;  %v7296_v42 = vld [vmem:[#allocation13 + $0x1b8] sm:$0xff]  }
 0x47a   :  { %v4323_v51 = vpop.f32.mrf.mxu0  ;;  %v4364_v46 = vpop.f32.mrf.mxu1 }
 0x47b   :  { %v7297_v46 = vld [vmem:[#allocation13 + $0x170] sm:$0xff]  }
 0x47c   :  { %v4324_v10 = vpop.f32.mrf.mxu0  ;;  %v4365_v53 = vpop.f32.mrf.mxu1 }
 0x47d   :  { %v7298_v10 = vld [vmem:[#allocation13 + $0x1f0] sm:$0xff]  }
 0x47e   :  { %v7299_v53 = vld [vmem:[#allocation13 + $0x130] sm:$0xff]  }
 0x496   :  { %v4794_v0 = vpop.f32.mrf.mxu0  ;;  %v4835_v62 = vpop.f32.mrf.mxu1 }
 0x497   :  { %v4924_v59 = vadd.f32 %v4794_v0, %v4367_v16  ;;  %v4926_v34 = vadd.f32 %v4835_v62, %v4369_v17  ;;  %v5509_v16 = vrot.slane %v7931_v5, %v5508_v13  ;;  %v7300_v0 = vld [vmem:[#allocation13 + $0x1b0] sm:$0xff]   ;;  %v7301_v62 = vld [vmem:[#allocation13 + $0x168] sm:$0xff]  }
 0x498   :  { %v4796_v63 = vpop.f32.mrf.mxu0  ;;  %v4837_v43 = vpop.f32.mrf.mxu1  ;;  %v7316_v13 = vld [vmem:[#allocation13 + $0x190] sm:$0xff]  }
 0x499   :  { %v4925_v17 = vadd.f32 %v4796_v63, %v7906_v29  ;;  %v4927_v15 = vadd.f32 %v4837_v43, %v7909_v22  ;;  %v7304_v63 = vld [vmem:[#allocation13 + $0x1a8] sm:$0xff]   ;;  %v7305_v43 = vld [vmem:[#allocation13 + $0x160] sm:$0xff]  }
 0x49a   :  { %v4798_v23 = vpop.f32.mrf.mxu0  ;;  %v4839_v55 = vpop.f32.mrf.mxu1 }
 0x49b   :  { %v7306_v23 = vld [vmem:[#allocation13 + $0x1e0] sm:$0xff]  }
 0x49c   :  { %v4799_v57 = vpop.f32.mrf.mxu0  ;;  %v4840_v58 = vpop.f32.mrf.mxu1  ;;  %v7307_v55 = vld [vmem:[#allocation13 + $0x120] sm:$0xff]  }
 0x49d   :  { %v7308_v57 = vld [vmem:[#allocation13 + $0x1a0] sm:$0xff]   ;;  %v7309_v58 = vld [vmem:[#allocation13 + $0x158] sm:$0xff]  }
 0x4b6   :  { %v4876_v24 = vpop.f32.mrf.mxu0  ;;  %v4917_v48 = vpop.f32.mrf.mxu1 }
 0x4b7   :  { %v7919_v28 = vadd.f32 %v4876_v24, %v4371_v40  ;;  %v7921_v50 = vadd.f32 %v4917_v48, %v4373_v38  ;;  %v7295_v38 = vld [vmem:[#allocation13 + $0x138] sm:$0xff]  }
 0x4b8   :  { %v7923_v32 = vpop.f32.mrf.mxu0  ;;  %v7925_v61 = vpop.f32.mrf.mxu1  ;;  %v7310_v24 = vld [vmem:[#allocation13 + $0x1d8] sm:$0xff]  }
 0x4b9   :  { %v7311_v48 = vld [vmem:[#allocation13 + $0x118] sm:$0xff]  }
 0x4ba   :  { %v4880_v3 = vpop.f32.mrf.mxu0  ;;  %v4921_v4 = vpop.f32.mrf.mxu1 }
 0x4bb   :  { %v7312_v3 = vld [vmem:[#allocation13 + $0x198] sm:$0xff]   ;;  %v7313_v4 = vld [vmem:[#allocation13 + $0x150] sm:$0xff]  }
 0x4bc   :  { %v4881_v8 = vpop.f32.mrf.mxu0  ;;  %v4922_v9 = vpop.f32.mrf.mxu1 }
 0x4bd   :  { %v7314_v8 = vld [vmem:[#allocation13 + $0x1d0] sm:$0xff]   ;;  %v5512_v9 = vsub.s32 4, %v7927_v1  ;;  %v5525_v1 = vrot.slane %v7931_v5, %v5524_v12 }
 0x4d6   :  { %v5354_v11 = vpop.f32.mrf.mxu0  ;;  %v5395_v39 = vpop.f32.mrf.mxu1 }
 0x4d7   :  { %v5484_v19 = vadd.f32 %v5354_v11, %v4924_v59  ;;  %v5486_v20 = vadd.f32 %v5395_v39, %v4926_v34  ;;  %v7302_v59 = vld [vmem:[#allocation13 + $0x1e8] sm:$0xff]   ;;  %v5513_v11 = vrot.slane %v7931_v5, %v5512_v9  ;;  %v5521_v39 = vrot.slane %v7931_v5, %v5520_v49 }
 0x4d8   :  { %v5356_v27 = vpop.f32.mrf.mxu0  ;;  %v5397_v56 = vpop.f32.mrf.mxu1  ;;  %v7303_v34 = vld [vmem:[#allocation13 + $0x128] sm:$0xff]  }
 0x4d9   :  { %v5534_v25 = vadd.f32 %v5497_v6, %v5484_v19  ;;  %v5536_v26 = vadd.f32 %v5505_v21, %v5486_v20  ;;  %v5485_v35 = vadd.f32 %v5356_v27, %v4925_v17  ;;  %v5487_v18 = vadd.f32 %v5397_v56, %v4927_v15  ;;  %v7317_v6 = vld [vmem:[#allocation13 + $0x148] sm:$0xff]  }
 0x4da   :  { %v5358_v31 = vpop.f32.mrf.mxu0  ;;  %v5399_v30 = vpop.f32.mrf.mxu1  ;;  %v7318_v21 = vld [vmem:[#allocation13 + $0x1c8] sm:$0xff]   ;;  %v5517_v15 = vrot.slane %v7931_v5, %v5516_v2  ;;  %v4931_v19 = vadd.f32 %v7925_v61, %v7917_v7 }
 0x4db   :  { %v5535_v36 = vadd.f32 %v5501_v14, %v5485_v35  ;;  %v5537_v44 = vadd.f32 %v5509_v16, %v5487_v18  ;;  %v5542_v33 = vmax.f32 %v5534_v25, 0.0  ;;  %v5544_v60 = vmax.f32 %v5536_v26, 0.0  ;;  %v7319_v56 = vld [vmem:[#allocation13 + $0x108] sm:$0xff]  }
 0x4dc   :  { %v5359_v54 = vpop.f32.mrf.mxu0  ;;  %v5400_v45 = vpop.f32.mrf.mxu1  ;;  %v4929_v14 = vadd.f32 %v7923_v32, %v7914_v52  ;;  %v7320_v25 = vld [vmem:[#allocation13 + $0x188] sm:$0xff]   ;;  %v7321_v52 = vld [vmem:[#allocation13 + $0x140] sm:$0xff]  }
 0x4dd   :  { %v5543_v37 = vmax.f32 %v5535_v36, 0.0  ;;  %v5545_v29 = vmax.f32 %v5537_v44, 0.0  ;;  %v5550_v41 = vpack.c.bf16 %v5542_v33, %v5542_v33  ;;  %v5552_v51 = vpack.c.bf16 %v5544_v60, %v5544_v60  ;;  %v7322_v32 = vld [vmem:[#allocation13 + $0x1c0] sm:$0xff]  }
 0x4de   :  { %v7324_v44 = vld [vmem:[#allocation13 + $0x180] sm:$0xff]  }
 0x4df   :  { %v5551_v40 = vpack.c.bf16 %v5543_v37, %v5543_v37  ;;  %v5553_v22 = vpack.c.bf16 %v5545_v29, %v5545_v29 }
 0x4e1   :  { %6109 = vmatprep.mubr.bf16.mxu0 %v5551_v40  ;;  %6149 = vmatprep.mubr.bf16.mxu1 %v5553_v22 }
 0x4e2   :  { %6110 = vmatmul.mubr.bf16.vlgmr.msra.gmra.mxu0 %v5550_v41  ;;  %6150 = vmatmul.mubr.bf16.vlgmr.msra.gmra.mxu1 %v5552_v51 }
 0x4e3   :  { %7016 = vmatpush3.bf16.msra.mxu0 %v7295_v38  ;;  %7038 = vmatpush3.bf16.msra.mxu1 %v7296_v42 }
 0x4e4   :  { %7017 = vmatprep.subr.bf16.mxu0 %v7297_v46  ;;  %7039 = vmatprep.subr.bf16.mxu1 %v7298_v10 }
 0x4e7   :  { %7018 = vmatpush3.bf16.msra.mxu0 %v7299_v53  ;;  %7040 = vmatpush3.bf16.msra.mxu1 %v7300_v0 }
 0x4e8   :  { %7019 = vmatprep.subr.bf16.mxu0 %v7301_v62  ;;  %7041 = vmatprep.subr.bf16.mxu1 %v7302_v59 }
 0x4eb   :  { %7020 = vmatpush3.bf16.msra.mxu0 %v7303_v34  ;;  %7042 = vmatpush3.bf16.msra.mxu1 %v7304_v63  ;;  %v6838_v63 = vld [vmem:[#allocation14] ss:$0 sm:$0xff] }
 0x4ec   :  { %7021 = vmatprep.subr.bf16.mxu0 %v7305_v43  ;;  %7043 = vmatprep.subr.bf16.mxu1 %v7306_v23 }
 0x4ef   :  { %7022 = vmatpush3.bf16.msra.mxu0 %v7307_v55  ;;  %7044 = vmatpush3.bf16.msra.mxu1 %v7308_v57 }
 0x4f0   :  { %7023 = vmatprep.subr.bf16.mxu0 %v7309_v58  ;;  %7045 = vmatprep.subr.bf16.mxu1 %v7310_v24 }
 0x4f3   :  { %7024 = vmatpush3.bf16.msra.mxu0 %v7311_v48  ;;  %7046 = vmatpush3.bf16.msra.mxu1 %v7312_v3 }
 0x4f4   :  { %7025 = vmatprep.subr.bf16.mxu0 %v7313_v4  ;;  %7047 = vmatprep.subr.bf16.mxu1 %v7314_v8 }
 0x4f6   :  { %v5436_v16 = vpop.f32.mrf.mxu0  ;;  %v5477_v17 = vpop.f32.mrf.mxu1 }
 0x4f7   :  { %v5488_v20 = vadd.f32 %v5436_v16, %v7919_v28  ;;  %v5490_v27 = vadd.f32 %v5477_v17, %v7921_v50  ;;  %7026 = vmatpush3.bf16.msra.mxu0 %v7315_v47  ;;  %7048 = vmatpush3.bf16.msra.mxu1 %v7316_v13  ;;  %v7323_v50 = vld [vmem:[#allocation13 + $0x100] sm:$0xff]  }
 0x4f8   :  { %v5438_v26 = vpop.f32.mrf.mxu0  ;;  %v5479_v35 = vpop.f32.mrf.mxu1  ;;  %7027 = vmatprep.subr.bf16.mxu0 %v7317_v6  ;;  %7049 = vmatprep.subr.bf16.mxu1 %v7318_v21  ;;  %v7530_v6 = vmov 4  }
 0x4f9   :  { %v5538_v18 = vadd.f32 %v5513_v11, %v5488_v20  ;;  %v5540_v31 = vadd.f32 %v5521_v39, %v5490_v27  ;;  %v5489_v5 = vadd.f32 %v5438_v26, %v4929_v14  ;;  %v5491_v30 = vadd.f32 %v5479_v35, %v4931_v19 }
 0x4fa   :  { %v5440_v36 = vpop.f32.mrf.mxu0  ;;  %v5481_v7 = vpop.f32.mrf.mxu1 }
 0x4fb   :  { %v5539_v61 = vadd.f32 %v5517_v15, %v5489_v5  ;;  %v5541_v28 = vadd.f32 %v5525_v1, %v5491_v30  ;;  %7028 = vmatpush3.bf16.msra.mxu0 %v7319_v56  ;;  %7050 = vmatpush3.bf16.msra.mxu1 %v7320_v25  ;;  %v5546_v33 = vmax.f32 %v5538_v18, 0.0  ;;  %v5548_v60 = vmax.f32 %v5540_v31, 0.0 }
 0x4fc   :  { %v5441_v54 = vpop.f32.mrf.mxu0  ;;  %v5482_v45 = vpop.f32.mrf.mxu1  ;;  %7029 = vmatprep.subr.bf16.mxu0 %v7321_v52  ;;  %7051 = vmatprep.subr.bf16.mxu1 %v7322_v32 }
 0x4fd   :  { %v5547_v37 = vmax.f32 %v5539_v61, 0.0  ;;  %v5549_v29 = vmax.f32 %v5541_v28, 0.0  ;;  %v5554_v38 = vpack.c.bf16 %v5546_v33, %v5546_v33  ;;  %v5556_v42 = vpack.c.bf16 %v5548_v60, %v5548_v60 }
 0x4ff   :  { %v5555_v40 = vpack.c.bf16 %v5547_v37, %v5547_v37  ;;  %v5557_v22 = vpack.c.bf16 %v5549_v29, %v5549_v29  ;;  %7030 = vmatpush3.bf16.msra.mxu0 %v7323_v50  ;;  %7052 = vmatpush3.bf16.msra.mxu1 %v7324_v44 }
 0x501   :  { %6189 = vmatprep.mubr.bf16.mxu0 %v5555_v40  ;;  %6229 = vmatprep.mubr.bf16.mxu1 %v5557_v22 }
 0x502   :  { %6190 = vmatmul.mubr.bf16.vlgmr.msra.gmra.mxu0 %v5554_v38  ;;  %6230 = vmatmul.mubr.bf16.vlgmr.msra.gmra.mxu1 %v5556_v42 }
 0x5a2   :  { %v6987_v41 = vpop.f32.mrf.mxu0  ;;  %v7009_v51 = vpop.f32.mrf.mxu1 }
 0x5a4   :  { %v6988_v46 = vpop.f32.mrf.mxu0  ;;  %v7010_v10 = vpop.f32.mrf.mxu1 }
 0x5a5   :  { %v6989_v34 = vadd.f32 %v6988_v46, %v6987_v41  ;;  %v7011_v57 = vadd.f32 %v7010_v10, %v7009_v51 }
 0x5a6   :  { %v6990_v53 = vpop.f32.mrf.mxu0  ;;  %v7012_v0 = vpop.f32.mrf.mxu1 }
 0x5a7   :  { %v6112_v43 = vadd.f32 %v6989_v34, %v6838_v63 }
 0x5a8   :  { %v6991_v62 = vpop.f32.mrf.mxu0  ;;  %v7013_v59 = vpop.f32.mrf.mxu1 }
 0x5a9   :  { %v6152_v48 = vadd.f32 %v7011_v57, %v6112_v43 }
 0x5c2   :  { %v7031_v23 = vpop.f32.mrf.mxu0  ;;  %v7053_v55 = vpop.f32.mrf.mxu1 }
 0x5c4   :  { %v7032_v58 = vpop.f32.mrf.mxu0  ;;  %v7054_v24 = vpop.f32.mrf.mxu1 }
 0x5c5   :  { %v7033_v3 = vadd.f32 %v7032_v58, %v7031_v23  ;;  %v7055_v49 = vadd.f32 %v7054_v24, %v7053_v55 }
 0x5c6   :  { %v7034_v4 = vpop.f32.mrf.mxu0  ;;  %v7056_v8 = vpop.f32.mrf.mxu1 }
 0x5c7   :  { %v6192_v9 = vadd.f32 %v7033_v3, %v6152_v48 }
 0x5c8   :  { %v7035_v2 = vpop.f32.mrf.mxu0  ;;  %v7057_v12 = vpop.f32.mrf.mxu1 }
 0x5c9   :  { %v6232_v47 = vadd.f32 %v7055_v49, %v6192_v9 }
 0x5cb   :  { %6240 = vperm.xlu0 %7211, %v6232_v47   ;;  %v6237_v13 = vmul.f32 0.33333334, %v6232_v47 }
 0x5cf   :  { %7212 = vset.pattern.permute.xlu0 %v7530_v6 }
 0x5d0   :  { %6246 = vperm.xlu0 %7212, %v6237_v13  }
 0x646   :  { %v6241_v21 = vpop.permute.xlu0 %6240 }
 0x647   :  { %v6243_v11 = vadd.f32 %v6241_v21, %v6232_v47 }
 0x64b   :  { %v6247_v39 = vpop.permute.xlu0 %6246 }
 0x64c   :  { %v6249_v14 = vsub.f32 %v6243_v11, %v6247_v39 }
 0x64e   :  { %6250 = vst [vmem:[#allocation16] sm:$0xff] %v6249_v14 }
 0x64f   :  { %7496 = shalt.err (!%p7493_p2)
}
 0x650   :  { %6260 = dma.vmem_to_hbm [thread:$0]  %s6258_s15, 128, %s7967_s9, [#allocation4]  }
 0x651   :  { %7515 = dma.done.wait [#allocation4], 128  }
 0x652   :  { %7516 = vsyncadd [#allocation4], 4294967168 }
 0x653   :  { %6264 = vsyncpa [#allocation3], 1 }
 0x654   :  { %6265 = vsyncpa [#allocation6], 1 }
 0x655   :  { %6266 = vsyncpa [#allocation9], 1 }
 0x656   :  { %6267 = vsyncpa [#allocation12], 1 }
 0x657   :  { %6268 = vsyncpa [#allocation15], 1 }
 0x658   :  { %6269 = vsyncpa [#allocation4], 1 }

</bundles_post_ra>
